<compile_context>
chip_gen: v7x
topology: tpu7x:2x2x1
jax: 0.10.0
libtpu: 0.0.40
codegen_flags: <defaults>
</compile_context>

<pallas_src>
import functools
from typing import NamedTuple, Optional

import jax
import jax.numpy as jnp
import numpy as np
from jax.experimental import pallas as pl
from jax.experimental.pallas import tpu as pltpu


def _round_up(x, m):
    return ((x + m - 1) // m) * m


# ----------------------------- Pallas kernel ---------------------------------
def _softmax_last(x):
    m = jnp.max(x, axis=-1, keepdims=True)
    e = jnp.exp(x - m)
    # divide -> EUP reciprocal (otherwise-idle slot)
    return e * pl.reciprocal(jnp.sum(e, axis=-1, keepdims=True), approx=True)


def attn_decoder_kernel(
    # activations
    action_ref, feature_ref, cand_ref, prev_h1_ref, c0_ref, ctx_ref, ctx_mask_ref,
    # parameters (pre-transposed / fused / bf16-cast in the wrapper)
    w_emb_ref, b_emb_ref,
    w_prev_ref, w_ih_e_ref, w_ih_f_ref, b_gates_ref,
    w_h1_ref, w_ao_c_ref, w_c_in_ref,
    # outputs
    h1_ref, c1_ref, logit_ref, htilde_ref,
):
    f32 = jnp.float32
    bf16 = jnp.bfloat16
    H = h1_ref.shape[-1]
    nc_in = cand_ref.shape[1]        # sublane-padded candidate count (small)
    nc_out = logit_ref.shape[-1]     # 128-lane-dense output width

    feature = feature_ref[...]       # [BB, NV, F]   bf16
    cand = cand_ref[...]             # [BB, NCi, F]  bf16
    ctx = ctx_ref[...]               # [BB, S, H]    bf16
    prev_h1 = prev_h1_ref[...]       # [BB, H]       f32
    c0 = c0_ref[...]                 # [BB, H]       f32
    ctx_mask = ctx_mask_ref[...]     # [BB, S]       f32

    # --- self.embedding: tanh(Linear(action)) ---------------------------------
    # TODO(synk): nn.Dropout is train-time stochastic; modeled as identity (eval mode).
    a_emb = jnp.tanh(
        jnp.dot(action_ref[...].astype(bf16), w_emb_ref[...],
                preferred_element_type=f32) + b_emb_ref[...])            # [BB, E] f32

    # --- fused prev_h1 projection: prev_h1 @ [w_hh.T | w_fa_in.T]  (MXU) ------
    prev_proj = jnp.dot(prev_h1.astype(bf16), w_prev_ref[...],
                        preferred_element_type=f32)                      # [BB, 4H+F]
    gates_hh = prev_proj[:, :4 * H]                                      # [BB, 4H]
    tgt_f = prev_proj[:, 4 * H:]                                         # [BB, F]

    # --- feat_att_layer(prev_h1, feature, output_tilde=False) -----------------
    # q=1 contractions run on the (otherwise idle) VPU + XLU, keeping the MXU free
    # for the weight matmuls; arithmetic is f32 (bf16 inputs promote).
    score_f = jnp.sum(tgt_f[:, None, :] * feature, axis=-1)              # [BB, NV]
    alpha_f = _softmax_last(score_f)
    attn_feat = jnp.sum(alpha_f[:, :, None] * feature, axis=1)           # [BB, F]

    # --- LSTMCell(cat(a_emb, attn_feat), (prev_h1, c_0)) -----------------------
    # w_ih split per input => no lane-axis concat; recurrent part comes from the
    # fused prev_h1 matmul; single fused bias (b_ih + b_hh).
    gates = (gates_hh
             + jnp.dot(a_emb.astype(bf16), w_ih_e_ref[...], preferred_element_type=f32)
             + jnp.dot(attn_feat.astype(bf16), w_ih_f_ref[...], preferred_element_type=f32)
             + b_gates_ref[...])                                         # [BB, 4H] f32
    i_g = jax.nn.sigmoid(gates[:, 0 * H:1 * H])
    f_g = jax.nn.sigmoid(gates[:, 1 * H:2 * H])
    g_g = jnp.tanh(gates[:, 2 * H:3 * H])
    o_g = jax.nn.sigmoid(gates[:, 3 * H:4 * H])
    c1 = f_g * c0 + i_g * g_g                                            # f32 state
    h1 = o_g * jnp.tanh(c1)

    # --- attention_layer(h_1, ctx, ctx_mask) ----------------------------------
    # fused h1 projection: h1 @ [w_a_in | w_a_out[:, H:]]
    h1_proj = jnp.dot(h1.astype(bf16), w_h1_ref[...], preferred_element_type=f32)
    tgt_a = h1_proj[:, :H]                                               # [BB, H]
    h1_out = h1_proj[:, H:]                                              # [BB, H]
    score_a = jnp.sum(tgt_a[:, None, :] * ctx, axis=-1)                  # [BB, S]
    score_a = jnp.where(ctx_mask > 0.5, f32(-1e30), score_a)
    alpha_a = _softmax_last(score_a)
    wctx = jnp.sum(alpha_a[:, :, None] * ctx, axis=1)                    # [BB, H]
    h_tilde = jnp.tanh(
        jnp.dot(wctx.astype(bf16), w_ao_c_ref[...], preferred_element_type=f32)
        + h1_out)                                                        # [BB, H]

    # --- candidate_att_layer(h_tilde, cand_feat, output_prob=False) -----------
    tgt_c = jnp.dot(h_tilde.astype(bf16), w_c_in_ref[...], preferred_element_type=f32)
    logit = jnp.sum(tgt_c[:, None, :] * cand, axis=-1)                   # [BB, NCi]

    h1_ref[...] = h1
    c1_ref[...] = c1
    htilde_ref[...] = h_tilde
    # 128-lane-dense logit block: real candidate columns + zero-filled padded lanes.
    logit_ref[:, :nc_in] = logit
    if nc_out > nc_in:
        logit_ref[:, nc_in:] = jnp.zeros((logit.shape[0], nc_out - nc_in), f32)


# ------------------------------- planning -------------------------------------
class Plan(NamedTuple):
    B: int
    NC: int
    BB: int
    B_pad: int
    NC_in: int
    NC_out: int
    nb: int
    vmem_limit: int
    weight_buffers: Optional[int]   # 1 => single-buffer the grid-invariant weights


def make_plan(prepped, *, B, A, H, F, NV, NC, S, weight_buffers=1):
    """Pick the batch block BB from a per-generation VMEM budget."""
    weight_bytes = sum(int(v.size) * v.dtype.itemsize for v in prepped.values())
    wfac = 1 if weight_buffers == 1 else 2

    NC_in = _round_up(max(NC, 1), 16)       # bf16 sublane tile only (NOT 128)
    NC_out = _round_up(NC_in, 128)          # lane-dense logit output block

    # per-batch-row bytes: streamed activations (x2 buffers), outputs (x2 buffers),
    # plus the f32 broadcast temporaries of the VPU contractions.
    act_row = A * 4 + NV * F * 2 + NC_in * F * 2 + 2 * H * 4 + S * H * 2 + S * 4
    out_row = 3 * H * 4 + NC_out * 4
    tmp_row = (NV * F + NC_in * F + S * H) * 4

    try:
        vmem_cap = int(pltpu.get_tpu_info().vmem_capacity_bytes)
    except Exception:
        vmem_cap = 64 * 2 ** 20             # conservative default: v7x physical VMEM
    budget = vmem_cap - max(vmem_cap // 8, 8 * 2 ** 20)   # ~56 MiB v7x, ~112 MiB v5e/v6e

    def footprint(bb):
        return (wfac * weight_bytes + 2 * bb * (act_row + out_row)
                + bb * tmp_row + 2 * 2 ** 20)

    b8 = _round_up(max(B, 1), 8)
    BB = 8
    for bb in (128, 64, 32, 16, 8):
        if bb > b8:
            continue
        bpad = _round_up(B, bb)
        if bpad != b8 and 4 * (bpad - B) > B:
            continue                         # cap padded-row HBM waste (~25%)
        if footprint(bb) > budget:
            continue
        if bpad // bb < 2 and b8 > 8:
            continue                         # keep >=2 'parallel' blocks for megacore
        BB = bb
        break
    B_pad = _round_up(max(B, 1), BB)
    nb = B_pad // BB
    vmem_limit = int(min(budget, max(16 * 2 ** 20,
                                     footprint(BB) + footprint(BB) // 4)))
    return Plan(B, NC, BB, B_pad, NC_in, NC_out, nb, vmem_limit, weight_buffers)


# ------------------------------- wrappers --------------------------------------
def prepare_params(p):
    """One-time weight prep: transpose to [in, out], fuse shared-input projections,
    fold biases, split w_ih / w_a_out per input, cast MXU operands to bf16."""
    bf16, f32 = jnp.bfloat16, jnp.float32
    E = p["w_emb"].shape[0]
    H = p["w_hh"].shape[1]
    return {
        "w_emb": p["w_emb"].T.astype(bf16),                                      # [A, E]
        "b_emb": p["b_emb"].reshape(1, -1).astype(f32),                          # [1, E]
        # prev_h1-consuming projections fused: [w_hh.T | w_fa_in.T] -> [H, 4H+F]
        "w_prev": jnp.concatenate([p["w_hh"].T, p["w_fa_in"].T], axis=1).astype(bf16),
        # LSTM input weight split per input (no lane concat in the kernel)
        "w_ih_e": p["w_ih"][:, :E].T.astype(bf16),                               # [E, 4H]
        "w_ih_f": p["w_ih"][:, E:].T.astype(bf16),                               # [F, 4H]
        "b_gates": (p["b_ih"] + p["b_hh"]).reshape(1, -1).astype(f32),           # [1, 4H]
        # h1-consuming projections fused: [w_a_in.T | w_a_out.T[H:, :]] -> [H, 2H]
        "w_h1": jnp.concatenate([p["w_a_in"].T, p["w_a_out"].T[H:, :]],
                                axis=1).astype(bf16),
        "w_ao_c": p["w_a_out"].T[:H, :].astype(bf16),                            # [H, H]
        "w_c_in": p["w_c_in"].T.astype(bf16),                                    # [H, F]
    }


def prepare_episode(feature, cand_feat, ctx, ctx_mask, plan):
    """One-time (per decode episode) batch/candidate padding + bf16 cast of the
    step-invariant tensors — hoisted out of the per-step path."""
    bf16, f32 = jnp.bfloat16, jnp.float32
    B, B_pad = plan.B, plan.B_pad
    NC = cand_feat.shape[1]

    def pad_b(x):
        if B_pad == B:
            return x
        return jnp.pad(x, ((0, B_pad - B),) + ((0, 0),) * (x.ndim - 1))

    cand_p = cand_feat
    if plan.NC_in != NC:
        cand_p = jnp.pad(cand_p, ((0, 0), (0, plan.NC_in - NC), (0, 0)))
    return (pad_b(feature).astype(bf16),
            pad_b(cand_p).astype(bf16),
            pad_b(ctx).astype(bf16),
            pad_b(ctx_mask).astype(f32))


def attn_decoder_step(plan, prepped, action, feature_p, cand_p, h_0, prev_h1, c_0,
                      ctx_p, ctx_mask_p):
    """One AttnDecoderLSTM.forward step.  feature_p / cand_p / ctx_p / ctx_mask_p come
    from prepare_episode (already padded + bf16).  h_0 is accepted for parity with the
    PyTorch module but is unused.  Returns (h_1, c_1, logit, h_tilde)."""
    del h_0
    f32 = jnp.float32
    B, BB, B_pad = plan.B, plan.BB, plan.B_pad
    A = action.shape[1]
    H = prev_h1.shape[1]
    NV, F = feature_p.shape[1], feature_p.shape[2]
    NC_in, NC_out = plan.NC_in, plan.NC_out
    S = ctx_p.shape[1]

    def pad_b(x):
        if x.shape[0] == B_pad:
            return x
        return jnp.pad(x, ((0, B_pad - x.shape[0]),) + ((0, 0),) * (x.ndim - 1))

    inputs = (
        pad_b(action).astype(f32),
        feature_p, cand_p,
        pad_b(prev_h1).astype(f32),
        pad_b(c_0).astype(f32),
        ctx_p, ctx_mask_p,
        prepped["w_emb"], prepped["b_emb"],
        prepped["w_prev"], prepped["w_ih_e"], prepped["w_ih_f"], prepped["b_gates"],
        prepped["w_h1"], prepped["w_ao_c"], prepped["w_c_in"],
    )
    weight_keys = ("w_emb", "b_emb", "w_prev", "w_ih_e", "w_ih_f", "b_gates",
                   "w_h1", "w_ao_c", "w_c_in")

    def wspec(shape):
        # Grid-invariant weights: single-buffer them (double-buffering constant data
        # only burns VMEM).  Fallback path drops the hint (weight_buffers=None).
        if plan.weight_buffers is None:
            return pl.BlockSpec(shape, lambda b: (0, 0))
        return pl.BlockSpec(shape, lambda b: (0, 0),
                            pipeline_mode=pl.Buffered(plan.weight_buffers))

    in_specs = [
        pl.BlockSpec((BB, A), lambda b: (b, 0)),
        pl.BlockSpec((BB, NV, F), lambda b: (b, 0, 0)),
        pl.BlockSpec((BB, NC_in, F), lambda b: (b, 0, 0)),
        pl.BlockSpec((BB, H), lambda b: (b, 0)),
        pl.BlockSpec((BB, H), lambda b: (b, 0)),
        pl.BlockSpec((BB, S, H), lambda b: (b, 0, 0)),
        pl.BlockSpec((BB, S), lambda b: (b, 0)),
    ] + [wspec(tuple(int(d) for d in prepped[k].shape)) for k in weight_keys]

    out_specs = (
        pl.BlockSpec((BB, H), lambda b: (b, 0)),
        pl.BlockSpec((BB, H), lambda b: (b, 0)),
        pl.BlockSpec((BB, NC_out), lambda b: (b, 0)),
        pl.BlockSpec((BB, H), lambda b: (b, 0)),
    )
    out_shape = (
        jax.ShapeDtypeStruct((B_pad, H), f32),       # h_1
        jax.ShapeDtypeStruct((B_pad, H), f32),       # c_1
        jax.ShapeDtypeStruct((B_pad, NC_out), f32),  # logit (lane-dense block)
        jax.ShapeDtypeStruct((B_pad, H), f32),       # h_tilde
    )

    h1, c1, logit, h_tilde = pl.pallas_call(
        attn_decoder_kernel,
        out_shape=out_shape,
        grid_spec=pltpu.PrefetchScalarGridSpec(
            num_scalar_prefetch=0,
            grid=(plan.nb,),
            in_specs=in_specs,
            out_specs=out_specs,
        ),
        compiler_params=pltpu.CompilerParams(
            dimension_semantics=("parallel",),   # batch blocks shard across TCs on v7x
            vmem_limit_bytes=plan.vmem_limit,
        ),
    )(*inputs)

    return h1[:B], c1[:B], logit[:B, :plan.NC], h_tilde[:B]


# --------------------------- pure-JAX reference --------------------------------
def reference_forward(action, feature, cand_feat, h_0, prev_h1, c_0, ctx, ctx_mask, p):
    del h_0

    def softmax(x):
        m = jnp.max(x, axis=-1, keepdims=True)
        e = jnp.exp(x - m)
        return e / jnp.sum(e, axis=-1, keepdims=True)

    a_emb = jnp.tanh(action @ p["w_emb"].T + p["b_emb"])
    tgt_f = prev_h1 @ p["w_fa_in"].T
    af = softmax(jnp.einsum("bvf,bf->bv", feature, tgt_f))
    attn_feat = jnp.einsum("bv,bvf->bf", af, feature)
    x = jnp.concatenate([a_emb, attn_feat], axis=1)
    gates = x @ p["w_ih"].T + p["b_ih"] + prev_h1 @ p["w_hh"].T + p["b_hh"]
    H = prev_h1.shape[1]
    i = jax.nn.sigmoid(gates[:, :H])
    f = jax.nn.sigmoid(gates[:, H:2 * H])
    g = jnp.tanh(gates[:, 2 * H:3 * H])
    o = jax.nn.sigmoid(gates[:, 3 * H:])
    c1 = f * c_0 + i * g
    h1 = o * jnp.tanh(c1)
    tgt_a = h1 @ p["w_a_in"].T
    sa = jnp.where(ctx_mask > 0.5, -jnp.inf, jnp.einsum("bsh,bh->bs", ctx, tgt_a))
    aa = softmax(sa)
    wctx = jnp.einsum("bs,bsh->bh", aa, ctx)
    h_tilde = jnp.tanh(jnp.concatenate([wctx, h1], axis=1) @ p["w_a_out"].T)
    tgt_c = h_tilde @ p["w_c_in"].T
    logit = jnp.einsum("bcf,bf->bc", cand_feat, tgt_c)
    return h1, c1, logit, h_tilde


# ---------------------------------- main ---------------------------------------
if __name__ == "__main__":
    # small synthetic shapes consistent with the module
    B = 2           # batch
    A = 16          # angle_feat_size
    E = 32          # embedding_size
    H = 32          # hidden_size
    F = 128         # feature_size (stands in for 2048 + 4)
    NV = 36         # panoramic views
    NC = 8          # candidate count
    S = 8           # instruction seq_len

    key = jax.random.PRNGKey(0)
    ks = jax.random.split(key, 20)

    def rnd(k, shape, scale=0.05):
        return (scale * jax.random.normal(k, shape)).astype(jnp.float32)

    params = {
        # nn.Linear(angle_feat_size, embedding_size)  (with bias)
        "w_emb": rnd(ks[0], (E, A)), "b_emb": rnd(ks[1], (E,)),
        # nn.LSTMCell(embedding_size + feature_size, hidden_size)
        "w_ih": rnd(ks[2], (4 * H, E + F)), "b_ih": rnd(ks[3], (4 * H,)),
        "w_hh": rnd(ks[4], (4 * H, H)), "b_hh": rnd(ks[5], (4 * H,)),
        # feat_att_layer = SoftDotAttention(hidden, feature): linear_in only used
        "w_fa_in": rnd(ks[6], (F, H)),
        # attention_layer = SoftDotAttention(hidden, hidden)
        "w_a_in": rnd(ks[7], (H, H)), "w_a_out": rnd(ks[8], (H, 2 * H)),
        # candidate_att_layer = SoftDotAttention(hidden, feature): linear_in only used
        "w_c_in": rnd(ks[9], (F, H)),
    }

    action = rnd(ks[10], (B, A), 1.0)
    feature = rnd(ks[11], (B, NV, F), 1.0)
    cand_feat = rnd(ks[12], (B, NC, F), 1.0)
    h_0 = rnd(ks[13], (B, H), 1.0)        # unused by forward (parity with torch API)
    prev_h1 = rnd(ks[14], (B, H), 1.0)
    c_0 = rnd(ks[15], (B, H), 1.0)
    ctx = rnd(ks[16], (B, S, H), 1.0)
    # mask: 1.0 == masked position (like torch bool mask), keep at least one valid
    lengths = jnp.array([S, S - 3], dtype=jnp.int32)
    ctx_mask = (jnp.arange(S)[None, :] >= lengths[:, None]).astype(jnp.float32)

    # one-time preps (hoisted out of the per-step path)
    prepped = prepare_params(params)
    plan = make_plan(prepped, B=B, A=A, H=H, F=F, NV=NV, NC=NC, S=S, weight_buffers=1)
    feat_p, cand_p, ctx_p, mask_p = prepare_episode(feature, cand_feat, ctx, ctx_mask,
                                                    plan)

    step = jax.jit(attn_decoder_step, static_argnums=0)
    try:
        outs = step(plan, prepped, action, feat_p, cand_p, h_0, prev_h1, c_0,
                    ctx_p, mask_p)
        jax.block_until_ready(outs)
    except Exception:
        # Portability fallback: drop the single-buffered-weight hint if this
        # jax / Mosaic build rejects pipeline_mode=pl.Buffered(1).
        plan = plan._replace(weight_buffers=None)
        outs = step(plan, prepped, action, feat_p, cand_p, h_0, prev_h1, c_0,
                    ctx_p, mask_p)
        jax.block_until_ready(outs)
    h1, c1, logit, h_tilde = outs

    ref = reference_forward(action, feature, cand_feat, h_0, prev_h1, c_0,
                            ctx, ctx_mask, params)
    # Kernel runs the weight projections with bf16 operands (f32 accumulation) and
    # streams feature/cand/ctx in bf16; the reference is pure f32, so the tolerance
    # is loosened accordingly.
    for got, want in zip((h1, c1, logit, h_tilde), ref):
        np.testing.assert_allclose(np.asarray(got), np.asarray(want),
                                   rtol=5e-2, atol=5e-2)

    print("KERNEL_OK")
</pallas_src>

<mosaic_0001>
module attributes {stable_mosaic.version = 11 : i64} {
  func.func @attn_decoder_kernel(%arg0: i32, %arg1: memref<8x16xf32, #tpu.memory_space<vmem>>, %arg2: memref<8x36x128xbf16, #tpu.memory_space<vmem>>, %arg3: memref<8x16x128xbf16, #tpu.memory_space<vmem>>, %arg4: memref<8x32xf32, #tpu.memory_space<vmem>>, %arg5: memref<8x32xf32, #tpu.memory_space<vmem>>, %arg6: memref<8x8x32xbf16, #tpu.memory_space<vmem>>, %arg7: memref<8x8xf32, #tpu.memory_space<vmem>>, %arg8: memref<16x32xbf16, #tpu.memory_space<vmem>>, %arg9: memref<1x32xf32, #tpu.memory_space<vmem>>, %arg10: memref<32x256xbf16, #tpu.memory_space<vmem>>, %arg11: memref<32x128xbf16, #tpu.memory_space<vmem>>, %arg12: memref<128x128xbf16, #tpu.memory_space<vmem>>, %arg13: memref<1x128xf32, #tpu.memory_space<vmem>>, %arg14: memref<32x64xbf16, #tpu.memory_space<vmem>>, %arg15: memref<32x32xbf16, #tpu.memory_space<vmem>>, %arg16: memref<32x128xbf16, #tpu.memory_space<vmem>>, %arg17: memref<8x32xf32, #tpu.memory_space<vmem>>, %arg18: memref<8x32xf32, #tpu.memory_space<vmem>>, %arg19: memref<8x128xf32, #tpu.memory_space<vmem>>, %arg20: memref<8x32xf32, #tpu.memory_space<vmem>>) attributes {dimension_semantics = [#tpu.dimension_semantics<parallel>], iteration_bounds = array<i64: 1>, scalar_prefetch = 0 : i64, scratch_operands = 0 : i64, tpu.core_type = #tpu.core_type<tc>, window_params = [{transform_indices = @transform_0, window_bounds = array<i64: 8, 16>}, {transform_indices = @transform_1, window_bounds = array<i64: 8, 36, 128>}, {transform_indices = @transform_2, window_bounds = array<i64: 8, 16, 128>}, {transform_indices = @transform_3, window_bounds = array<i64: 8, 32>}, {transform_indices = @transform_4, window_bounds = array<i64: 8, 32>}, {transform_indices = @transform_5, window_bounds = array<i64: 8, 8, 32>}, {transform_indices = @transform_6, window_bounds = array<i64: 8, 8>}, {pipeline_mode = #tpu.pipeline_mode<synchronous>, transform_indices = @transform_7, window_bounds = array<i64: 16, 32>}, {pipeline_mode = #tpu.pipeline_mode<synchronous>, transform_indices = @transform_8, window_bounds = array<i64: 1, 32>}, {pipeline_mode = #tpu.pipeline_mode<synchronous>, transform_indices = @transform_9, window_bounds = array<i64: 32, 256>}, {pipeline_mode = #tpu.pipeline_mode<synchronous>, transform_indices = @transform_10, window_bounds = array<i64: 32, 128>}, {pipeline_mode = #tpu.pipeline_mode<synchronous>, transform_indices = @transform_11, window_bounds = array<i64: 128, 128>}, {pipeline_mode = #tpu.pipeline_mode<synchronous>, transform_indices = @transform_12, window_bounds = array<i64: 1, 128>}, {pipeline_mode = #tpu.pipeline_mode<synchronous>, transform_indices = @transform_13, window_bounds = array<i64: 32, 64>}, {pipeline_mode = #tpu.pipeline_mode<synchronous>, transform_indices = @transform_14, window_bounds = array<i64: 32, 32>}, {pipeline_mode = #tpu.pipeline_mode<synchronous>, transform_indices = @transform_15, window_bounds = array<i64: 32, 128>}, {transform_indices = @transform_16, window_bounds = array<i64: 8, 32>}, {transform_indices = @transform_17, window_bounds = array<i64: 8, 32>}, {transform_indices = @transform_18, window_bounds = array<i64: 8, 128>}, {transform_indices = @transform_19, window_bounds = array<i64: 8, 32>}]} {
    %c0 = arith.constant 0 : index
    %c0_0 = arith.constant 0 : index
    %c0_1 = arith.constant 0 : index
    %0 = vector.load %arg2[%c0, %c0_0, %c0_1] : memref<8x36x128xbf16, #tpu.memory_space<vmem>>, vector<8x36x128xbf16>
    %c0_2 = arith.constant 0 : index
    %c0_3 = arith.constant 0 : index
    %c0_4 = arith.constant 0 : index
    %1 = vector.load %arg3[%c0_2, %c0_3, %c0_4] : memref<8x16x128xbf16, #tpu.memory_space<vmem>>, vector<8x16x128xbf16>
    %c0_5 = arith.constant 0 : index
    %c0_6 = arith.constant 0 : index
    %c0_7 = arith.constant 0 : index
    %2 = vector.load %arg6[%c0_5, %c0_6, %c0_7] : memref<8x8x32xbf16, #tpu.memory_space<vmem>>, vector<8x8x32xbf16>
    %c0_8 = arith.constant 0 : index
    %c0_9 = arith.constant 0 : index
    %3 = vector.load %arg4[%c0_8, %c0_9] : memref<8x32xf32, #tpu.memory_space<vmem>>, vector<8x32xf32>
    %c0_10 = arith.constant 0 : index
    %c0_11 = arith.constant 0 : index
    %4 = vector.load %arg5[%c0_10, %c0_11] : memref<8x32xf32, #tpu.memory_space<vmem>>, vector<8x32xf32>
    %c0_12 = arith.constant 0 : index
    %c0_13 = arith.constant 0 : index
    %5 = vector.load %arg7[%c0_12, %c0_13] : memref<8x8xf32, #tpu.memory_space<vmem>>, vector<8x8xf32>
    %c0_14 = arith.constant 0 : index
    %c0_15 = arith.constant 0 : index
    %6 = vector.load %arg1[%c0_14, %c0_15] : memref<8x16xf32, #tpu.memory_space<vmem>>, vector<8x16xf32>
    %7 = arith.truncf %6 : vector<8x16xf32> to vector<8x16xbf16>
    %c0_16 = arith.constant 0 : index
    %c0_17 = arith.constant 0 : index
    %8 = vector.load %arg8[%c0_16, %c0_17] : memref<16x32xbf16, #tpu.memory_space<vmem>>, vector<16x32xbf16>
    %cst = arith.constant dense<0.000000e+00> : vector<8x32xf32>
    %9 = tpu.matmul %7, %8, %cst {dimension_numbers = #tpu.dot_dimension_numbers<[1], [0], [0], [1], [0, 0, 1, 1], [], []>} : vector<8x16xbf16>, vector<16x32xbf16>, vector<8x32xf32> -> vector<8x32xf32>
    %c0_18 = arith.constant 0 : index
    %c0_19 = arith.constant 0 : index
    %10 = vector.load %arg9[%c0_18, %c0_19] : memref<1x32xf32, #tpu.memory_space<vmem>>, vector<1x32xf32>
    %11 = vector.broadcast %10 : vector<1x32xf32> to vector<8x32xf32>
    %12 = arith.addf %9, %11 : vector<8x32xf32>
    %13 = math.tanh %12 : vector<8x32xf32>
    %14 = arith.truncf %3 : vector<8x32xf32> to vector<8x32xbf16>
    %c0_20 = arith.constant 0 : index
    %c0_21 = arith.constant 0 : index
    %15 = vector.load %arg10[%c0_20, %c0_21] : memref<32x256xbf16, #tpu.memory_space<vmem>>, vector<32x256xbf16>
    %cst_22 = arith.constant dense<0.000000e+00> : vector<8x256xf32>
    %16 = tpu.matmul %14, %15, %cst_22 {dimension_numbers = #tpu.dot_dimension_numbers<[1], [0], [0], [1], [0, 0, 1, 1], [], []>} : vector<8x32xbf16>, vector<32x256xbf16>, vector<8x256xf32> -> vector<8x256xf32>
    %17 = vector.extract_strided_slice %16 {offsets = [0, 0], sizes = [8, 128], strides = [1, 1]} : vector<8x256xf32> to vector<8x128xf32>
    %18 = vector.extract_strided_slice %16 {offsets = [0, 128], sizes = [8, 128], strides = [1, 1]} : vector<8x256xf32> to vector<8x128xf32>
    %19 = vector.shape_cast %18 : vector<8x128xf32> to vector<8x1x128xf32>
    %20 = arith.extf %0 : vector<8x36x128xbf16> to vector<8x36x128xf32>
    %21 = vector.broadcast %19 : vector<8x1x128xf32> to vector<8x36x128xf32>
    %22 = arith.mulf %21, %20 : vector<8x36x128xf32>
    %cst_23 = arith.constant dense<0.000000e+00> : vector<8x36xf32>
    %23 = vector.multi_reduction <add>, %22, %cst_23 [2] : vector<8x36x128xf32> to vector<8x36xf32>
    %cst_24 = arith.constant dense<0xFF800000> : vector<8xf32>
    %24 = vector.multi_reduction <maximumf>, %23, %cst_24 [1] : vector<8x36xf32> to vector<8xf32>
    %25 = vector.shape_cast %24 : vector<8xf32> to vector<8x1xf32>
    %26 = vector.broadcast %25 : vector<8x1xf32> to vector<8x36xf32>
    %27 = arith.subf %23, %26 : vector<8x36xf32>
    %28 = math.exp %27 : vector<8x36xf32>
    %cst_25 = arith.constant dense<0.000000e+00> : vector<8xf32>
    %29 = vector.multi_reduction <add>, %28, %cst_25 [1] : vector<8x36xf32> to vector<8xf32>
    %30 = vector.shape_cast %29 : vector<8xf32> to vector<8x1xf32>
    %31 = tpu.reciprocal %30 {approx = true} : vector<8x1xf32> -> vector<8x1xf32>
    %32 = vector.broadcast %31 : vector<8x1xf32> to vector<8x36xf32>
    %33 = arith.mulf %28, %32 : vector<8x36xf32>
    %34 = vector.shape_cast %33 : vector<8x36xf32> to vector<8x36x1xf32>
    %35 = arith.extf %0 : vector<8x36x128xbf16> to vector<8x36x128xf32>
    %36 = vector.broadcast %34 : vector<8x36x1xf32> to vector<8x36x128xf32>
    %37 = arith.mulf %36, %35 : vector<8x36x128xf32>
    %cst_26 = arith.constant dense<0.000000e+00> : vector<8x128xf32>
    %38 = vector.multi_reduction <add>, %37, %cst_26 [1] : vector<8x36x128xf32> to vector<8x128xf32>
    %39 = arith.truncf %13 : vector<8x32xf32> to vector<8x32xbf16>
    %c0_27 = arith.constant 0 : index
    %c0_28 = arith.constant 0 : index
    %40 = vector.load %arg11[%c0_27, %c0_28] : memref<32x128xbf16, #tpu.memory_space<vmem>>, vector<32x128xbf16>
    %cst_29 = arith.constant dense<0.000000e+00> : vector<8x128xf32>
    %41 = tpu.matmul %39, %40, %cst_29 {dimension_numbers = #tpu.dot_dimension_numbers<[1], [0], [0], [1], [0, 0, 1, 1], [], []>} : vector<8x32xbf16>, vector<32x128xbf16>, vector<8x128xf32> -> vector<8x128xf32>
    %42 = arith.addf %17, %41 : vector<8x128xf32>
    %43 = arith.truncf %38 : vector<8x128xf32> to vector<8x128xbf16>
    %c0_30 = arith.constant 0 : index
    %c0_31 = arith.constant 0 : index
    %44 = vector.load %arg12[%c0_30, %c0_31] : memref<128x128xbf16, #tpu.memory_space<vmem>>, vector<128x128xbf16>
    %cst_32 = arith.constant dense<0.000000e+00> : vector<8x128xf32>
    %45 = tpu.matmul %43, %44, %cst_32 {dimension_numbers = #tpu.dot_dimension_numbers<[1], [0], [0], [1], [0, 0, 1, 1], [], []>} : vector<8x128xbf16>, vector<128x128xbf16>, vector<8x128xf32> -> vector<8x128xf32>
    %46 = arith.addf %42, %45 : vector<8x128xf32>
    %c0_33 = arith.constant 0 : index
    %c0_34 = arith.constant 0 : index
    %47 = vector.load %arg13[%c0_33, %c0_34] : memref<1x128xf32, #tpu.memory_space<vmem>>, vector<1x128xf32>
    %48 = vector.broadcast %47 : vector<1x128xf32> to vector<8x128xf32>
    %49 = arith.addf %46, %48 : vector<8x128xf32>
    %50 = vector.extract_strided_slice %49 {offsets = [0, 0], sizes = [8, 32], strides = [1, 1]} : vector<8x128xf32> to vector<8x32xf32>
    %51 = arith.negf %50 : vector<8x32xf32>
    %52 = math.exp %51 : vector<8x32xf32>
    %cst_35 = arith.constant 1.000000e+00 : f32
    %53 = vector.broadcast %cst_35 : f32 to vector<8x32xf32>
    %54 = arith.addf %53, %52 : vector<8x32xf32>
    %55 = arith.divf %53, %54 : vector<8x32xf32>
    %56 = vector.extract_strided_slice %49 {offsets = [0, 32], sizes = [8, 32], strides = [1, 1]} : vector<8x128xf32> to vector<8x32xf32>
    %57 = arith.negf %56 : vector<8x32xf32>
    %58 = math.exp %57 : vector<8x32xf32>
    %cst_36 = arith.constant 1.000000e+00 : f32
    %59 = vector.broadcast %cst_36 : f32 to vector<8x32xf32>
    %60 = arith.addf %59, %58 : vector<8x32xf32>
    %61 = arith.divf %59, %60 : vector<8x32xf32>
    %62 = vector.extract_strided_slice %49 {offsets = [0, 64], sizes = [8, 32], strides = [1, 1]} : vector<8x128xf32> to vector<8x32xf32>
    %63 = math.tanh %62 : vector<8x32xf32>
    %64 = vector.extract_strided_slice %49 {offsets = [0, 96], sizes = [8, 32], strides = [1, 1]} : vector<8x128xf32> to vector<8x32xf32>
    %65 = arith.negf %64 : vector<8x32xf32>
    %66 = math.exp %65 : vector<8x32xf32>
    %cst_37 = arith.constant 1.000000e+00 : f32
    %67 = vector.broadcast %cst_37 : f32 to vector<8x32xf32>
    %68 = arith.addf %67, %66 : vector<8x32xf32>
    %69 = arith.divf %67, %68 : vector<8x32xf32>
    %70 = arith.mulf %61, %4 : vector<8x32xf32>
    %71 = arith.mulf %55, %63 : vector<8x32xf32>
    %72 = arith.addf %70, %71 : vector<8x32xf32>
    %73 = math.tanh %72 : vector<8x32xf32>
    %74 = arith.mulf %69, %73 : vector<8x32xf32>
    %75 = arith.truncf %74 : vector<8x32xf32> to vector<8x32xbf16>
    %c0_38 = arith.constant 0 : index
    %c0_39 = arith.constant 0 : index
    %76 = vector.load %arg14[%c0_38, %c0_39] : memref<32x64xbf16, #tpu.memory_space<vmem>>, vector<32x64xbf16>
    %cst_40 = arith.constant dense<0.000000e+00> : vector<8x64xf32>
    %77 = tpu.matmul %75, %76, %cst_40 {dimension_numbers = #tpu.dot_dimension_numbers<[1], [0], [0], [1], [0, 0, 1, 1], [], []>} : vector<8x32xbf16>, vector<32x64xbf16>, vector<8x64xf32> -> vector<8x64xf32>
    %78 = vector.extract_strided_slice %77 {offsets = [0, 0], sizes = [8, 32], strides = [1, 1]} : vector<8x64xf32> to vector<8x32xf32>
    %79 = vector.extract_strided_slice %77 {offsets = [0, 32], sizes = [8, 32], strides = [1, 1]} : vector<8x64xf32> to vector<8x32xf32>
    %80 = vector.shape_cast %78 : vector<8x32xf32> to vector<8x1x32xf32>
    %81 = arith.extf %2 : vector<8x8x32xbf16> to vector<8x8x32xf32>
    %82 = vector.broadcast %80 : vector<8x1x32xf32> to vector<8x8x32xf32>
    %83 = arith.mulf %82, %81 : vector<8x8x32xf32>
    %cst_41 = arith.constant dense<0.000000e+00> : vector<8x8xf32>
    %84 = vector.multi_reduction <add>, %83, %cst_41 [2] : vector<8x8x32xf32> to vector<8x8xf32>
    %cst_42 = arith.constant 5.000000e-01 : f32
    %85 = vector.broadcast %cst_42 : f32 to vector<8x8xf32>
    %86 = arith.cmpf ogt, %5, %85 : vector<8x8xf32>
    %cst_43 = arith.constant -1.000000e+30 : f32
    %87 = vector.broadcast %cst_43 : f32 to vector<8x8xf32>
    %88 = arith.select %86, %87, %84 : vector<8x8xi1>, vector<8x8xf32>
    %cst_44 = arith.constant dense<0xFF800000> : vector<8xf32>
    %89 = vector.multi_reduction <maximumf>, %88, %cst_44 [1] : vector<8x8xf32> to vector<8xf32>
    %90 = vector.shape_cast %89 : vector<8xf32> to vector<8x1xf32>
    %91 = vector.broadcast %90 : vector<8x1xf32> to vector<8x8xf32>
    %92 = arith.subf %88, %91 : vector<8x8xf32>
    %93 = math.exp %92 : vector<8x8xf32>
    %cst_45 = arith.constant dense<0.000000e+00> : vector<8xf32>
    %94 = vector.multi_reduction <add>, %93, %cst_45 [1] : vector<8x8xf32> to vector<8xf32>
    %95 = vector.shape_cast %94 : vector<8xf32> to vector<8x1xf32>
    %96 = tpu.reciprocal %95 {approx = true} : vector<8x1xf32> -> vector<8x1xf32>
    %97 = vector.broadcast %96 : vector<8x1xf32> to vector<8x8xf32>
    %98 = arith.mulf %93, %97 : vector<8x8xf32>
    %99 = vector.shape_cast %98 : vector<8x8xf32> to vector<8x8x1xf32>
    %100 = arith.extf %2 : vector<8x8x32xbf16> to vector<8x8x32xf32>
    %101 = vector.broadcast %99 : vector<8x8x1xf32> to vector<8x8x32xf32>
    %102 = arith.mulf %101, %100 : vector<8x8x32xf32>
    %cst_46 = arith.constant dense<0.000000e+00> : vector<8x32xf32>
    %103 = vector.multi_reduction <add>, %102, %cst_46 [1] : vector<8x8x32xf32> to vector<8x32xf32>
    %104 = arith.truncf %103 : vector<8x32xf32> to vector<8x32xbf16>
    %c0_47 = arith.constant 0 : index
    %c0_48 = arith.constant 0 : index
    %105 = vector.load %arg15[%c0_47, %c0_48] : memref<32x32xbf16, #tpu.memory_space<vmem>>, vector<32x32xbf16>
    %cst_49 = arith.constant dense<0.000000e+00> : vector<8x32xf32>
    %106 = tpu.matmul %104, %105, %cst_49 {dimension_numbers = #tpu.dot_dimension_numbers<[1], [0], [0], [1], [0, 0, 1, 1], [], []>} : vector<8x32xbf16>, vector<32x32xbf16>, vector<8x32xf32> -> vector<8x32xf32>
    %107 = arith.addf %106, %79 : vector<8x32xf32>
    %108 = math.tanh %107 : vector<8x32xf32>
    %109 = arith.truncf %108 : vector<8x32xf32> to vector<8x32xbf16>
    %c0_50 = arith.constant 0 : index
    %c0_51 = arith.constant 0 : index
    %110 = vector.load %arg16[%c0_50, %c0_51] : memref<32x128xbf16, #tpu.memory_space<vmem>>, vector<32x128xbf16>
    %cst_52 = arith.constant dense<0.000000e+00> : vector<8x128xf32>
    %111 = tpu.matmul %109, %110, %cst_52 {dimension_numbers = #tpu.dot_dimension_numbers<[1], [0], [0], [1], [0, 0, 1, 1], [], []>} : vector<8x32xbf16>, vector<32x128xbf16>, vector<8x128xf32> -> vector<8x128xf32>
    %112 = vector.shape_cast %111 : vector<8x128xf32> to vector<8x1x128xf32>
    %113 = arith.extf %1 : vector<8x16x128xbf16> to vector<8x16x128xf32>
    %114 = vector.broadcast %112 : vector<8x1x128xf32> to vector<8x16x128xf32>
    %115 = arith.mulf %114, %113 : vector<8x16x128xf32>
    %cst_53 = arith.constant dense<0.000000e+00> : vector<8x16xf32>
    %116 = vector.multi_reduction <add>, %115, %cst_53 [2] : vector<8x16x128xf32> to vector<8x16xf32>
    %c0_54 = arith.constant 0 : index
    %c0_55 = arith.constant 0 : index
    %117 = vector.load %arg17[%c0_54, %c0_55] : memref<8x32xf32, #tpu.memory_space<vmem>>, vector<8x32xf32>
    tpu.vector_store %arg17[%c0_54, %c0_55], %74 {strides = array<i32>} : memref<8x32xf32, #tpu.memory_space<vmem>>, vector<8x32xf32>,
    %c0_56 = arith.constant 0 : index
    %c0_57 = arith.constant 0 : index
    %118 = vector.load %arg18[%c0_56, %c0_57] : memref<8x32xf32, #tpu.memory_space<vmem>>, vector<8x32xf32>
    tpu.vector_store %arg18[%c0_56, %c0_57], %72 {strides = array<i32>} : memref<8x32xf32, #tpu.memory_space<vmem>>, vector<8x32xf32>,
    %c0_58 = arith.constant 0 : index
    %c0_59 = arith.constant 0 : index
    %119 = vector.load %arg20[%c0_58, %c0_59] : memref<8x32xf32, #tpu.memory_space<vmem>>, vector<8x32xf32>
    tpu.vector_store %arg20[%c0_58, %c0_59], %108 {strides = array<i32>} : memref<8x32xf32, #tpu.memory_space<vmem>>, vector<8x32xf32>,
    %c0_60 = arith.constant 0 : index
    %c0_61 = arith.constant 0 : index
    %120 = vector.load %arg19[%c0_60, %c0_61] : memref<8x128xf32, #tpu.memory_space<vmem>>, vector<8x16xf32>
    tpu.vector_store %arg19[%c0_60, %c0_61], %116 {strides = array<i32>} : memref<8x128xf32, #tpu.memory_space<vmem>>, vector<8x16xf32>,
    %cst_62 = arith.constant 0.000000e+00 : f32
    %121 = vector.broadcast %cst_62 : f32 to vector<8x112xf32>
    %c0_63 = arith.constant 0 : index
    %c16 = arith.constant 16 : index
    %122 = vector.load %arg19[%c0_63, %c16] : memref<8x128xf32, #tpu.memory_space<vmem>>, vector<8x112xf32>
    tpu.vector_store %arg19[%c0_63, %c16], %121 {strides = array<i32>} : memref<8x128xf32, #tpu.memory_space<vmem>>, vector<8x112xf32>,
    return
  }
  func.func @transform_0(%arg0: i32) -> (i32, i32) {
    %c0_i32 = arith.constant 0 : i32
    %c0_i32_0 = arith.constant 0 : i32
    return %arg0, %c0_i32 : i32, i32
  }
  func.func @transform_1(%arg0: i32) -> (i32, i32, i32) {
    %c0_i32 = arith.constant 0 : i32
    %c0_i32_0 = arith.constant 0 : i32
    %c0_i32_1 = arith.constant 0 : i32
    return %arg0, %c0_i32, %c0_i32_0 : i32, i32, i32
  }
  func.func @transform_2(%arg0: i32) -> (i32, i32, i32) {
    %c0_i32 = arith.constant 0 : i32
    %c0_i32_0 = arith.constant 0 : i32
    %c0_i32_1 = arith.constant 0 : i32
    return %arg0, %c0_i32, %c0_i32_0 : i32, i32, i32
  }
  func.func @transform_3(%arg0: i32) -> (i32, i32) {
    %c0_i32 = arith.constant 0 : i32
    %c0_i32_0 = arith.constant 0 : i32
    return %arg0, %c0_i32 : i32, i32
  }
  func.func @transform_4(%arg0: i32) -> (i32, i32) {
    %c0_i32 = arith.constant 0 : i32
    %c0_i32_0 = arith.constant 0 : i32
    return %arg0, %c0_i32 : i32, i32
  }
  func.func @transform_5(%arg0: i32) -> (i32, i32, i32) {
    %c0_i32 = arith.constant 0 : i32
    %c0_i32_0 = arith.constant 0 : i32
    %c0_i32_1 = arith.constant 0 : i32
    return %arg0, %c0_i32, %c0_i32_0 : i32, i32, i32
  }
  func.func @transform_6(%arg0: i32) -> (i32, i32) {
    %c0_i32 = arith.constant 0 : i32
    %c0_i32_0 = arith.constant 0 : i32
    return %arg0, %c0_i32 : i32, i32
  }
  func.func @transform_7(%arg0: i32) -> (i32, i32) {
    %c0_i32 = arith.constant 0 : i32
    %c0_i32_0 = arith.constant 0 : i32
    %c0_i32_1 = arith.constant 0 : i32
    return %c0_i32, %c0_i32_0 : i32, i32
  }
  func.func @transform_8(%arg0: i32) -> (i32, i32) {
    %c0_i32 = arith.constant 0 : i32
    %c0_i32_0 = arith.constant 0 : i32
    %c0_i32_1 = arith.constant 0 : i32
    return %c0_i32, %c0_i32_0 : i32, i32
  }
  func.func @transform_9(%arg0: i32) -> (i32, i32) {
    %c0_i32 = arith.constant 0 : i32
    %c0_i32_0 = arith.constant 0 : i32
    %c0_i32_1 = arith.constant 0 : i32
    return %c0_i32, %c0_i32_0 : i32, i32
  }
  func.func @transform_10(%arg0: i32) -> (i32, i32) {
    %c0_i32 = arith.constant 0 : i32
    %c0_i32_0 = arith.constant 0 : i32
    %c0_i32_1 = arith.constant 0 : i32
    return %c0_i32, %c0_i32_0 : i32, i32
  }
  func.func @transform_11(%arg0: i32) -> (i32, i32) {
    %c0_i32 = arith.constant 0 : i32
    %c0_i32_0 = arith.constant 0 : i32
    %c0_i32_1 = arith.constant 0 : i32
    return %c0_i32, %c0_i32_0 : i32, i32
  }
  func.func @transform_12(%arg0: i32) -> (i32, i32) {
    %c0_i32 = arith.constant 0 : i32
    %c0_i32_0 = arith.constant 0 : i32
    %c0_i32_1 = arith.constant 0 : i32
    return %c0_i32, %c0_i32_0 : i32, i32
  }
  func.func @transform_13(%arg0: i32) -> (i32, i32) {
    %c0_i32 = arith.constant 0 : i32
    %c0_i32_0 = arith.constant 0 : i32
    %c0_i32_1 = arith.constant 0 : i32
    return %c0_i32, %c0_i32_0 : i32, i32
  }
  func.func @transform_14(%arg0: i32) -> (i32, i32) {
    %c0_i32 = arith.constant 0 : i32
    %c0_i32_0 = arith.constant 0 : i32
    %c0_i32_1 = arith.constant 0 : i32
    return %c0_i32, %c0_i32_0 : i32, i32
  }
  func.func @transform_15(%arg0: i32) -> (i32, i32) {
    %c0_i32 = arith.constant 0 : i32
    %c0_i32_0 = arith.constant 0 : i32
    %c0_i32_1 = arith.constant 0 : i32
    return %c0_i32, %c0_i32_0 : i32, i32
  }
  func.func @transform_16(%arg0: i32) -> (i32, i32) {
    %c0_i32 = arith.constant 0 : i32
    %c0_i32_0 = arith.constant 0 : i32
    return %arg0, %c0_i32 : i32, i32
  }
  func.func @transform_17(%arg0: i32) -> (i32, i32) {
    %c0_i32 = arith.constant 0 : i32
    %c0_i32_0 = arith.constant 0 : i32
    return %arg0, %c0_i32 : i32, i32
  }
  func.func @transform_18(%arg0: i32) -> (i32, i32) {
    %c0_i32 = arith.constant 0 : i32
    %c0_i32_0 = arith.constant 0 : i32
    return %arg0, %c0_i32 : i32, i32
  }
  func.func @transform_19(%arg0: i32) -> (i32, i32) {
    %c0_i32 = arith.constant 0 : i32
    %c0_i32_0 = arith.constant 0 : i32
    return %arg0, %c0_i32 : i32, i32
  }
}

module attributes {stable_mosaic.version = 11 : i64} {
  func.func @attn_decoder_kernel(%arg0: i32, %arg1: memref<8x16xf32, #tpu.memory_space<vmem>>, %arg2: memref<8x36x128xbf16, #tpu.memory_space<vmem>>, %arg3: memref<8x16x128xbf16, #tpu.memory_space<vmem>>, %arg4: memref<8x32xf32, #tpu.memory_space<vmem>>, %arg5: memref<8x32xf32, #tpu.memory_space<vmem>>, %arg6: memref<8x8x32xbf16, #tpu.memory_space<vmem>>, %arg7: memref<8x8xf32, #tpu.memory_space<vmem>>, %arg8: memref<16x32xbf16, #tpu.memory_space<vmem>>, %arg9: memref<1x32xf32, #tpu.memory_space<vmem>>, %arg10: memref<32x256xbf16, #tpu.memory_space<vmem>>, %arg11: memref<32x128xbf16, #tpu.memory_space<vmem>>, %arg12: memref<128x128xbf16, #tpu.memory_space<vmem>>, %arg13: memref<1x128xf32, #tpu.memory_space<vmem>>, %arg14: memref<32x64xbf16, #tpu.memory_space<vmem>>, %arg15: memref<32x32xbf16, #tpu.memory_space<vmem>>, %arg16: memref<32x128xbf16, #tpu.memory_space<vmem>>, %arg17: memref<8x32xf32, #tpu.memory_space<vmem>>, %arg18: memref<8x32xf32, #tpu.memory_space<vmem>>, %arg19: memref<8x128xf32, #tpu.memory_space<vmem>>, %arg20: memref<8x32xf32, #tpu.memory_space<vmem>>) attributes {dimension_semantics = [#tpu.dimension_semantics<parallel>], iteration_bounds = array<i64: 1>, scalar_prefetch = 0 : i64, scratch_operands = 0 : i64, tpu.core_type = #tpu.core_type<tc>, window_params = [{transform_indices = @transform_0, window_bounds = array<i64: 8, 16>}, {transform_indices = @transform_1, window_bounds = array<i64: 8, 36, 128>}, {transform_indices = @transform_2, window_bounds = array<i64: 8, 16, 128>}, {transform_indices = @transform_3, window_bounds = array<i64: 8, 32>}, {transform_indices = @transform_4, window_bounds = array<i64: 8, 32>}, {transform_indices = @transform_5, window_bounds = array<i64: 8, 8, 32>}, {transform_indices = @transform_6, window_bounds = array<i64: 8, 8>}, {pipeline_mode = #tpu.pipeline_mode<synchronous>, transform_indices = @transform_7, window_bounds = array<i64: 16, 32>}, {pipeline_mode = #tpu.pipeline_mode<synchronous>, transform_indices = @transform_8, window_bounds = array<i64: 1, 32>}, {pipeline_mode = #tpu.pipeline_mode<synchronous>, transform_indices = @transform_9, window_bounds = array<i64: 32, 256>}, {pipeline_mode = #tpu.pipeline_mode<synchronous>, transform_indices = @transform_10, window_bounds = array<i64: 32, 128>}, {pipeline_mode = #tpu.pipeline_mode<synchronous>, transform_indices = @transform_11, window_bounds = array<i64: 128, 128>}, {pipeline_mode = #tpu.pipeline_mode<synchronous>, transform_indices = @transform_12, window_bounds = array<i64: 1, 128>}, {pipeline_mode = #tpu.pipeline_mode<synchronous>, transform_indices = @transform_13, window_bounds = array<i64: 32, 64>}, {pipeline_mode = #tpu.pipeline_mode<synchronous>, transform_indices = @transform_14, window_bounds = array<i64: 32, 32>}, {pipeline_mode = #tpu.pipeline_mode<synchronous>, transform_indices = @transform_15, window_bounds = array<i64: 32, 128>}, {transform_indices = @transform_16, window_bounds = array<i64: 8, 32>}, {transform_indices = @transform_17, window_bounds = array<i64: 8, 32>}, {transform_indices = @transform_18, window_bounds = array<i64: 8, 128>}, {transform_indices = @transform_19, window_bounds = array<i64: 8, 32>}]} {
    %c0 = arith.constant 0 : index
    %c0_0 = arith.constant 0 : index
    %c0_1 = arith.constant 0 : index
    %0 = vector.load %arg2[%c0, %c0_0, %c0_1] : memref<8x36x128xbf16, #tpu.memory_space<vmem>>, vector<8x36x128xbf16>
    %c0_2 = arith.constant 0 : index
    %c0_3 = arith.constant 0 : index
    %c0_4 = arith.constant 0 : index
    %1 = vector.load %arg3[%c0_2, %c0_3, %c0_4] : memref<8x16x128xbf16, #tpu.memory_space<vmem>>, vector<8x16x128xbf16>
    %c0_5 = arith.constant 0 : index
    %c0_6 = arith.constant 0 : index
    %c0_7 = arith.constant 0 : index
    %2 = vector.load %arg6[%c0_5, %c0_6, %c0_7] : memref<8x8x32xbf16, #tpu.memory_space<vmem>>, vector<8x8x32xbf16>
    %c0_8 = arith.constant 0 : index
    %c0_9 = arith.constant 0 : index
    %3 = vector.load %arg4[%c0_8, %c0_9] : memref<8x32xf32, #tpu.memory_space<vmem>>, vector<8x32xf32>
    %c0_10 = arith.constant 0 : index
    %c0_11 = arith.constant 0 : index
    %4 = vector.load %arg5[%c0_10, %c0_11] : memref<8x32xf32, #tpu.memory_space<vmem>>, vector<8x32xf32>
    %c0_12 = arith.constant 0 : index
    %c0_13 = arith.constant 0 : index
    %5 = vector.load %arg7[%c0_12, %c0_13] : memref<8x8xf32, #tpu.memory_space<vmem>>, vector<8x8xf32>
    %c0_14 = arith.constant 0 : index
    %c0_15 = arith.constant 0 : index
    %6 = vector.load %arg1[%c0_14, %c0_15] : memref<8x16xf32, #tpu.memory_space<vmem>>, vector<8x16xf32>
    %7 = arith.truncf %6 : vector<8x16xf32> to vector<8x16xbf16>
    %c0_16 = arith.constant 0 : index
    %c0_17 = arith.constant 0 : index
    %8 = vector.load %arg8[%c0_16, %c0_17] : memref<16x32xbf16, #tpu.memory_space<vmem>>, vector<16x32xbf16>
    %cst = arith.constant dense<0.000000e+00> : vector<8x32xf32>
    %9 = tpu.matmul %7, %8, %cst {dimension_numbers = #tpu.dot_dimension_numbers<[1], [0], [0], [1], [0, 0, 1, 1], [], []>} : vector<8x16xbf16>, vector<16x32xbf16>, vector<8x32xf32> -> vector<8x32xf32>
    %c0_18 = arith.constant 0 : index
    %c0_19 = arith.constant 0 : index
    %10 = vector.load %arg9[%c0_18, %c0_19] : memref<1x32xf32, #tpu.memory_space<vmem>>, vector<1x32xf32>
    %11 = vector.broadcast %10 : vector<1x32xf32> to vector<8x32xf32>
    %12 = arith.addf %9, %11 : vector<8x32xf32>
    %13 = math.tanh %12 : vector<8x32xf32>
    %14 = arith.truncf %3 : vector<8x32xf32> to vector<8x32xbf16>
    %c0_20 = arith.constant 0 : index
    %c0_21 = arith.constant 0 : index
    %15 = vector.load %arg10[%c0_20, %c0_21] : memref<32x256xbf16, #tpu.memory_space<vmem>>, vector<32x256xbf16>
    %cst_22 = arith.constant dense<0.000000e+00> : vector<8x256xf32>
    %16 = tpu.matmul %14, %15, %cst_22 {dimension_numbers = #tpu.dot_dimension_numbers<[1], [0], [0], [1], [0, 0, 1, 1], [], []>} : vector<8x32xbf16>, vector<32x256xbf16>, vector<8x256xf32> -> vector<8x256xf32>
    %17 = vector.extract_strided_slice %16 {offsets = [0, 0], sizes = [8, 128], strides = [1, 1]} : vector<8x256xf32> to vector<8x128xf32>
    %18 = vector.extract_strided_slice %16 {offsets = [0, 128], sizes = [8, 128], strides = [1, 1]} : vector<8x256xf32> to vector<8x128xf32>
    %19 = vector.shape_cast %18 : vector<8x128xf32> to vector<8x1x128xf32>
    %20 = arith.extf %0 : vector<8x36x128xbf16> to vector<8x36x128xf32>
    %21 = vector.broadcast %19 : vector<8x1x128xf32> to vector<8x36x128xf32>
    %22 = arith.mulf %21, %20 : vector<8x36x128xf32>
    %cst_23 = arith.constant dense<0.000000e+00> : vector<8x36xf32>
    %23 = vector.multi_reduction <add>, %22, %cst_23 [2] : vector<8x36x128xf32> to vector<8x36xf32>
    %cst_24 = arith.constant dense<0xFF800000> : vector<8xf32>
    %24 = vector.multi_reduction <maximumf>, %23, %cst_24 [1] : vector<8x36xf32> to vector<8xf32>
    %25 = vector.shape_cast %24 : vector<8xf32> to vector<8x1xf32>
    %26 = vector.broadcast %25 : vector<8x1xf32> to vector<8x36xf32>
    %27 = arith.subf %23, %26 : vector<8x36xf32>
    %28 = math.exp %27 : vector<8x36xf32>
    %cst_25 = arith.constant dense<0.000000e+00> : vector<8xf32>
    %29 = vector.multi_reduction <add>, %28, %cst_25 [1] : vector<8x36xf32> to vector<8xf32>
    %30 = vector.shape_cast %29 : vector<8xf32> to vector<8x1xf32>
    %31 = tpu.reciprocal %30 {approx = true} : vector<8x1xf32> -> vector<8x1xf32>
    %32 = vector.broadcast %31 : vector<8x1xf32> to vector<8x36xf32>
    %33 = arith.mulf %28, %32 : vector<8x36xf32>
    %34 = vector.shape_cast %33 : vector<8x36xf32> to vector<8x36x1xf32>
    %35 = arith.extf %0 : vector<8x36x128xbf16> to vector<8x36x128xf32>
    %36 = vector.broadcast %34 : vector<8x36x1xf32> to vector<8x36x128xf32>
    %37 = arith.mulf %36, %35 : vector<8x36x128xf32>
    %cst_26 = arith.constant dense<0.000000e+00> : vector<8x128xf32>
    %38 = vector.multi_reduction <add>, %37, %cst_26 [1] : vector<8x36x128xf32> to vector<8x128xf32>
    %39 = arith.truncf %13 : vector<8x32xf32> to vector<8x32xbf16>
    %c0_27 = arith.constant 0 : index
    %c0_28 = arith.constant 0 : index
    %40 = vector.load %arg11[%c0_27, %c0_28] : memref<32x128xbf16, #tpu.memory_space<vmem>>, vector<32x128xbf16>
    %cst_29 = arith.constant dense<0.000000e+00> : vector<8x128xf32>
    %41 = tpu.matmul %39, %40, %cst_29 {dimension_numbers = #tpu.dot_dimension_numbers<[1], [0], [0], [1], [0, 0, 1, 1], [], []>} : vector<8x32xbf16>, vector<32x128xbf16>, vector<8x128xf32> -> vector<8x128xf32>
    %42 = arith.addf %17, %41 : vector<8x128xf32>
    %43 = arith.truncf %38 : vector<8x128xf32> to vector<8x128xbf16>
    %c0_30 = arith.constant 0 : index
    %c0_31 = arith.constant 0 : index
    %44 = vector.load %arg12[%c0_30, %c0_31] : memref<128x128xbf16, #tpu.memory_space<vmem>>, vector<128x128xbf16>
    %cst_32 = arith.constant dense<0.000000e+00> : vector<8x128xf32>
    %45 = tpu.matmul %43, %44, %cst_32 {dimension_numbers = #tpu.dot_dimension_numbers<[1], [0], [0], [1], [0, 0, 1, 1], [], []>} : vector<8x128xbf16>, vector<128x128xbf16>, vector<8x128xf32> -> vector<8x128xf32>
    %46 = arith.addf %42, %45 : vector<8x128xf32>
    %c0_33 = arith.constant 0 : index
    %c0_34 = arith.constant 0 : index
    %47 = vector.load %arg13[%c0_33, %c0_34] : memref<1x128xf32, #tpu.memory_space<vmem>>, vector<1x128xf32>
    %48 = vector.broadcast %47 : vector<1x128xf32> to vector<8x128xf32>
    %49 = arith.addf %46, %48 : vector<8x128xf32>
    %50 = vector.extract_strided_slice %49 {offsets = [0, 0], sizes = [8, 32], strides = [1, 1]} : vector<8x128xf32> to vector<8x32xf32>
    %51 = arith.negf %50 : vector<8x32xf32>
    %52 = math.exp %51 : vector<8x32xf32>
    %cst_35 = arith.constant 1.000000e+00 : f32
    %53 = vector.broadcast %cst_35 : f32 to vector<8x32xf32>
    %54 = arith.addf %53, %52 : vector<8x32xf32>
    %55 = arith.divf %53, %54 : vector<8x32xf32>
    %56 = vector.extract_strided_slice %49 {offsets = [0, 32], sizes = [8, 32], strides = [1, 1]} : vector<8x128xf32> to vector<8x32xf32>
    %57 = arith.negf %56 : vector<8x32xf32>
    %58 = math.exp %57 : vector<8x32xf32>
    %cst_36 = arith.constant 1.000000e+00 : f32
    %59 = vector.broadcast %cst_36 : f32 to vector<8x32xf32>
    %60 = arith.addf %59, %58 : vector<8x32xf32>
    %61 = arith.divf %59, %60 : vector<8x32xf32>
    %62 = vector.extract_strided_slice %49 {offsets = [0, 64], sizes = [8, 32], strides = [1, 1]} : vector<8x128xf32> to vector<8x32xf32>
    %63 = math.tanh %62 : vector<8x32xf32>
    %64 = vector.extract_strided_slice %49 {offsets = [0, 96], sizes = [8, 32], strides = [1, 1]} : vector<8x128xf32> to vector<8x32xf32>
    %65 = arith.negf %64 : vector<8x32xf32>
    %66 = math.exp %65 : vector<8x32xf32>
    %cst_37 = arith.constant 1.000000e+00 : f32
    %67 = vector.broadcast %cst_37 : f32 to vector<8x32xf32>
    %68 = arith.addf %67, %66 : vector<8x32xf32>
    %69 = arith.divf %67, %68 : vector<8x32xf32>
    %70 = arith.mulf %61, %4 : vector<8x32xf32>
    %71 = arith.mulf %55, %63 : vector<8x32xf32>
    %72 = arith.addf %70, %71 : vector<8x32xf32>
    %73 = math.tanh %72 : vector<8x32xf32>
    %74 = arith.mulf %69, %73 : vector<8x32xf32>
    %75 = arith.truncf %74 : vector<8x32xf32> to vector<8x32xbf16>
    %c0_38 = arith.constant 0 : index
    %c0_39 = arith.constant 0 : index
    %76 = vector.load %arg14[%c0_38, %c0_39] : memref<32x64xbf16, #tpu.memory_space<vmem>>, vector<32x64xbf16>
    %cst_40 = arith.constant dense<0.000000e+00> : vector<8x64xf32>
    %77 = tpu.matmul %75, %76, %cst_40 {dimension_numbers = #tpu.dot_dimension_numbers<[1], [0], [0], [1], [0, 0, 1, 1], [], []>} : vector<8x32xbf16>, vector<32x64xbf16>, vector<8x64xf32> -> vector<8x64xf32>
    %78 = vector.extract_strided_slice %77 {offsets = [0, 0], sizes = [8, 32], strides = [1, 1]} : vector<8x64xf32> to vector<8x32xf32>
    %79 = vector.extract_strided_slice %77 {offsets = [0, 32], sizes = [8, 32], strides = [1, 1]} : vector<8x64xf32> to vector<8x32xf32>
    %80 = vector.shape_cast %78 : vector<8x32xf32> to vector<8x1x32xf32>
    %81 = arith.extf %2 : vector<8x8x32xbf16> to vector<8x8x32xf32>
    %82 = vector.broadcast %80 : vector<8x1x32xf32> to vector<8x8x32xf32>
    %83 = arith.mulf %82, %81 : vector<8x8x32xf32>
    %cst_41 = arith.constant dense<0.000000e+00> : vector<8x8xf32>
    %84 = vector.multi_reduction <add>, %83, %cst_41 [2] : vector<8x8x32xf32> to vector<8x8xf32>
    %cst_42 = arith.constant 5.000000e-01 : f32
    %85 = vector.broadcast %cst_42 : f32 to vector<8x8xf32>
    %86 = arith.cmpf ogt, %5, %85 : vector<8x8xf32>
    %cst_43 = arith.constant -1.000000e+30 : f32
    %87 = vector.broadcast %cst_43 : f32 to vector<8x8xf32>
    %88 = arith.select %86, %87, %84 : vector<8x8xi1>, vector<8x8xf32>
    %cst_44 = arith.constant dense<0xFF800000> : vector<8xf32>
    %89 = vector.multi_reduction <maximumf>, %88, %cst_44 [1] : vector<8x8xf32> to vector<8xf32>
    %90 = vector.shape_cast %89 : vector<8xf32> to vector<8x1xf32>
    %91 = vector.broadcast %90 : vector<8x1xf32> to vector<8x8xf32>
    %92 = arith.subf %88, %91 : vector<8x8xf32>
    %93 = math.exp %92 : vector<8x8xf32>
    %cst_45 = arith.constant dense<0.000000e+00> : vector<8xf32>
    %94 = vector.multi_reduction <add>, %93, %cst_45 [1] : vector<8x8xf32> to vector<8xf32>
    %95 = vector.shape_cast %94 : vector<8xf32> to vector<8x1xf32>
    %96 = tpu.reciprocal %95 {approx = true} : vector<8x1xf32> -> vector<8x1xf32>
    %97 = vector.broadcast %96 : vector<8x1xf32> to vector<8x8xf32>
    %98 = arith.mulf %93, %97 : vector<8x8xf32>
    %99 = vector.shape_cast %98 : vector<8x8xf32> to vector<8x8x1xf32>
    %100 = arith.extf %2 : vector<8x8x32xbf16> to vector<8x8x32xf32>
    %101 = vector.broadcast %99 : vector<8x8x1xf32> to vector<8x8x32xf32>
    %102 = arith.mulf %101, %100 : vector<8x8x32xf32>
    %cst_46 = arith.constant dense<0.000000e+00> : vector<8x32xf32>
    %103 = vector.multi_reduction <add>, %102, %cst_46 [1] : vector<8x8x32xf32> to vector<8x32xf32>
    %104 = arith.truncf %103 : vector<8x32xf32> to vector<8x32xbf16>
    %c0_47 = arith.constant 0 : index
    %c0_48 = arith.constant 0 : index
    %105 = vector.load %arg15[%c0_47, %c0_48] : memref<32x32xbf16, #tpu.memory_space<vmem>>, vector<32x32xbf16>
    %cst_49 = arith.constant dense<0.000000e+00> : vector<8x32xf32>
    %106 = tpu.matmul %104, %105, %cst_49 {dimension_numbers = #tpu.dot_dimension_numbers<[1], [0], [0], [1], [0, 0, 1, 1], [], []>} : vector<8x32xbf16>, vector<32x32xbf16>, vector<8x32xf32> -> vector<8x32xf32>
    %107 = arith.addf %106, %79 : vector<8x32xf32>
    %108 = math.tanh %107 : vector<8x32xf32>
    %109 = arith.truncf %108 : vector<8x32xf32> to vector<8x32xbf16>
    %c0_50 = arith.constant 0 : index
    %c0_51 = arith.constant 0 : index
    %110 = vector.load %arg16[%c0_50, %c0_51] : memref<32x128xbf16, #tpu.memory_space<vmem>>, vector<32x128xbf16>
    %cst_52 = arith.constant dense<0.000000e+00> : vector<8x128xf32>
    %111 = tpu.matmul %109, %110, %cst_52 {dimension_numbers = #tpu.dot_dimension_numbers<[1], [0], [0], [1], [0, 0, 1, 1], [], []>} : vector<8x32xbf16>, vector<32x128xbf16>, vector<8x128xf32> -> vector<8x128xf32>
    %112 = vector.shape_cast %111 : vector<8x128xf32> to vector<8x1x128xf32>
    %113 = arith.extf %1 : vector<8x16x128xbf16> to vector<8x16x128xf32>
    %114 = vector.broadcast %112 : vector<8x1x128xf32> to vector<8x16x128xf32>
    %115 = arith.mulf %114, %113 : vector<8x16x128xf32>
    %cst_53 = arith.constant dense<0.000000e+00> : vector<8x16xf32>
    %116 = vector.multi_reduction <add>, %115, %cst_53 [2] : vector<8x16x128xf32> to vector<8x16xf32>
    %c0_54 = arith.constant 0 : index
    %c0_55 = arith.constant 0 : index
    %117 = vector.load %arg17[%c0_54, %c0_55] : memref<8x32xf32, #tpu.memory_space<vmem>>, vector<8x32xf32>
    tpu.vector_store %arg17[%c0_54, %c0_55], %74 {strides = array<i32>} : memref<8x32xf32, #tpu.memory_space<vmem>>, vector<8x32xf32>,
    %c0_56 = arith.constant 0 : index
    %c0_57 = arith.constant 0 : index
    %118 = vector.load %arg18[%c0_56, %c0_57] : memref<8x32xf32, #tpu.memory_space<vmem>>, vector<8x32xf32>
    tpu.vector_store %arg18[%c0_56, %c0_57], %72 {strides = array<i32>} : memref<8x32xf32, #tpu.memory_space<vmem>>, vector<8x32xf32>,
    %c0_58 = arith.constant 0 : index
    %c0_59 = arith.constant 0 : index
    %119 = vector.load %arg20[%c0_58, %c0_59] : memref<8x32xf32, #tpu.memory_space<vmem>>, vector<8x32xf32>
    tpu.vector_store %arg20[%c0_58, %c0_59], %108 {strides = array<i32>} : memref<8x32xf32, #tpu.memory_space<vmem>>, vector<8x32xf32>,
    %c0_60 = arith.constant 0 : index
    %c0_61 = arith.constant 0 : index
    %120 = vector.load %arg19[%c0_60, %c0_61] : memref<8x128xf32, #tpu.memory_space<vmem>>, vector<8x16xf32>
    tpu.vector_store %arg19[%c0_60, %c0_61], %116 {strides = array<i32>} : memref<8x128xf32, #tpu.memory_space<vmem>>, vector<8x16xf32>,
    %cst_62 = arith.constant 0.000000e+00 : f32
    %121 = vector.broadcast %cst_62 : f32 to vector<8x112xf32>
    %c0_63 = arith.constant 0 : index
    %c16 = arith.constant 16 : index
    %122 = vector.load %arg19[%c0_63, %c16] : memref<8x128xf32, #tpu.memory_space<vmem>>, vector<8x112xf32>
    tpu.vector_store %arg19[%c0_63, %c16], %121 {strides = array<i32>} : memref<8x128xf32, #tpu.memory_space<vmem>>, vector<8x112xf32>,
    return
  }
  func.func @transform_0(%arg0: i32) -> (i32, i32) {
    %c0_i32 = arith.constant 0 : i32
    %c0_i32_0 = arith.constant 0 : i32
    return %arg0, %c0_i32 : i32, i32
  }
  func.func @transform_1(%arg0: i32) -> (i32, i32, i32) {
    %c0_i32 = arith.constant 0 : i32
    %c0_i32_0 = arith.constant 0 : i32
    %c0_i32_1 = arith.constant 0 : i32
    return %arg0, %c0_i32, %c0_i32_0 : i32, i32, i32
  }
  func.func @transform_2(%arg0: i32) -> (i32, i32, i32) {
    %c0_i32 = arith.constant 0 : i32
    %c0_i32_0 = arith.constant 0 : i32
    %c0_i32_1 = arith.constant 0 : i32
    return %arg0, %c0_i32, %c0_i32_0 : i32, i32, i32
  }
  func.func @transform_3(%arg0: i32) -> (i32, i32) {
    %c0_i32 = arith.constant 0 : i32
    %c0_i32_0 = arith.constant 0 : i32
    return %arg0, %c0_i32 : i32, i32
  }
  func.func @transform_4(%arg0: i32) -> (i32, i32) {
    %c0_i32 = arith.constant 0 : i32
    %c0_i32_0 = arith.constant 0 : i32
    return %arg0, %c0_i32 : i32, i32
  }
  func.func @transform_5(%arg0: i32) -> (i32, i32, i32) {
    %c0_i32 = arith.constant 0 : i32
    %c0_i32_0 = arith.constant 0 : i32
    %c0_i32_1 = arith.constant 0 : i32
    return %arg0, %c0_i32, %c0_i32_0 : i32, i32, i32
  }
  func.func @transform_6(%arg0: i32) -> (i32, i32) {
    %c0_i32 = arith.constant 0 : i32
    %c0_i32_0 = arith.constant 0 : i32
    return %arg0, %c0_i32 : i32, i32
  }
  func.func @transform_7(%arg0: i32) -> (i32, i32) {
    %c0_i32 = arith.constant 0 : i32
    %c0_i32_0 = arith.constant 0 : i32
    %c0_i32_1 = arith.constant 0 : i32
    return %c0_i32, %c0_i32_0 : i32, i32
  }
  func.func @transform_8(%arg0: i32) -> (i32, i32) {
    %c0_i32 = arith.constant 0 : i32
    %c0_i32_0 = arith.constant 0 : i32
    %c0_i32_1 = arith.constant 0 : i32
    return %c0_i32, %c0_i32_0 : i32, i32
  }
  func.func @transform_9(%arg0: i32) -> (i32, i32) {
    %c0_i32 = arith.constant 0 : i32
    %c0_i32_0 = arith.constant 0 : i32
    %c0_i32_1 = arith.constant 0 : i32
    return %c0_i32, %c0_i32_0 : i32, i32
  }
  func.func @transform_10(%arg0: i32) -> (i32, i32) {
    %c0_i32 = arith.constant 0 : i32
    %c0_i32_0 = arith.constant 0 : i32
    %c0_i32_1 = arith.constant 0 : i32
    return %c0_i32, %c0_i32_0 : i32, i32
  }
  func.func @transform_11(%arg0: i32) -> (i32, i32) {
    %c0_i32 = arith.constant 0 : i32
    %c0_i32_0 = arith.constant 0 : i32
    %c0_i32_1 = arith.constant 0 : i32
    return %c0_i32, %c0_i32_0 : i32, i32
  }
  func.func @transform_12(%arg0: i32) -> (i32, i32) {
    %c0_i32 = arith.constant 0 : i32
    %c0_i32_0 = arith.constant 0 : i32
    %c0_i32_1 = arith.constant 0 : i32
    return %c0_i32, %c0_i32_0 : i32, i32
  }
  func.func @transform_13(%arg0: i32) -> (i32, i32) {
    %c0_i32 = arith.constant 0 : i32
    %c0_i32_0 = arith.constant 0 : i32
    %c0_i32_1 = arith.constant 0 : i32
    return %c0_i32, %c0_i32_0 : i32, i32
  }
  func.func @transform_14(%arg0: i32) -> (i32, i32) {
    %c0_i32 = arith.constant 0 : i32
    %c0_i32_0 = arith.constant 0 : i32
    %c0_i32_1 = arith.constant 0 : i32
    return %c0_i32, %c0_i32_0 : i32, i32
  }
  func.func @transform_15(%arg0: i32) -> (i32, i32) {
    %c0_i32 = arith.constant 0 : i32
    %c0_i32_0 = arith.constant 0 : i32
    %c0_i32_1 = arith.constant 0 : i32
    return %c0_i32, %c0_i32_0 : i32, i32
  }
  func.func @transform_16(%arg0: i32) -> (i32, i32) {
    %c0_i32 = arith.constant 0 : i32
    %c0_i32_0 = arith.constant 0 : i32
    return %arg0, %c0_i32 : i32, i32
  }
  func.func @transform_17(%arg0: i32) -> (i32, i32) {
    %c0_i32 = arith.constant 0 : i32
    %c0_i32_0 = arith.constant 0 : i32
    return %arg0, %c0_i32 : i32, i32
  }
  func.func @transform_18(%arg0: i32) -> (i32, i32) {
    %c0_i32 = arith.constant 0 : i32
    %c0_i32_0 = arith.constant 0 : i32
    return %arg0, %c0_i32 : i32, i32
  }
  func.func @transform_19(%arg0: i32) -> (i32, i32) {
    %c0_i32 = arith.constant 0 : i32
    %c0_i32_0 = arith.constant 0 : i32
    return %arg0, %c0_i32 : i32, i32
  }
}

</mosaic_0001>

<bundles_post_ra>
// kernel: attn_decoder_step.1
= control target key start
LH: loop header
LB: loop body
LE: loop exit
PB: predicated region body
PF: predicated region fallthrough
CT: control target
= control target key end

     0   :  { %v4687_v0 = vmov 0.0   ;;  %vm3115_vm0 = vmmov 0   ;;  %v3116_v3 = vmov 0   ;;  %vm142_vm1 = vcmask 130048   ;;  %s4626_s7 = inlined_call_operand.vmem [shape: bf16[16,32], index: 7, kind: input, shape index: {}]   ;;  %s4627_s9 = inlined_call_operand.vmem [shape: bf16[32,256], index: 9, kind: input, shape index: {}]   ;;  %s4628_s0 = inlined_call_operand.vmem [shape: f32[8,16], index: 0, kind: input, shape index: {}]   ;;  %s4629_s3 = inlined_call_operand.vmem [shape: f32[8,32], index: 3, kind: input, shape index: {}]   ;;  %s4630_s10 = inlined_call_operand.vmem [shape: bf16[32,128], index: 10, kind: input, shape index: {}]   ;;  %s4631_s8 = inlined_call_operand.vmem [shape: f32[1,32], index: 8, kind: input, shape index: {}]   ;;  %s4632_s1 = inlined_call_operand.vmem [shape: bf16[8,36,128], index: 1, kind: input, shape index: {}]   ;;  %s4633_s11 = inlined_call_operand.vmem [shape: bf16[128,128], index: 11, kind: input, shape index: {}]   ;;  %s4634_s4 = inlined_call_operand.vmem [shape: f32[8,32], index: 4, kind: input, shape index: {}]   ;;  %s4635_s12 = inlined_call_operand.vmem [shape: f32[1,128], index: 12, kind: input, shape index: {}]   ;;  %s4636_s13 = inlined_call_operand.vmem [shape: bf16[32,64], index: 13, kind: input, shape index: {}]   ;;  %s4637_s5 = inlined_call_operand.vmem [shape: bf16[8,8,32], index: 5, kind: input, shape index: {}]   ;;  %s4638_s6 = inlined_call_operand.vmem [shape: f32[8,8], index: 6, kind: input, shape index: {}]   ;;  %s4639_s14 = inlined_call_operand.vmem [shape: bf16[32,32], index: 14, kind: input, shape index: {}]   ;;  %s4640_s15 = inlined_call_operand.vmem [shape: bf16[32,128], index: 15, kind: input, shape index: {}]   ;;  %s4641_s19 = inlined_call_operand.vmem [shape: f32[8,32], index: 19, kind: output, shape index: {3}]   ;;  %s4642_s2 = inlined_call_operand.vmem [shape: bf16[8,16,128], index: 2, kind: input, shape index: {}]   ;;  %s4643_s16 = inlined_call_operand.vmem [shape: f32[8,32], index: 16, kind: output, shape index: {0}]   ;;  %s4644_s18 = inlined_call_operand.vmem [shape: f32[8,128], index: 18, kind: output, shape index: {2}]   ;;  %s4645_s17 = inlined_call_operand.vmem [shape: f32[8,32], index: 17, kind: output, shape index: {1}]  }
   0x1   :  { %4772 = sst [smem:[#allocation62_spill]] %s4626_s7  ;;  %2926 = vmatprep.subr.bf16.mxu0 %v4687_v0  ;;  %2928 = vmatprep.mubr.msk.bf16.mxu0 %vm3115_vm0, %v4687_v0  ;;  %vm212_vm2 = vcmask 261120   ;;  %v3000_v11 = vld [vmem:[%s4630_s10] sm:$0xff]   ;;  %v3001_v12 = vld [vmem:[%s4630_s10 + $0x8] sm:$0xff]   ;;  %v3117_v13 = vmov 1966171168   ;;  %v262_v15 = vlaneseq }
   0x2   :  { %4773 = sst [smem:[#allocation63_spill]] %s4627_s9  ;;  %s4776_s20 = sld [smem:[#allocation62_spill]]  ;;  %248 = vmatprep.mubr.bf16.mxu1 %v3116_v3  ;;  %2992 = vset.pattern.permute.xlu0 %v3116_v3  ;;  %v260_v14 = vunpack.c.l.s4 %v3117_v13  ;;  %v2756_v16 = vld [vmem:[%s4631_s8] ss:$0 sm:$0xff]  ;;  %v3285_v34 = vld [vmem:[%s4632_s1 + $0x10] sm:$0x3] }
   0x3   :  { %4774 = sst [smem:[#allocation64_spill]] %s4628_s0  ;;  %s4777_s22 = sld [smem:[#allocation63_spill]]  ;;  %2991 = vset.pattern.permute.xlu1 %v3116_v3  ;;  %v3265_v19 = vshrl.u32 %v262_v15, 7  ;;  %v3276_v29 = vld [vmem:[%s4632_s1] sm:$0xff]   ;;  %4782 = vst [vmem:[#allocation4_spill] sm:$0xff] %v3285_v34  ;;  %v4676_v38 = vunpack.c.l.bf16 %v3285_v34  ;;  %vm435_vm3 = vcmask 1043456  }
   0x4   :  { %4775 = sst [smem:[#allocation65_spill]] %s4629_s3  ;;  %s4778_s3 = sld [smem:[#allocation64_spill]]  ;;  %v261_v18 = vunpack.c.0.s8 %v260_v14  ;;  %4781 = vst [vmem:[#allocation3_spill] sm:$0xff] %v3276_v29  ;;  %v4686_v35 = vunpack.c.l.bf16 %v3276_v29  ;;  %v4685_v42 = vunpack.c.h.bf16 %v3276_v29  ;;  %v3299_v43 = vld [vmem:[%s4632_s1 + $0x14] ss:$12 sps:$4 sm:$0xff]   ;;  %v3305_v44 = vld [vmem:[%s4632_s1 + $0x8] sm:$0xff]  }
   0x5   :  { %v3279_v30 = vsub.s32 0, %v3265_v19  ;;  %4783 = vst [vmem:[#allocation5_spill] sm:$0xff] %v3299_v43  ;;  %4784 = vst [vmem:[#allocation6_spill] sm:$0xff] %v3305_v44  ;;  %v4684_v47 = vunpack.c.l.bf16 %v3299_v43  ;;  %v4680_v50 = vunpack.c.l.bf16 %v3305_v44  ;;  %v3321_v51 = vld [vmem:[%s4632_s1 + $0x18] sm:$0xff]   ;;  %v4675_v57 = vunpack.c.h.bf16 %v3305_v44  ;;  %v3332_v58 = vld [vmem:[%s4632_s1 + $0x28] sm:$0xff]   ;;  %s3118_s7 = smov 32  }
   0x6   :  { %v3268_v24 = vsub.s32 %v261_v18, %v3265_v19  ;;  %4785 = vst [vmem:[#allocation7_spill] sm:$0xff] %v3321_v51  ;;  %v4683_v53 = vunpack.c.l.bf16 %v3321_v51  ;;  %4786 = vst [vmem:[#allocation8_spill] sm:$0xff] %v3332_v58  ;;  %v4674_v60 = vunpack.c.h.bf16 %v3321_v51  ;;  %vm567_vm4 = vcmask 130112   ;;  %s3119_s0 = smov 64  }
   0x7   :  { %vm574_vm5 = vcmask 195712   ;;  %vm581_vm6 = vcmask 261312   ;;  %vm588_vm7 = vcmask 326912   ;;  %vm758_vm8 = vcmask 1041409  }
   0x8   :  { %v2993_v1 = vld [vmem:[%s4776_s20] sm:$0xff]   ;;  %s4779_s20 = sld [smem:[#allocation65_spill]]  ;;  %4780 = vst [vmem:[#allocation2_spill] sm:$0xff] %v3268_v24  ;;  %vm760_vm9 = vcmask 1042434   ;;  %vm762_vm10 = vcmask 1043459   ;;  %vm764_vm11 = vcmask 1044484  }
   0x9   :  { %v2994_v2 = vld [vmem:[%s4777_s22 + $0x4] ss:$8 sps:$4 sm:$0xff]   ;;  %2927 = vmatpush3.bf16.msra.mxu0 %v2993_v1  ;;  %v2996_v4 = vld [vmem:[%s4777_s22] ss:$8 sps:$4 sm:$0xff]   ;;  %v2997_v7 = vld [vmem:[%s4777_s22 + $0x14] ss:$8 sps:$4 sm:$0xff]   ;;  %v4682_v1 = vunpack.c.l.bf16 %v3332_v58 }
   0xa   :  { %v125_v5 = vld [vmem:[%s4778_s3] sm:$0xff]  ;;  %216 = vmatprep.subr.bf16.mxu1 %v2994_v2  ;;  %2932 = vmatprep.subr.bf16.mxu0 %v4687_v0  ;;  %v2999_v8 = vld [vmem:[%s4777_s22 + $0x10] ss:$8 sps:$4 sm:$0xff]   ;;  %vm766_vm12 = vcmask 1045509   ;;  %vm768_vm13 = vcmask 1046534   ;;  %vm770_vm14 = vcmask 1047559  }
   0xb   :  { %v126_v6 = vpack.c.bf16 %v125_v5, %v125_v5  ;;  %217 = vmatpush1.bf16.msra.mxu1 %v2996_v4  ;;  %v3345_v2 = vld [vmem:[%s4632_s1 + $0x30] sm:$0xff]   ;;  %v4681_v4 = vunpack.c.h.bf16 %v3332_v58  ;;  %vm773_vm15 = vcmask 293888  }
   0xc   :  { %218 = vmatprep.subr.bf16.mxu1 %v2997_v7  ;;  %4787 = vst [vmem:[#allocation9_spill] sm:$0xff] %v3345_v2  ;;  %v4679_v7 = vunpack.c.l.bf16 %v3345_v2  ;;  %v4678_v18 = vunpack.c.h.bf16 %v3345_v2 }
   0xd   :  { %2929 = vmatmul.mubr.msk.bf16.vlgmr.msra.gmra.mrb[0].mxu0 %vm142_vm1, %v126_v6 }
   0xe   :  { %v122_v9 = vld [vmem:[%s4779_s20] sm:$0xff]  ;;  %2936 = vmatprep.mubr.msk.bf16.mxu0 %vm3115_vm0, %v4687_v0  ;;  %2933 = vmatpush3.bf16.msra.mxu0 %v3000_v11  ;;  %v4673_v11 = vunpack.c.h.bf16 %v3299_v43 }
   0xf   :  { %v187_v10 = vpack.c.bf16 %v122_v9, %v122_v9  ;;  %219 = vmatpush1.bf16.msra.mxu1 %v2999_v8  ;;  %2934 = vmatprep.subr.bf16.mxu0 %v4687_v0  ;;  %v3359_v8 = vld [vmem:[%s4632_s1 + $0x50] sm:$0xff]   ;;  %v3364_v9 = vld [vmem:[%s4632_s1 + $0x24] sm:$0x3] }
  0x10   :  { %2940 = vmatprep.subr.bf16.mxu1 %v4687_v0  ;;  %4788 = vst [vmem:[#allocation10_spill] sm:$0xff] %v3359_v8  ;;  %4789 = vst [vmem:[#allocation11_spill] sm:$0xff] %v3364_v9  ;;  %v4671_v14 = vunpack.c.h.bf16 %v3359_v8 }
  0x12   :  { %2763 = vmatmul.mubr.msk.bf16.vlgmr.msra.gmra.mrb[0].mxu1 %vm212_vm2, %v187_v10  ;;  %2935 = vmatpush3.bf16.msra.mxu0 %v3001_v12 }
  0x13   :  { %2956 = vmatprep.mubr.msk.bf16.mxu1 %vm3115_vm0, %v4687_v0  ;;  %2960 = vmatprep.subr.bf16.mxu0 %v4687_v0 }
  0xe0   :  { %v180_v17 = vpop.f32.mrb[0].mxu0 }
  0xe1   :  { %v181_v20 = vadd.f32 %v2756_v16, %v180_v17  ;;  %v2930_v21 = vpop.f32.mrb[1].mxu0  ;;  %v4672_v16 = vunpack.c.l.bf16 %v3364_v9 }
  0xe2   :  { %v183_v22 = vpop.f32.mrb[2].mxu0 }
  0xe3   :  { %3016 = vtanh.f32 %v181_v20  ;;  %v2931_v23 = vpop.f32.mrb[3].mxu0 }
  0xe4   :  { %v3387_v23 = vld [vmem:[%s4632_s1 + $0x40] sm:$0xff]  }
  0xe5   :  { %v3270_v25 = vpop.f32.mrb[0].mxu1  ;;  %4790 = vst [vmem:[#allocation12_spill] sm:$0xff] %v3387_v23 }
  0xe6   :  { %v252_v26 = vpop.f32.mrb[1].mxu1 }
  0xe7   :  { %v265_v27 = vrot.slane %v252_v26, %v3268_v24  ;;  %v254_v28 = vpop.f32.mrb[2].mxu1  ;;  %v258_v54 = vcombine.high %v252_v26, %v252_v26 }
  0xe8   :  { %v255_v31 = vpop.f32.mrb[3].mxu1 }
  0xe9   :  { %v273_v32 = vcombine.high %v265_v27, %v265_v27  ;;  %v281_v33 = vrot.slane %v265_v27, %v3268_v24  ;;  %v272_v61 = vrot.slane %v258_v54, %v3268_v24  ;;  %v4670_v27 = vunpack.c.l.bf16 %v3359_v8 }
  0xea   :  { %v4668_v31 = vunpack.c.l.bf16 %v3387_v23 }
  0xeb   :  { %v350_v37 = vrot.slane %v281_v33, %v3279_v30  ;;  %v3291_v40 = vrot.slane %v273_v32, %v3268_v24  ;;  %v303_v55 = vcombine.high %v281_v33, %v281_v33  ;;  %v3351_v5 = vrot.slane %v272_v61, %v3268_v24  ;;  %v3399_v32 = vld [vmem:[%s4632_s1 + $0x58] sm:$0xff]  }
  0xec   :  { %4791 = vst [vmem:[#allocation13_spill] sm:$0xff] %v3399_v32 }
  0xed   :  { %v3017_v36 = vpop.eup %3016  ;;  %v387_v41 = vmul.f32 %v4686_v35, %v350_v37  ;;  %v391_v45 = vmul.f32 %v350_v37, %v4676_v38  ;;  %v354_v46 = vrot.slane %v3291_v40, %v3279_v30  ;;  %v388_v49 = vmul.f32 %v4685_v42, %v350_v37 }
  0xee   :  { %v1711_v39 = vpack.c.bf16 %v3017_v36, %v3017_v36  ;;  %v389_v56 = vmul.f32 %v4680_v50, %v350_v37  ;;  %v358_v62 = vrot.slane %v303_v55, %v3279_v30  ;;  %v390_v63 = vmul.f32 %v4675_v57, %v350_v37 }
  0xef   :  { %427 = vadd.xlane.f32.xlu0 %v387_v41  ;;  %v436_v48 = vsel %vm435_vm3, %v391_v45, 0.0  ;;  %v392_v52 = vmul.f32 %v354_v46, %v4684_v47  ;;  %v393_v59 = vmul.f32 %v4683_v53, %v354_v46  ;;  %v394_v3 = vmul.f32 %v4674_v60, %v354_v46  ;;  %v3412_v45 = vld [vmem:[%s4632_s1 + $0x48] ss:$28 sps:$4 sm:$0xff]  }
  0xf0   :  { %2937 = vmatmul.mubr.msk.bf16.vlgmr.msra.gmra.mrb[4].mxu0 %vm212_vm2, %v1711_v39  ;;  %437 = vadd.xlane.f32.xlu1 %v436_v48  ;;  %v397_v6 = vmul.f32 %v4682_v1, %v358_v62  ;;  %v398_v10 = vmul.f32 %v4681_v4, %v358_v62  ;;  %v366_v12 = vrot.slane %v3351_v5, %v3279_v30  ;;  %v4669_v37 = vunpack.c.l.bf16 %v3399_v32 }
  0xf1   :  { %2964 = vmatprep.mubr.msk.bf16.mxu0 %vm3115_vm0, %v4687_v0  ;;  %v399_v13 = vmul.f32 %v4679_v7, %v358_v62  ;;  %v395_v17 = vmul.f32 %v354_v46, %v4673_v11  ;;  %v305_v20 = vcombine.high %v3291_v40, %v3291_v40  ;;  %v396_v22 = vmul.f32 %v354_v46, %v4672_v16  ;;  %v3417_v46 = vld [vmem:[%s4632_s1 + $0x38] sm:$0x3] }
  0xf2   :  { %v408_v21 = vmul.f32 %v4671_v14, %v366_v12  ;;  %v400_v26 = vmul.f32 %v4678_v18, %v358_v62  ;;  %v407_v36 = vmul.f32 %v4670_v27, %v366_v12  ;;  %v274_v39 = vcombine.high %v272_v61, %v272_v61  ;;  %4792 = vst [vmem:[#allocation14_spill] sm:$0xff] %v3412_v45 }
  0xf3   :  { %429 = vadd.xlane.f32.xlu0 %v388_v49  ;;  %v3393_v28 = vrot.slane %v305_v20, %v3279_v30  ;;  %v447_v33 = vsel %vm435_vm3, %v396_v22, 0.0  ;;  %v4666_v41 = vunpack.c.h.bf16 %v3387_v23  ;;  %4793 = vst [vmem:[#allocation15_spill] sm:$0xff] %v3417_v46  ;;  %v409_v48 = vmul.f32 %v4669_v37, %v366_v12 }
  0xf4   :  { %439 = vadd.xlane.f32.xlu1 %v392_v52  ;;  %v4661_v49 = vunpack.c.h.bf16 %v3399_v32  ;;  %v302_v52 = vrot.slane %v274_v39, %v3268_v24  ;;  %v4663_v55 = vunpack.c.l.bf16 %v3412_v45  ;;  %v557_v18 = vand.u32 127, %v262_v15 }
  0xf5   :  { %v403_v40 = vmul.f32 %v4668_v31, %v3393_v28  ;;  %v404_v54 = vmul.f32 %v4666_v41, %v3393_v28 }
  0xf6   :  { %v410_v61 = vmul.f32 %v4661_v49, %v366_v12  ;;  %v562_v50 = vadd.s32 4294967288, %v557_v18  ;;  %v569_v1 = vadd.s32 4294967280, %v557_v18  ;;  %v576_v53 = vadd.s32 4294967272, %v557_v18 }
  0xf7   :  { %431 = vadd.xlane.f32.xlu0 %v389_v56  ;;  %v4677_v56 = vunpack.c.l.bf16 %v3417_v46  ;;  %v583_v47 = vadd.s32 4294967264, %v557_v18  ;;  %v3620_v24 = vsub.s32 %v557_v18, %v3265_v19 }
  0xf8   :  { %441 = vadd.xlane.f32.xlu1 %v393_v59  ;;  %v3431_v59 = vld [vmem:[%s4632_s1 + $0x60] sm:$0x3]  ;;  %v3615_v35 = vsub.s32 %v562_v50, %v3265_v19  ;;  %v3623_v15 = vsub.s32 %v569_v1, %v3265_v19 }
  0xf9   :  { %4794 = vst [vmem:[#allocation16_spill] sm:$0xff] %v3431_v59  ;;  %4806 = vst [vmem:[#allocation28_spill] sm:$0xff] %v3620_v24 }
  0xfa   :  { %4805 = vst [vmem:[#allocation27_spill] sm:$0xff] %v3615_v35 }
  0xfb   :  { %433 = vadd.xlane.f32.xlu0 %v390_v63  ;;  %v4652_v63 = vunpack.c.l.bf16 %v3431_v59 }
  0xfc   :  { %443 = vadd.xlane.f32.xlu1 %v394_v3  ;;  %v370_v3 = vrot.slane %v302_v52, %v3279_v30 }
  0xff   :  { %450 = vadd.xlane.f32.xlu0 %v397_v6  ;;  %v405_v6 = vmul.f32 %v3393_v28, %v4663_v55 }
 0x100   :  { %452 = vadd.xlane.f32.xlu1 %v398_v10  ;;  %v401_v10 = vmul.f32 %v358_v62, %v4677_v56  ;;  %v411_v62 = vmul.f32 %v366_v12, %v4652_v63 }
 0x102   :  { %v458_v22 = vsel %vm435_vm3, %v401_v10, 0.0 }
 0x103   :  { %454 = vadd.xlane.f32.xlu0 %v399_v13  ;;  %v4649_v13 = vunpack.c.h.bf16 %v3412_v45 }
 0x104   :  { %445 = vadd.xlane.f32.xlu1 %v395_v17  ;;  %v3446_v17 = vld [vmem:[%s4632_s1 + $0x68] sm:$0xff]  }
 0x105   :  { %4795 = vst [vmem:[#allocation17_spill] sm:$0xff] %v3446_v17  ;;  %v4647_v20 = vunpack.c.h.bf16 %v3446_v17 }
 0x107   :  { %474 = vadd.xlane.f32.xlu0 %v408_v21  ;;  %v304_v21 = vcombine.high %v3351_v5, %v3351_v5  ;;  %v414_v12 = vmul.f32 %v4647_v20, %v370_v3 }
 0x108   :  { %456 = vadd.xlane.f32.xlu1 %v400_v26  ;;  %v412_v26 = vmul.f32 %v370_v3, %v4649_v13 }
 0x109   :  { %v374_v39 = vrot.slane %v304_v21, %v3279_v30 }
 0x10b   :  { %448 = vadd.xlane.f32.xlu0 %v447_v33  ;;  %v3459_v33 = vld [vmem:[%s4632_s1 + $0x3c] ss:$52 sps:$4 sm:$0xff]  }
 0x10c   :  { %472 = vadd.xlane.f32.xlu1 %v407_v36  ;;  %4796 = vst [vmem:[#allocation18_spill] sm:$0xff] %v3459_v33  ;;  %v3464_v36 = vld [vmem:[%s4632_s1 + $0x78] sm:$0xff]   ;;  %v4667_v5 = vunpack.c.l.bf16 %v3459_v33  ;;  %v4651_v21 = vunpack.c.h.bf16 %v3459_v33 }
 0x10d   :  { %4797 = vst [vmem:[#allocation19_spill] sm:$0xff] %v3464_v36 }
 0x10f   :  { %463 = vadd.xlane.f32.xlu0 %v403_v40  ;;  %v480_v40 = vsel %vm435_vm3, %v411_v62, 0.0 }
 0x110   :  { %476 = vadd.xlane.f32.xlu1 %v409_v48  ;;  %v4648_v48 = vunpack.c.h.bf16 %v3464_v36 }
 0x112   :  { %v418_v10 = vmul.f32 %v4648_v48, %v374_v39 }
 0x113   :  { %465 = vadd.xlane.f32.xlu0 %v404_v54  ;;  %v3475_v54 = vld [vmem:[%s4632_s1 + $0x4c] sm:$0x3] }
 0x114   :  { %478 = vadd.xlane.f32.xlu1 %v410_v61  ;;  %4798 = vst [vmem:[#allocation20_spill] sm:$0xff] %v3475_v54  ;;  %v402_v61 = vmul.f32 %v3393_v28, %v4667_v5 }
 0x117   :  { %467 = vadd.xlane.f32.xlu0 %v405_v6  ;;  %v4650_v6 = vunpack.c.l.bf16 %v3446_v17 }
 0x118   :  { %459 = vadd.xlane.f32.xlu1 %v458_v22  ;;  %v4656_v22 = vunpack.c.l.bf16 %v3475_v54 }
 0x119   :  { %v413_v62 = vmul.f32 %v4650_v6, %v370_v3  ;;  %v306_v6 = vcombine.high %v302_v52, %v302_v52 }
 0x11b   :  { %483 = vadd.xlane.f32.xlu0 %v412_v26  ;;  %v3488_v26 = vld [vmem:[%s4632_s1 + $0x74] sm:$0x3] }
 0x11c   :  { %481 = vadd.xlane.f32.xlu1 %v480_v40  ;;  %4799 = vst [vmem:[#allocation21_spill] sm:$0xff] %v3488_v26  ;;  %v4654_v40 = vunpack.c.l.bf16 %v3464_v36  ;;  %v4653_v20 = vunpack.c.l.bf16 %v3488_v26 }
 0x11e   :  { %v417_v48 = vmul.f32 %v4654_v40, %v374_v39  ;;  %v416_v63 = vmul.f32 %v370_v3, %v4653_v20  ;;  %v3530_v40 = vld [vmem:[%s4632_s1 + $0x90] sm:$0xff]  }
 0x11f   :  { %487 = vadd.xlane.f32.xlu0 %v414_v12  ;;  %v415_v12 = vmul.f32 %v370_v3, %v4651_v21  ;;  %4803 = vst [vmem:[#allocation25_spill] sm:$0xff] %v3530_v40 }
 0x120   :  { %461 = vadd.xlane.f32.xlu1 %v402_v61  ;;  %v3498_v61 = vld [vmem:[%s4632_s1 + $0x80] sm:$0xff]   ;;  %v491_v20 = vsel %vm435_vm3, %v416_v63, 0.0  ;;  %v3542_v63 = vld [vmem:[%s4632_s1 + $0x9c] sm:$0x3] }
 0x121   :  { %4800 = vst [vmem:[#allocation22_spill] sm:$0xff] %v3498_v61  ;;  %v4655_v13 = vunpack.c.l.bf16 %v3498_v61  ;;  %4804 = vst [vmem:[#allocation26_spill] sm:$0xff] %v3542_v63 }
 0x123   :  { %496 = vadd.xlane.f32.xlu0 %v418_v10  ;;  %v406_v10 = vmul.f32 %v3393_v28, %v4656_v22  ;;  %v3518_v28 = vld [vmem:[%s4632_s1 + $0x88] sm:$0x3]  ;;  %v419_v52 = vmul.f32 %v4655_v13, %v374_v39  ;;  %v4660_v22 = vunpack.c.h.bf16 %v3530_v40 }
 0x124   :  { %485 = vadd.xlane.f32.xlu1 %v413_v62  ;;  %v3513_v62 = vld [vmem:[%s4632_s1 + $0x8c] ss:$12 sps:$4 sm:$0xff]   ;;  %4802 = vst [vmem:[#allocation24_spill] sm:$0xff] %v3518_v28 }
 0x125   :  { %v469_v21 = vsel %vm435_vm3, %v406_v10, 0.0  ;;  %4801 = vst [vmem:[#allocation23_spill] sm:$0xff] %v3513_v62  ;;  %v4658_v3 = vunpack.c.l.bf16 %v3513_v62  ;;  %v4659_v10 = vunpack.c.l.bf16 %v3518_v28  ;;  %v3629_v28 = vsub.s32 %v583_v47, %v3265_v19 }
 0x127   :  { %489 = vadd.xlane.f32.xlu0 %v415_v12  ;;  %v378_v12 = vrot.slane %v306_v6, %v3279_v30  ;;  %v421_v6 = vmul.f32 %v374_v39, %v4659_v10 }
 0x128   :  { %494 = vadd.xlane.f32.xlu1 %v417_v48  ;;  %v4657_v48 = vunpack.c.h.bf16 %v3498_v61 }
 0x129   :  { %v422_v13 = vmul.f32 %v378_v12, %v4658_v3  ;;  %v4664_v3 = vunpack.c.h.bf16 %v3513_v62 }
 0x12b   :  { %470 = vadd.xlane.f32.xlu0 %v469_v21  ;;  %v420_v21 = vmul.f32 %v4657_v48, %v374_v39  ;;  %v424_v48 = vmul.f32 %v4660_v22, %v378_v12  ;;  %v4665_v39 = vunpack.c.l.bf16 %v3542_v63  ;;  %v425_v10 = vmul.f32 %v378_v12, %v4664_v3 }
 0x12c   :  { %498 = vadd.xlane.f32.xlu1 %v419_v52  ;;  %v502_v52 = vsel %vm435_vm3, %v421_v6, 0.0  ;;  %v3626_v63 = vsub.s32 %v576_v53, %v3265_v19 }
 0x12f   :  { %492 = vadd.xlane.f32.xlu0 %v491_v20  ;;  %v4662_v20 = vunpack.c.l.bf16 %v3530_v40 }
 0x130   :  { %500 = vadd.xlane.f32.xlu1 %v420_v21 }
 0x131   :  { %v423_v21 = vmul.f32 %v4662_v20, %v378_v12 }
 0x133   :  { %505 = vadd.xlane.f32.xlu0 %v422_v13  ;;  %v426_v13 = vmul.f32 %v378_v12, %v4665_v39 }
 0x134   :  { %503 = vadd.xlane.f32.xlu1 %v502_v52 }
 0x135   :  { %v513_v6 = vsel %vm435_vm3, %v426_v13, 0.0 }
 0x137   :  { %509 = vadd.xlane.f32.xlu0 %v424_v48 }
 0x138   :  { %507 = vadd.xlane.f32.xlu1 %v423_v21 }
 0x13b   :  { %511 = vadd.xlane.f32.xlu0 %v425_v10 }
 0x13c   :  { %514 = vadd.xlane.f32.xlu1 %v513_v6 }
 0x17c   :  { %v3557_v22 = vpop.xlane.xlu0 %427 }
 0x17d   :  { %v3559_v49 = vpop.xlane.xlu1 %437  ;;  %v561_v53 = vrot.slane %v3557_v22, %v3620_v24 }
 0x180   :  { %v3561_v52 = vpop.xlane.xlu0 %429 }
 0x181   :  { %v3563_v48 = vpop.xlane.xlu1 %439  ;;  %v566_v50 = vrot.slane %v3561_v52, %v3615_v35 }
 0x182   :  { %v593_v47 = vrot.slane %v3563_v48, %v3620_v24 }
 0x183   :  { %v568_v32 = vsel %vm567_vm4, %v566_v50, %v561_v53 }
 0x184   :  { %v3565_v20 = vpop.xlane.xlu0 %431 }
 0x185   :  { %v3567_v55 = vpop.xlane.xlu1 %441  ;;  %v573_v1 = vrot.slane %v3565_v20, %v3623_v15 }
 0x186   :  { %v597_v18 = vrot.slane %v3567_v55, %v3615_v35 }
 0x187   :  { %v575_v34 = vsel %vm574_vm5, %v573_v1, %v568_v32  ;;  %v587_v32 = vrot.slane %v3559_v49, %v3629_v28 }
 0x188   :  { %v3569_v3 = vpop.xlane.xlu0 %433  ;;  %v598_v8 = vsel %vm567_vm4, %v597_v18, %v593_v47 }
 0x189   :  { %v3571_v12 = vpop.xlane.xlu1 %443  ;;  %v580_v62 = vrot.slane %v3569_v3, %v3626_v63 }
 0x18a   :  { %v602_v61 = vrot.slane %v3571_v12, %v3623_v15 }
 0x18b   :  { %v582_v58 = vsel %vm581_vm6, %v580_v62, %v575_v34 }
 0x18c   :  { %v3573_v10 = vpop.xlane.xlu0 %450  ;;  %v603_v46 = vsel %vm574_vm5, %v602_v61, %v598_v8 }
 0x18d   :  { %v3575_v21 = vpop.xlane.xlu1 %452  ;;  %v617_v36 = vrot.slane %v3573_v10, %v3620_v24 }
 0x18e   :  { %v621_v17 = vrot.slane %v3575_v21, %v3615_v35 }
 0x190   :  { %v3577_v13 = vpop.xlane.xlu0 %454  ;;  %v622_v50 = vsel %vm567_vm4, %v621_v17, %v617_v36 }
 0x191   :  { %v3579_v6 = vpop.xlane.xlu1 %445  ;;  %v626_v59 = vrot.slane %v3577_v13, %v3623_v15 }
 0x192   :  { %v607_v54 = vrot.slane %v3579_v6, %v3626_v63 }
 0x193   :  { %v627_v8 = vsel %vm574_vm5, %v626_v59, %v622_v50 }
 0x194   :  { %v3581_v39 = vpop.xlane.xlu0 %474  ;;  %v608_v18 = vsel %vm581_vm6, %v607_v54, %v603_v46 }
 0x195   :  { %v3583_v41 = vpop.xlane.xlu1 %456 }
 0x196   :  { %v631_v2 = vrot.slane %v3583_v41, %v3626_v63 }
 0x198   :  { %v3585_v5 = vpop.xlane.xlu0 %448  ;;  %v632_v59 = vsel %vm581_vm6, %v631_v2, %v627_v8 }
 0x199   :  { %v3587_v31 = vpop.xlane.xlu1 %472  ;;  %v612_v45 = vrot.slane %v3585_v5, %v3629_v28 }
 0x19a   :  { %v665_v34 = vrot.slane %v3587_v31, %v3620_v24 }
 0x19b   :  { %v613_v61 = vsel %vm588_vm7, %v612_v45, %v608_v18  ;;  %v589_v45 = vsel %vm588_vm7, %v587_v32, %v582_v58 }
 0x19c   :  { %v3589_v37 = vpop.xlane.xlu0 %463  ;;  %v759_v58 = vsel %vm758_vm8, %v613_v61, %v589_v45 }
 0x19d   :  { %v3591_v27 = vpop.xlane.xlu1 %476  ;;  %v645_v44 = vrot.slane %v3589_v37, %v3615_v35 }
 0x19e   :  { %v674_v32 = vrot.slane %v3591_v27, %v3623_v15 }
 0x1a0   :  { %v3593_v14 = vpop.xlane.xlu0 %465 }
 0x1a1   :  { %v3595_v16 = vpop.xlane.xlu1 %478  ;;  %v650_v46 = vrot.slane %v3593_v14, %v3623_v15 }
 0x1a4   :  { %v3597_v11 = vpop.xlane.xlu0 %467 }
 0x1a5   :  { %v3599_v60 = vpop.xlane.xlu1 %459  ;;  %v655_v2 = vrot.slane %v3597_v11, %v3626_v63 }
 0x1a6   :  { %v636_v17 = vrot.slane %v3599_v60, %v3629_v28 }
 0x1a8   :  { %v3601_v57 = vpop.xlane.xlu0 %483 }
 0x1a9   :  { %v3603_v38 = vpop.xlane.xlu1 %481  ;;  %v689_v36 = vrot.slane %v3601_v57, %v3620_v24 }
 0x1ac   :  { %v3605_v56 = vpop.xlane.xlu0 %487 }
 0x1ad   :  { %v3608_v7 = vpop.xlane.xlu1 %461  ;;  %v698_v8 = vrot.slane %v3605_v56, %v3623_v15 }
 0x1ae   :  { %v641_v33 = vrot.slane %v3608_v7, %v3620_v24 }
 0x1b0   :  { %v3610_v4 = vpop.xlane.xlu0 %496  ;;  %v646_v47 = vsel %vm567_vm4, %v645_v44, %v641_v33  ;;  %v669_v44 = vrot.slane %v3581_v39, %v3615_v35 }
 0x1b1   :  { %v3612_v42 = vpop.xlane.xlu1 %485  ;;  %v651_v62 = vsel %vm574_vm5, %v650_v46, %v646_v47 }
 0x1b2   :  { %v693_v53 = vrot.slane %v3612_v42, %v3615_v35  ;;  %v670_v46 = vsel %vm567_vm4, %v669_v44, %v665_v34 }
 0x1b3   :  { %v675_v29 = vsel %vm574_vm5, %v674_v32, %v670_v46 }
 0x1b4   :  { %v3617_v0 = vpop.xlane.xlu0 %489  ;;  %v694_v50 = vsel %vm567_vm4, %v693_v53, %v689_v36 }
 0x1b5   :  { %v3631_v26 = vpop.xlane.xlu1 %494 }
 0x1b6   :  { %v713_v61 = vrot.slane %v3631_v26, %v3620_v24 }
 0x1b8   :  { %v3637_v40 = vpop.xlane.xlu0 %470 }
 0x1b9   :  { %v3661_v23 = vpop.xlane.xlu1 %498  ;;  %v660_v18 = vrot.slane %v3637_v40, %v3629_v28 }
 0x1ba   :  { %4807 = vst [vmem:[#allocation29_spill] sm:$0xff] %v3661_v23  ;;  %v722_v34 = vrot.slane %v3661_v23, %v3623_v15 }
 0x1bc   :  { %v3665_v9 = vpop.xlane.xlu0 %492 }
 0x1bd   :  { %v3683_v1 = vpop.xlane.xlu1 %500 }
 0x1be   :  { %4808 = vst [vmem:[#allocation30_spill] sm:$0xff] %v3683_v1 }
 0x1c0   :  { %v3693_v54 = vpop.xlane.xlu0 %505 }
 0x1c1   :  { %v3713_v53 = vpop.xlane.xlu1 %503  ;;  %v737_v23 = vrot.slane %v3693_v54, %v3620_v24 }
 0x1c2   :  { %4810 = vst [vmem:[#allocation32_spill] sm:$0xff] %v3713_v53 }
 0x1c3   :  { %v1765_v33 = vpop.f32.mrb[4].mxu0 }
 0x1c4   :  { %v3704_v51 = vadd.f32 %v1765_v33, %v3270_v25  ;;  %v2938_v43 = vpop.f32.mrb[5].mxu0  ;;  %v637_v25 = vsel %vm588_vm7, %v636_v17, %v632_v59  ;;  %v3721_v36 = vpop.xlane.xlu0 %509  ;;  %v679_v33 = vrot.slane %v3595_v16, %v3626_v63  ;;  %v717_v17 = vrot.slane %v3610_v4, %v3615_v35 }
 0x1c5   :  { %v1768_v47 = vpop.f32.mrb[6].mxu0  ;;  %v703_v43 = vrot.slane %v3617_v0, %v3626_v63  ;;  %v708_v59 = vrot.slane %v3665_v9, %v3629_v28 }
 0x1c6   :  { %4809 = vst [vmem:[#allocation31_spill] sm:$0xff] %v3704_v51  ;;  %v2939_v45 = vpop.f32.mrb[7].mxu0  ;;  %v699_v51 = vsel %vm574_vm5, %v698_v8, %v694_v50  ;;  %v656_v47 = vsel %vm581_vm6, %v655_v2, %v651_v62  ;;  %v761_v50 = vsel %vm760_vm9, %v637_v25, %v759_v58  ;;  %v684_v62 = vrot.slane %v3603_v38, %v3629_v28  ;;  %v3742_v8 = vpop.xlane.xlu1 %507 }
 0x1c7   :  { %v661_v44 = vsel %vm588_vm7, %v660_v18, %v656_v47  ;;  %v727_v45 = vrot.slane %v3683_v1, %v3626_v63  ;;  %v732_v2 = vrot.slane %v3713_v53, %v3629_v28  ;;  %v704_v18 = vsel %vm581_vm6, %v703_v43, %v699_v51 }
 0x1c8   :  { %v718_v47 = vsel %vm567_vm4, %v717_v17, %v713_v61  ;;  %v741_v32 = vrot.slane %v3742_v8, %v3615_v35  ;;  %v3750_v46 = vpop.xlane.xlu0 %511  ;;  %v763_v58 = vsel %vm762_vm10, %v661_v44, %v761_v50  ;;  %v746_v53 = vrot.slane %v3721_v36, %v3623_v15 }
 0x1c9   :  { %v723_v25 = vsel %vm574_vm5, %v722_v34, %v718_v47  ;;  %v751_v51 = vrot.slane %v3750_v46, %v3626_v63  ;;  %v680_v43 = vsel %vm581_vm6, %v679_v33, %v675_v29  ;;  %v709_v61 = vsel %vm588_vm7, %v708_v59, %v704_v18 }
 0x1ca   :  { %v728_v17 = vsel %vm581_vm6, %v727_v45, %v723_v25  ;;  %v742_v24 = vsel %vm567_vm4, %v741_v32, %v737_v23  ;;  %v685_v35 = vsel %vm588_vm7, %v684_v62, %v680_v43  ;;  %v3763_v1 = vpop.xlane.xlu1 %514 }
 0x1cb   :  { %v733_v34 = vsel %vm588_vm7, %v732_v2, %v728_v17  ;;  %v747_v44 = vsel %vm574_vm5, %v746_v53, %v742_v24  ;;  %v756_v50 = vrot.slane %v3763_v1, %v3629_v28  ;;  %v765_v33 = vsel %vm764_vm11, %v685_v35, %v763_v58 }
 0x1cc   :  { %v752_v29 = vsel %vm581_vm6, %v751_v51, %v747_v44  ;;  %v767_v59 = vsel %vm766_vm12, %v709_v61, %v765_v33  ;;  %v3777_v53 = vsub.s32 1, %v3265_v19  ;;  %v3780_v2 = vsub.s32 2, %v3265_v19 }
 0x1cd   :  { %v757_v23 = vsel %vm588_vm7, %v756_v50, %v752_v29  ;;  %v769_v45 = vsel %vm768_vm13, %v733_v34, %v767_v59  ;;  %v3783_v35 = vsub.s32 3, %v3265_v19 }
 0x1ce   :  { %v771_v62 = vsel %vm770_vm14, %v757_v23, %v769_v45 }
 0x1cf   :  { %v774_v24 = vsel %vm773_vm15, %v771_v62, -inf }
 0x1d0   :  { %775 = vmax.xlane.f32.xlu0 %v774_v24 }
 0x25d   :  { %v3785_v18 = vpop.xlane.xlu0 %775 }
 0x25e   :  { %v3789_v47 = vrot.slane %v3785_v18, %v3279_v30  ;;  %v3793_v32 = vrot.slane %v3785_v18, %v3777_v53  ;;  %v3797_v58 = vrot.slane %v3785_v18, %v3780_v2  ;;  %v3801_v25 = vrot.slane %v3785_v18, %v3783_v35 }
 0x260   :  { %v819_v51 = vsub.f32 %v3561_v52, %v3789_v47  ;;  %v818_v43 = vsub.f32 %v3557_v22, %v3789_v47  ;;  %v830_v61 = vsub.f32 %v3577_v13, %v3797_v58  ;;  %v823_v17 = vsub.f32 %v3563_v48, %v3793_v32 }
 0x261   :  { %v834_v29 = vsub.f32 %v3589_v37, %v3801_v25  ;;  %v824_v52 = vsub.f32 %v3567_v55, %v3793_v32  ;;  %v3816_v22 = vsub.s32 4, %v3265_v19  ;;  %v827_v48 = vsub.f32 %v3585_v5, %v3793_v32 }
 0x262   :  { %v860_v34 = vmul.f32 1.442695, %v819_v51  ;;  %v858_v44 = vmul.f32 1.442695, %v818_v43  ;;  %v882_v50 = vmul.f32 1.442695, %v830_v61  ;;  %v820_v23 = vsub.f32 %v3565_v20, %v3789_v47 }
 0x263   :  { %v868_v33 = vmul.f32 1.442695, %v823_v17  ;;  %4811 = vst [vmem:[#allocation33_spill] sm:$0xff] %v3816_v22  ;;  %v890_v13 = vmul.f32 1.442695, %v834_v29  ;;  %v3824_v37 = vrot.slane %v3785_v18, %v3816_v22  ;;  %v835_v55 = vsub.f32 %v3593_v14, %v3801_v25 }
 0x264   :  { %3018 = vpow2.f32 %v860_v34  ;;  %v870_v59 = vmul.f32 1.442695, %v824_v52  ;;  %v876_v45 = vmul.f32 1.442695, %v827_v48  ;;  %v862_v62 = vmul.f32 1.442695, %v820_v23 }
 0x265   :  { %3020 = vpow2.f32 %v858_v44  ;;  %v825_v24 = vsub.f32 %v3571_v12, %v3793_v32  ;;  %v3836_v20 = vsub.s32 5, %v3265_v19  ;;  %v892_v43 = vmul.f32 1.442695, %v835_v55 }
 0x266   :  { %3022 = vpow2.f32 %v882_v50  ;;  %v839_v14 = vsub.f32 %v3581_v39, %v3824_v37  ;;  %v828_v12 = vsub.f32 %v3573_v10, %v3797_v58  ;;  %v836_v39 = vsub.f32 %v3597_v11, %v3801_v25 }
 0x267   :  { %3024 = vpow2.f32 %v868_v33  ;;  %v872_v61 = vmul.f32 1.442695, %v825_v24  ;;  %v3850_v44 = vrot.slane %v3785_v18, %v3836_v20  ;;  %v829_v10 = vsub.f32 %v3575_v21, %v3797_v58 }
 0x268   :  { %3026 = vpow2.f32 %v890_v13  ;;  %v900_v50 = vmul.f32 1.442695, %v839_v14  ;;  %v878_v29 = vmul.f32 1.442695, %v828_v12  ;;  %v894_v13 = vmul.f32 1.442695, %v836_v39 }
 0x269   :  { %3028 = vpow2.f32 %v870_v59  ;;  %v843_v48 = vsub.f32 %v3601_v57, %v3850_v44  ;;  %v880_v11 = vmul.f32 1.442695, %v829_v10  ;;  %v821_v59 = vsub.f32 %v3569_v3, %v3789_v47 }
 0x26a   :  { %3030 = vpow2.f32 %v876_v45  ;;  %v3873_v45 = vsub.s32 6, %v3265_v19  ;;  %v837_v57 = vsub.f32 %v3637_v40, %v3801_v25  ;;  %v826_v3 = vsub.f32 %v3579_v6, %v3793_v32 }
 0x26b   :  { %3032 = vpow2.f32 %v862_v62  ;;  %v908_v55 = vmul.f32 1.442695, %v843_v48  ;;  %v864_v62 = vmul.f32 1.442695, %v821_v59  ;;  %v845_v40 = vsub.f32 %v3605_v56, %v3850_v44 }
 0x26c   :  { %3034 = vpow2.f32 %v892_v43  ;;  %v3887_v14 = vrot.slane %v3785_v18, %v3873_v45  ;;  %v874_v12 = vmul.f32 1.442695, %v826_v3  ;;  %v833_v6 = vsub.f32 %v3608_v7, %v3801_v25 }
 0x26d   :  { %3036 = vpow2.f32 %v872_v61  ;;  %v896_v61 = vmul.f32 1.442695, %v837_v57  ;;  %v3900_v39 = vsub.s32 7, %v3265_v19  ;;  %v822_v7 = vsub.f32 %v3559_v49, %v3789_v47 }
 0x26e   :  { %v3830_v5 = vpop.eup %3018  ;;  %3038 = vpow2.f32 %v900_v50  ;;  %v849_v56 = vsub.f32 %v3610_v4, %v3887_v14  ;;  %v888_v10 = vmul.f32 1.442695, %v833_v6  ;;  %v846_v4 = vsub.f32 %v3617_v0, %v3850_v44 }
 0x26f   :  { %v3832_v51 = vpop.eup %3020  ;;  %982 = vperm.xlu0 %2992, %v3830_v5   ;;  %3040 = vpow2.f32 %v878_v29  ;;  %4819 = vst [vmem:[#allocation41_spill] sm:$0xff] %v3900_v39  ;;  %v912_v29 = vmul.f32 1.442695, %v845_v40  ;;  %v3914_v19 = vrot.slane %v3785_v18, %v3900_v39  ;;  %v831_v49 = vsub.f32 %v3583_v41, %v3797_v58 }
 0x270   :  { %979 = vperm.xlu1 %2991, %v3832_v51   ;;  %v3843_v17 = vpop.eup %3022  ;;  %3042 = vpow2.f32 %v894_v13  ;;  %v920_v48 = vmul.f32 1.442695, %v849_v56  ;;  %v914_v18 = vmul.f32 1.442695, %v846_v4  ;;  %v838_v57 = vsub.f32 %v3587_v31, %v3824_v37 }
 0x271   :  { %4812 = vst [vmem:[#allocation34_spill] sm:$0xff] %v3843_v17  ;;  %v3845_v34 = vpop.eup %3024  ;;  %3044 = vpow2.f32 %v880_v11  ;;  %v866_v11 = vmul.f32 1.442695, %v822_v7  ;;  %v884_v0 = vmul.f32 1.442695, %v831_v49  ;;  %v832_v40 = vsub.f32 %v3599_v60, %v3797_v58 }
 0x272   :  { %v3857_v33 = vpop.eup %3026  ;;  %3046 = vpow2.f32 %v908_v55  ;;  %v853_v55 = vsub.f32 %v3693_v54, %v3914_v19  ;;  %v898_v54 = vmul.f32 1.442695, %v838_v57  ;;  %v840_v56 = vsub.f32 %v3591_v27, %v3824_v37 }
 0x273   :  { %1015 = vperm.xlu0 %2992, %v3843_v17   ;;  %4813 = vst [vmem:[#allocation35_spill] sm:$0xff] %v3857_v33  ;;  %v3859_v52 = vpop.eup %3028  ;;  %3048 = vpow2.f32 %v864_v62  ;;  %v856_v7 = vsub.f32 %v3750_v46, %v3914_v19  ;;  %v841_v46 = vsub.f32 %v3595_v16, %v3824_v37  ;;  %v4847_v17 = vld [vmem:[#allocation28_spill] sm:$0xff] }
 0x274   :  { %994 = vperm.xlu1 %2991, %v3845_v34   ;;  %v3867_v23 = vpop.eup %3030  ;;  %3050 = vpow2.f32 %v896_v61  ;;  %v928_v3 = vmul.f32 1.442695, %v853_v55  ;;  %v847_v61 = vsub.f32 %v3665_v9, %v3850_v44  ;;  %v886_v9 = vmul.f32 1.442695, %v832_v40  ;;  %v4833_v40 = vld [vmem:[#allocation29_spill] sm:$0xff] }
 0x275   :  { %4814 = vst [vmem:[#allocation36_spill] sm:$0xff] %v3867_v23  ;;  %v3869_v21 = vpop.eup %3032  ;;  %3052 = vpow2.f32 %v874_v12 }
 0x276   :  { %4815 = vst [vmem:[#allocation37_spill] sm:$0xff] %v3869_v21  ;;  %v3880_v24 = vpop.eup %3034  ;;  %3054 = vpow2.f32 %v912_v29  ;;  %v916_v6 = vmul.f32 1.442695, %v847_v61  ;;  %v855_v29 = vsub.f32 %v3721_v36, %v3914_v19  ;;  %v902_v36 = vmul.f32 1.442695, %v840_v56 }
 0x277   :  { %1027 = vperm.xlu0 %2992, %v3857_v33   ;;  %4816 = vst [vmem:[#allocation38_spill] sm:$0xff] %v3880_v24  ;;  %v3882_v43 = vpop.eup %3036  ;;  %3056 = vpow2.f32 %v888_v10 }
 0x278   :  { %997 = vperm.xlu1 %2991, %v3859_v52   ;;  %4817 = vst [vmem:[#allocation39_spill] sm:$0xff] %v3882_v43  ;;  %v3894_v32 = vpop.eup %3038  ;;  %3058 = vpow2.f32 %v920_v48  ;;  %v932_v58 = vmul.f32 1.442695, %v855_v29  ;;  %v844_v48 = vsub.f32 %v3612_v42, %v3850_v44  ;;  %v904_v42 = vmul.f32 1.442695, %v841_v46 }
 0x279   :  { %4818 = vst [vmem:[#allocation40_spill] sm:$0xff] %v3894_v32  ;;  %v3896_v50 = vpop.eup %3040  ;;  %3060 = vpow2.f32 %v866_v11  ;;  %v934_v11 = vmul.f32 1.442695, %v856_v7  ;;  %v848_v44 = vsub.f32 %v3631_v26, %v3887_v14  ;;  %v4837_v7 = vld [vmem:[#allocation30_spill] sm:$0xff] }
 0x27a   :  { %v3907_v25 = vpop.eup %3042  ;;  %3062 = vpow2.f32 %v914_v18  ;;  %v910_v49 = vmul.f32 1.442695, %v844_v48 }
 0x27b   :  { %1006 = vperm.xlu0 %2992, %v3867_v23   ;;  %4820 = vst [vmem:[#allocation42_spill] sm:$0xff] %v3907_v25  ;;  %v3909_v13 = vpop.eup %3044  ;;  %3064 = vpow2.f32 %v884_v0  ;;  %v918_v16 = vmul.f32 1.442695, %v848_v44  ;;  %v857_v44 = vsub.f32 %v3763_v1, %v3914_v19 }
 0x27c   :  { %985 = vperm.xlu1 %2991, %v3869_v21   ;;  %4821 = vst [vmem:[#allocation43_spill] sm:$0xff] %v3909_v13  ;;  %v3921_v47 = vpop.eup %3046  ;;  %3066 = vpow2.f32 %v928_v3  ;;  %v842_v3 = vsub.f32 %v3603_v38, %v3824_v37  ;;  %v854_v37 = vsub.f32 %v3742_v8, %v3914_v19 }
 0x27d   :  { %v3923_v59 = vpop.eup %3048  ;;  %3068 = vpow2.f32 %v898_v54 }
 0x27e   :  { %4822 = vst [vmem:[#allocation44_spill] sm:$0xff] %v3923_v59  ;;  %v3931_v62 = vpop.eup %3050  ;;  %3070 = vpow2.f32 %v916_v6  ;;  %v906_v26 = vmul.f32 1.442695, %v842_v3  ;;  %v850_v6 = vsub.f32 %v4833_v40, %v3887_v14  ;;  %v936_v3 = vmul.f32 1.442695, %v857_v44 }
 0x27f   :  { %1030 = vperm.xlu0 %2992, %v3880_v24   ;;  %4823 = vst [vmem:[#allocation45_spill] sm:$0xff] %v3931_v62  ;;  %v3933_v41 = vpop.eup %3052  ;;  %3072 = vpow2.f32 %v886_v9 }
 0x280   :  { %1000 = vperm.xlu1 %2991, %v3882_v43   ;;  %v3941_v12 = vpop.eup %3054  ;;  %3074 = vpow2.f32 %v932_v58  ;;  %v922_v38 = vmul.f32 1.442695, %v850_v6  ;;  %v930_v58 = vmul.f32 1.442695, %v854_v37 }
 0x281   :  { %4824 = vst [vmem:[#allocation46_spill] sm:$0xff] %v3941_v12  ;;  %v3943_v31 = vpop.eup %3056  ;;  %3076 = vpow2.f32 %v902_v36  ;;  %v851_v36 = vsub.f32 %v4837_v7, %v3887_v14 }
 0x282   :  { %v3951_v10 = vpop.eup %3058  ;;  %3078 = vpow2.f32 %v934_v11 }
 0x283   :  { %1042 = vperm.xlu0 %2992, %v3894_v32   ;;  %4825 = vst [vmem:[#allocation47_spill] sm:$0xff] %v3951_v10  ;;  %v3953_v60 = vpop.eup %3060  ;;  %3080 = vpow2.f32 %v910_v49  ;;  %v924_v11 = vmul.f32 1.442695, %v851_v36  ;;  %v4839_v49 = vld [vmem:[#allocation32_spill] sm:$0xff] }
 0x284   :  { %1009 = vperm.xlu1 %2991, %v3896_v50   ;;  %v3961_v4 = vpop.eup %3062  ;;  %3082 = vpow2.f32 %v904_v42  ;;  %v852_v46 = vsub.f32 %v4839_v49, %v3887_v14 }
 0x285   :  { %4826 = vst [vmem:[#allocation48_spill] sm:$0xff] %v3961_v4  ;;  %v3963_v27 = vpop.eup %3064  ;;  %3084 = vpow2.f32 %v918_v16 }
 0x286   :  { %v3969_v18 = vpop.eup %3066  ;;  %3086 = vpow2.f32 %v906_v26  ;;  %v926_v8 = vmul.f32 1.442695, %v852_v46 }
 0x287   :  { %1033 = vperm.xlu0 %2992, %v3907_v25   ;;  %4827 = vst [vmem:[#allocation49_spill] sm:$0xff] %v3969_v18  ;;  %v3971_v55 = vpop.eup %3068  ;;  %3088 = vpow2.f32 %v922_v38 }
 0x288   :  { %1012 = vperm.xlu1 %2991, %v3909_v13   ;;  %4828 = vst [vmem:[#allocation50_spill] sm:$0xff] %v3971_v55  ;;  %v3977_v0 = vpop.eup %3070  ;;  %3090 = vpow2.f32 %v930_v58 }
 0x289   :  { %4829 = vst [vmem:[#allocation51_spill] sm:$0xff] %v3977_v0  ;;  %v3979_v57 = vpop.eup %3072  ;;  %3092 = vpow2.f32 %v924_v11 }
 0x28a   :  { %4830 = vst [vmem:[#allocation52_spill] sm:$0xff] %v3979_v57  ;;  %v3985_v61 = vpop.eup %3074  ;;  %3094 = vpow2.f32 %v926_v8 }
 0x28b   :  { %1054 = vperm.xlu0 %2992, %v3921_v47   ;;  %4831 = vst [vmem:[#allocation53_spill] sm:$0xff] %v3985_v61  ;;  %v3987_v54 = vpop.eup %3076  ;;  %3096 = vpow2.f32 %v936_v3 }
 0x28c   :  { %988 = vperm.xlu1 %2991, %v3923_v59   ;;  %4832 = vst [vmem:[#allocation54_spill] sm:$0xff] %v3987_v54  ;;  %v3993_v29 = vpop.eup %3078 }
 0x28d   :  { %4834 = vst [vmem:[#allocation29_spill] sm:$0xff] %v3993_v29  ;;  %v3995_v9 = vpop.eup %3080 }
 0x28e   :  { %4835 = vst [vmem:[#allocation55_spill] sm:$0xff] %v3995_v9  ;;  %v4001_v56 = vpop.eup %3082 }
 0x28f   :  { %1036 = vperm.xlu0 %2992, %v3931_v62   ;;  %4836 = vst [vmem:[#allocation56_spill] sm:$0xff] %v4001_v56  ;;  %v4006_v48 = vpop.eup %3084 }
 0x290   :  { %1003 = vperm.xlu1 %2991, %v3933_v41   ;;  %4838 = vst [vmem:[#allocation30_spill] sm:$0xff] %v4006_v48  ;;  %v4011_v42 = vpop.eup %3086 }
 0x291   :  { %4840 = vst [vmem:[#allocation32_spill] sm:$0xff] %v4011_v42  ;;  %v4016_v16 = vpop.eup %3088 }
 0x292   :  { %4841 = vst [vmem:[#allocation57_spill] sm:$0xff] %v4016_v16  ;;  %v4019_v26 = vpop.eup %3090 }
 0x293   :  { %1060 = vperm.xlu0 %2992, %v3941_v12   ;;  %4842 = vst [vmem:[#allocation58_spill] sm:$0xff] %v4019_v26  ;;  %v4022_v14 = vpop.eup %3092 }
 0x294   :  { %1024 = vperm.xlu1 %2991, %v3943_v31   ;;  %4843 = vst [vmem:[#allocation59_spill] sm:$0xff] %v4022_v14  ;;  %v4025_v40 = vpop.eup %3094 }
 0x295   :  { %4844 = vst [vmem:[#allocation60_spill] sm:$0xff] %v4025_v40  ;;  %v4028_v1 = vpop.eup %3096 }
 0x296   :  { %4845 = vst [vmem:[#allocation61_spill] sm:$0xff] %v4028_v1 }
 0x297   :  { %1072 = vperm.xlu0 %2992, %v3951_v10  }
 0x298   :  { %991 = vperm.xlu1 %2991, %v3953_v60  }
 0x29b   :  { %1063 = vperm.xlu0 %2992, %v3961_v4  }
 0x29c   :  { %1018 = vperm.xlu1 %2991, %v3963_v27  }
 0x29f   :  { %1084 = vperm.xlu0 %2992, %v3969_v18  }
 0x2a0   :  { %1039 = vperm.xlu1 %2991, %v3971_v55   ;;  %v4846_v55 = vld [vmem:[#allocation27_spill] sm:$0xff] }
 0x2a3   :  { %1066 = vperm.xlu0 %2992, %v3977_v0  }
 0x2a4   :  { %1021 = vperm.xlu1 %2991, %v3979_v57  }
 0x2a7   :  { %1090 = vperm.xlu0 %2992, %v3985_v61  }
 0x2a8   :  { %1045 = vperm.xlu1 %2991, %v3987_v54  }
 0x2ab   :  { %1093 = vperm.xlu0 %2992, %v3993_v29  }
 0x2ac   :  { %1057 = vperm.xlu1 %2991, %v3995_v9  }
 0x2b0   :  { %1048 = vperm.xlu1 %2991, %v4001_v56  }
 0x2b4   :  { %1069 = vperm.xlu1 %2991, %v4006_v48  }
 0x2b8   :  { %1051 = vperm.xlu1 %2991, %v4011_v42  }
 0x2bc   :  { %1075 = vperm.xlu1 %2991, %v4016_v16  }
 0x2c0   :  { %1087 = vperm.xlu1 %2991, %v4019_v26  }
 0x2c4   :  { %1078 = vperm.xlu1 %2991, %v4022_v14  }
 0x2c8   :  { %1081 = vperm.xlu1 %2991, %v4025_v40  }
 0x2cc   :  { %1096 = vperm.xlu1 %2991, %v4028_v1  }
 0x2ee   :  { %v983_v19 = vpop.permute.xlu0 %982 }
 0x2ef   :  { %v980_v6 = vpop.permute.xlu1 %979  ;;  %v1105_v42 = vrot.slane %v983_v19, %v4846_v55 }
 0x2f0   :  { %v1101_v56 = vrot.slane %v980_v6, %v4847_v17 }
 0x2f2   :  { %v4031_v37 = vpop.permute.xlu0 %1015  ;;  %v1106_v19 = vsel %vm567_vm4, %v1105_v42, %v1101_v56 }
 0x2f3   :  { %v995_v38 = vpop.permute.xlu1 %994  ;;  %v1158_v6 = vrot.slane %v4031_v37, %v3623_v15 }
 0x2f4   :  { %v1125_v12 = vrot.slane %v995_v38, %v4847_v17 }
 0x2f6   :  { %v1028_v7 = vpop.permute.xlu0 %1027 }
 0x2f7   :  { %v998_v58 = vpop.permute.xlu1 %997 }
 0x2f8   :  { %v1129_v33 = vrot.slane %v998_v58, %v4846_v55 }
 0x2fa   :  { %v1007_v49 = vpop.permute.xlu0 %1006 }
 0x2fb   :  { %v986_v36 = vpop.permute.xlu1 %985 }
 0x2fc   :  { %v1110_v26 = vrot.slane %v986_v36, %v3623_v15  ;;  %v1177_v36 = vrot.slane %v1028_v7, %v4846_v55 }
 0x2fe   :  { %v1031_v8 = vpop.permute.xlu0 %1030 }
 0x2ff   :  { %v1001_v11 = vpop.permute.xlu1 %1000  ;;  %v1182_v56 = vrot.slane %v1031_v8, %v3623_v15 }
 0x300   :  { %v1134_v39 = vrot.slane %v1001_v11, %v3623_v15  ;;  %v1130_v11 = vsel %vm567_vm4, %v1129_v33, %v1125_v12 }
 0x302   :  { %v4033_v0 = vpop.permute.xlu0 %1042  ;;  %v1135_v42 = vsel %vm574_vm5, %v1134_v39, %v1130_v11 }
 0x303   :  { %v1010_v46 = vpop.permute.xlu1 %1009 }
 0x304   :  { %v1149_v13 = vrot.slane %v1010_v46, %v4847_v17 }
 0x306   :  { %v4035_v4 = vpop.permute.xlu0 %1033 }
 0x307   :  { %v1013_v44 = vpop.permute.xlu1 %1012 }
 0x308   :  { %v1153_v43 = vrot.slane %v1013_v44, %v4846_v55  ;;  %v1144_v44 = vrot.slane %v1007_v49, %v3629_v28  ;;  %v1201_v49 = vrot.slane %v4033_v0, %v4846_v55 }
 0x30a   :  { %v1055_v62 = vpop.permute.xlu0 %1054 }
 0x30b   :  { %v989_v3 = vpop.permute.xlu1 %988 }
 0x30c   :  { %v1115_v38 = vrot.slane %v989_v3, %v3626_v63 }
 0x30e   :  { %v4037_v25 = vpop.permute.xlu0 %1036 }
 0x30f   :  { %v1004_v40 = vpop.permute.xlu1 %1003  ;;  %v1192_v0 = vrot.slane %v4037_v25, %v3629_v28 }
 0x310   :  { %v1139_v21 = vrot.slane %v1004_v40, %v3626_v63  ;;  %v1111_v40 = vsel %vm574_vm5, %v1110_v26, %v1106_v19  ;;  %v1187_v26 = vrot.slane %v4035_v4, %v3626_v63 }
 0x312   :  { %v4041_v23 = vpop.permute.xlu0 %1060  ;;  %v1140_v37 = vsel %vm581_vm6, %v1139_v21, %v1135_v42  ;;  %v1116_v21 = vsel %vm581_vm6, %v1115_v38, %v1111_v40 }
 0x313   :  { %v1025_v1 = vpop.permute.xlu1 %1024 }
 0x314   :  { %v1173_v57 = vrot.slane %v1025_v1, %v4847_v17  ;;  %v1154_v1 = vsel %vm567_vm4, %v1153_v43, %v1149_v13  ;;  %v1221_v43 = vrot.slane %v1055_v62, %v4847_v17  ;;  %v1230_v62 = vrot.slane %v4041_v23, %v3623_v15 }
 0x315   :  { %v1159_v13 = vsel %vm574_vm5, %v1158_v6, %v1154_v1 }
 0x316   :  { %v4045_v24 = vpop.permute.xlu0 %1072  ;;  %v1178_v7 = vsel %vm567_vm4, %v1177_v36, %v1173_v57  ;;  %v1145_v57 = vsel %vm588_vm7, %v1144_v44, %v1140_v37 }
 0x317   :  { %v992_v16 = vpop.permute.xlu1 %991  ;;  %v1183_v4 = vsel %vm574_vm5, %v1182_v56, %v1178_v7  ;;  %v1249_v11 = vrot.slane %v4045_v24, %v4846_v55 }
 0x318   :  { %v1120_v33 = vrot.slane %v992_v16, %v3629_v28  ;;  %v1188_v23 = vsel %vm581_vm6, %v1187_v26, %v1183_v4 }
 0x31a   :  { %v4049_v14 = vpop.permute.xlu0 %1063 }
 0x31b   :  { %v1019_v18 = vpop.permute.xlu1 %1018 }
 0x31c   :  { %v1163_v12 = vrot.slane %v1019_v18, %v3626_v63 }
 0x31e   :  { %v4053_v61 = vpop.permute.xlu0 %1084  ;;  %v1164_v16 = vsel %vm581_vm6, %v1163_v12, %v1159_v13 }
 0x31f   :  { %v4039_v10 = vpop.permute.xlu1 %1039  ;;  %v1269_v40 = vrot.slane %v4053_v61, %v4847_v17 }
 0x320   :  { %v1197_v18 = vrot.slane %v4039_v10, %v4847_v17 }
 0x322   :  { %v4074_v48 = vpop.permute.xlu0 %1066  ;;  %v1202_v44 = vsel %vm567_vm4, %v1201_v49, %v1197_v18 }
 0x323   :  { %v1022_v54 = vpop.permute.xlu1 %1021 }
 0x324   :  { %v1168_v46 = vrot.slane %v1022_v54, %v3629_v28 }
 0x326   :  { %v1091_v3 = vpop.permute.xlu0 %1090  ;;  %v1169_v25 = vsel %vm588_vm7, %v1168_v46, %v1164_v16  ;;  %v1193_v46 = vsel %vm588_vm7, %v1192_v0, %v1188_v23 }
 0x327   :  { %v4043_v9 = vpop.permute.xlu1 %1045  ;;  %v1278_v12 = vrot.slane %v1091_v3, %v3623_v15 }
 0x328   :  { %v1206_v54 = vrot.slane %v4043_v9, %v3623_v15 }
 0x32a   :  { %v1094_v49 = vpop.permute.xlu0 %1093 }
 0x32b   :  { %v1058_v29 = vpop.permute.xlu1 %1057  ;;  %v1283_v18 = vrot.slane %v1094_v49, %v3626_v63  ;;  %v4856_v49 = vld [vmem:[#allocation35_spill] sm:$0xff] }
 0x32c   :  { %v1225_v39 = vrot.slane %v1058_v29, %v4846_v55  ;;  %v1121_v29 = vsel %vm588_vm7, %v1120_v33, %v1116_v21 }
 0x32d   :  { %v1290_v38 = vsel %vm758_vm8, %v1145_v57, %v1121_v29 }
 0x32e   :  { %v1226_v19 = vsel %vm567_vm4, %v1225_v39, %v1221_v43  ;;  %v1291_v42 = vsel %vm760_vm9, %v1169_v25, %v1290_v38  ;;  %v1240_v43 = vrot.slane %v4074_v48, %v3629_v28 }
 0x32f   :  { %v4047_v59 = vpop.permute.xlu1 %1048  ;;  %v1231_v1 = vsel %vm574_vm5, %v1230_v62, %v1226_v19 }
 0x330   :  { %v1211_v10 = vrot.slane %v4047_v59, %v3626_v63 }
 0x333   :  { %v4051_v32 = vpop.permute.xlu1 %1069 }
 0x334   :  { %v1245_v59 = vrot.slane %v4051_v32, %v4847_v17  ;;  %v1235_v32 = vrot.slane %v4049_v14, %v3626_v63  ;;  %v1292_v14 = vsel %vm762_vm10, %v1193_v46, %v1291_v42 }
 0x337   :  { %v4057_v22 = vpop.permute.xlu1 %1051 }
 0x338   :  { %v1216_v6 = vrot.slane %v4057_v22, %v3629_v28  ;;  %v1207_v22 = vsel %vm574_vm5, %v1206_v54, %v1202_v44 }
 0x339   :  { %v1212_v24 = vsel %vm581_vm6, %v1211_v10, %v1207_v22 }
 0x33a   :  { %v1217_v7 = vsel %vm588_vm7, %v1216_v6, %v1212_v24 }
 0x33b   :  { %v1076_v58 = vpop.permute.xlu1 %1075  ;;  %v1293_v13 = vsel %vm764_vm11, %v1217_v7, %v1292_v14  ;;  %v4854_v7 = vld [vmem:[#allocation41_spill] sm:$0xff]  ;;  %v4859_v14 = vld [vmem:[#allocation34_spill] sm:$0xff] }
 0x33c   :  { %v1254_v56 = vrot.slane %v1076_v58, %v3623_v15  ;;  %v1250_v58 = vsel %vm567_vm4, %v1249_v11, %v1245_v59 }
 0x33e   :  { %v1255_v39 = vsel %vm574_vm5, %v1254_v56, %v1250_v58  ;;  %v4849_v56 = vld [vmem:[#allocation43_spill] sm:$0xff] }
 0x33f   :  { %v1088_v8 = vpop.permute.xlu1 %1087 }
 0x340   :  { %v1273_v9 = vrot.slane %v1088_v8, %v4846_v55  ;;  %v1236_v8 = vsel %vm581_vm6, %v1235_v32, %v1231_v1  ;;  %v4851_v1 = vld [vmem:[#allocation37_spill] sm:$0xff] }
 0x341   :  { %v1241_v54 = vsel %vm588_vm7, %v1240_v43, %v1236_v8 }
 0x342   :  { %v1274_v33 = vsel %vm567_vm4, %v1273_v9, %v1269_v40  ;;  %v1294_v29 = vsel %vm766_vm12, %v1241_v54, %v1293_v13  ;;  %v4861_v13 = vld [vmem:[#allocation50_spill] sm:$0xff] }
 0x343   :  { %v1079_v36 = vpop.permute.xlu1 %1078  ;;  %v1279_v15 = vsel %vm574_vm5, %v1278_v12, %v1274_v33  ;;  %vm2189_vm5 = vcmask 64512  }
 0x344   :  { %v1259_v37 = vrot.slane %v1079_v36, %v3626_v63  ;;  %v1284_v62 = vsel %vm581_vm6, %v1283_v18, %v1279_v15 }
 0x346   :  { %v1260_v21 = vsel %vm581_vm6, %v1259_v37, %v1255_v39  ;;  %v4858_v39 = vld [vmem:[#allocation56_spill] sm:$0xff] }
 0x347   :  { %v1082_v61 = vpop.permute.xlu1 %1081 }
 0x348   :  { %v1264_v26 = vrot.slane %v1082_v61, %v3629_v28  ;;  %v4855_v61 = vld [vmem:[#allocation58_spill] sm:$0xff] }
 0x34a   :  { %v1265_v57 = vsel %vm588_vm7, %v1264_v26, %v1260_v21  ;;  %v4857_v26 = vld [vmem:[#allocation33_spill] sm:$0xff]  ;;  %v4860_v21 = vld [vmem:[#allocation32_spill] sm:$0xff] }
 0x34b   :  { %v1097_v0 = vpop.permute.xlu1 %1096  ;;  %v1295_v16 = vsel %vm768_vm13, %v1265_v57, %v1294_v29  ;;  %v4862_v57 = vld [vmem:[#allocation53_spill] sm:$0xff] }
 0x34c   :  { %v1288_v4 = vrot.slane %v1097_v0, %v3629_v28 }
 0x34e   :  { %v1289_v48 = vsel %vm588_vm7, %v1288_v4, %v1284_v62  ;;  %v4863_v4 = vld [vmem:[#allocation40_spill] sm:$0xff]  ;;  %v4864_v62 = vld [vmem:[#allocation59_spill] sm:$0xff] }
 0x34f   :  { %v1296_v3 = vsel %vm770_vm14, %v1289_v48, %v1295_v16  ;;  %v4865_v48 = vld [vmem:[#allocation44_spill] sm:$0xff] }
 0x350   :  { %v1298_v10 = vsel %vm773_vm15, %v1296_v3, 0.0  ;;  %v4866_v3 = vld [vmem:[#allocation29_spill] sm:$0xff] }
 0x351   :  { %1299 = vadd.xlane.f32.xlu0 %v1298_v10 }
 0x3de   :  { %v1300_v63 = vpop.xlane.xlu0 %1299 }
 0x3df   :  { %3098 = vrcp.f32 %v1300_v63  ;;  %v4867_v63 = vld [vmem:[#allocation38_spill] sm:$0xff] }
 0x3e9   :  { %v3099_v25 = vpop.eup %3098 }
 0x3ea   :  { %v4154_v28 = vrot.slane %v3099_v25, %v3783_v35  ;;  %v1306_v19 = vrot.slane %v3099_v25, %v3279_v30  ;;  %v1310_v36 = vrot.slane %v3099_v25, %v3777_v53  ;;  %v4164_v44 = vrot.slane %v3099_v25, %v3836_v20 }
 0x3eb   :  { %v1330_v22 = vrot.slane %v3099_v25, %v3873_v45  ;;  %v1334_v33 = vrot.slane %v3099_v25, %v4854_v7  ;;  %v1322_v46 = vrot.slane %v3099_v25, %v4857_v26 }
 0x3ec   :  { %v1358_v6 = vmul.f32 %v3943_v31, %v4154_v28  ;;  %v1343_v9 = vmul.f32 %v3832_v51, %v1306_v19  ;;  %v1351_v23 = vmul.f32 %v3933_v41, %v1310_v36  ;;  %v1344_v11 = vmul.f32 %v3830_v5, %v1306_v19 }
 0x3ed   :  { %v1368_v59 = vmul.f32 %v3921_v47, %v4164_v44  ;;  %v1348_v31 = vmul.f32 %v3845_v34, %v1310_v36  ;;  %v1347_v51 = vmul.f32 %v3953_v60, %v1306_v19  ;;  %v1349_v38 = vmul.f32 %v3859_v52, %v1310_v36  ;;  %v4848_v47 = vld [vmem:[#allocation30_spill] sm:$0xff]  ;;  %v4850_v60 = vld [vmem:[#allocation52_spill] sm:$0xff] }
 0x3ee   :  { %1460 = vperm.xlu0 %2992, %v1358_v6   ;;  %1385 = vperm.xlu1 %2991, %v1343_v9   ;;  %v1314_v41 = vrot.slane %v3099_v25, %v3780_v2  ;;  %v1373_v34 = vmul.f32 %v4848_v47, %v1330_v22  ;;  %v1345_v24 = vmul.f32 %v4851_v1, %v1306_v19  ;;  %v4868_v6 = vld [vmem:[#allocation55_spill] sm:$0xff]  ;;  %v4874_v47 = vld [vmem:[#allocation45_spill] sm:$0xff] }
 0x3ef   :  { %v1379_v12 = vmul.f32 %v4855_v61, %v1334_v33  ;;  %v1359_v58 = vmul.f32 %v4856_v49, %v4154_v28  ;;  %v1366_v8 = vmul.f32 %v4858_v39, %v1322_v46  ;;  %v1367_v15 = vmul.f32 %v4860_v21, %v1322_v46  ;;  %v3003_v61 = vld [vmem:[%s4633_s11 + $0x8] sm:$0xff]  }
 0x3f0   :  { %v1356_v5 = vmul.f32 %v3963_v27, %v1314_v41  ;;  %v1353_v40 = vmul.f32 %v3896_v50, %v1314_v41  ;;  %v1354_v42 = vmul.f32 %v4849_v56, %v1314_v41  ;;  %v1357_v52 = vmul.f32 %v4850_v60, %v1314_v41  ;;  %v4852_v27 = vld [vmem:[#allocation46_spill] sm:$0xff]  ;;  %v4853_v50 = vld [vmem:[#allocation39_spill] sm:$0xff]  ;;  %v4875_v56 = vld [vmem:[#allocation57_spill] sm:$0xff] }
 0x3f1   :  { %v1370_v37 = vmul.f32 %v4852_v27, %v4164_v44  ;;  %v1350_v32 = vmul.f32 %v4853_v50, %v1310_v36  ;;  %v1355_v43 = vmul.f32 %v4859_v14, %v1314_v41  ;;  %v1363_v18 = vmul.f32 %v4861_v13, %v1322_v46 }
 0x3f2   :  { %1425 = vperm.xlu0 %2992, %v1351_v23   ;;  %1390 = vperm.xlu1 %2991, %v1344_v11   ;;  %v1380_v0 = vmul.f32 %v4862_v57, %v1334_v33  ;;  %v1364_v54 = vmul.f32 %v4863_v4, %v1322_v46  ;;  %v1376_v29 = vmul.f32 %v4864_v62, %v1330_v22  ;;  %v4869_v23 = vld [vmem:[#allocation36_spill] sm:$0xff]  ;;  %v3009_v4 = vld [vmem:[%s4633_s11 + $0x38] sm:$0xff]  }
 0x3f3   :  { %v1346_v16 = vmul.f32 %v4865_v48, %v1306_v19  ;;  %v1381_v10 = vmul.f32 %v4866_v3, %v1334_v33  ;;  %v1360_v25 = vmul.f32 %v4867_v63, %v4154_v28  ;;  %v1369_v9 = vmul.f32 %v4868_v6, %v4164_v44  ;;  %v4871_v19 = vld [vmem:[#allocation47_spill] sm:$0xff]  ;;  %v4884_v62 = vld [vmem:[#allocation5_spill] sm:$0xff] }
 0x3f4   :  { %v1352_v11 = vmul.f32 %v4869_v23, %v1310_v36  ;;  %v1375_v36 = vmul.f32 %v4875_v56, %v1330_v22  ;;  %v4888_v23 = vld [vmem:[#allocation8_spill] sm:$0xff] }
 0x3f6   :  { %1510 = vperm.xlu0 %2992, %v1368_v59   ;;  %1410 = vperm.xlu1 %2991, %v1348_v31   ;;  %v4870_v59 = vld [vmem:[#allocation54_spill] sm:$0xff] }
 0x3f7   :  { %v1365_v31 = vmul.f32 %v4870_v59, %v1322_v46 }
 0x3fa   :  { %1405 = vperm.xlu0 %2992, %v1347_v51   ;;  %1415 = vperm.xlu1 %2991, %v1349_v38   ;;  %v1374_v51 = vmul.f32 %v4871_v19, %v1330_v22  ;;  %v4872_v38 = vld [vmem:[#allocation42_spill] sm:$0xff] }
 0x3fb   :  { %v1361_v41 = vmul.f32 %v4872_v38, %v4154_v28 }
 0x3fe   :  { %1450 = vperm.xlu0 %2992, %v1356_v5   ;;  %1435 = vperm.xlu1 %2991, %v1353_v40   ;;  %v4873_v5 = vld [vmem:[#allocation49_spill] sm:$0xff] }
 0x3ff   :  { %v1378_v40 = vmul.f32 %v4873_v5, %v1334_v33  ;;  %v4891_v5 = vld [vmem:[#allocation6_spill] sm:$0xff] }
 0x402   :  { %1535 = vperm.xlu0 %2992, %v1373_v34   ;;  %1440 = vperm.xlu1 %2991, %v1354_v42   ;;  %v1362_v34 = vmul.f32 %v4874_v47, %v4154_v28  ;;  %v4876_v42 = vld [vmem:[#allocation48_spill] sm:$0xff]  ;;  %v3002_v28 = vld [vmem:[%s4633_s11] sm:$0xff]  }
 0x403   :  { %v1371_v60 = vmul.f32 %v4876_v42, %v4164_v44  ;;  %2941 = vmatpush3.bf16.msra.mxu1 %v3002_v28 }
 0x406   :  { %1455 = vperm.xlu0 %2992, %v1357_v52   ;;  %1395 = vperm.xlu1 %2991, %v1345_v24   ;;  %v4877_v52 = vld [vmem:[#allocation51_spill] sm:$0xff]  ;;  %v4878_v24 = vld [vmem:[#allocation60_spill] sm:$0xff] }
 0x407   :  { %v1372_v1 = vmul.f32 %v4877_v52, %v4164_v44  ;;  %v1377_v27 = vmul.f32 %v4878_v24, %v1330_v22  ;;  %v3004_v44 = vld [vmem:[%s4633_s11 + $0x10] sm:$0xff]   ;;  %v3005_v22 = vld [vmem:[%s4633_s11 + $0x18] sm:$0xff]  }
 0x40a   :  { %1520 = vperm.xlu0 %2992, %v1370_v37   ;;  %1420 = vperm.xlu1 %2991, %v1350_v32   ;;  %v4879_v37 = vld [vmem:[#allocation61_spill] sm:$0xff]  ;;  %v4880_v32 = vmov 0.0  }
 0x40b   :  { %v1382_v50 = vmul.f32 %v4879_v37, %v1334_v33  ;;  %2942 = vmatprep.subr.bf16.mxu1 %v4880_v32  ;;  %v123_v33 = vld [vmem:[%s4634_s4] sm:$0xff] }
 0x40c   :  { %2943 = vmatpush3.bf16.msra.mxu1 %v3003_v61 }
 0x40d   :  { %2944 = vmatprep.subr.bf16.mxu1 %v4880_v32 }
 0x40e   :  { %1565 = vperm.xlu0 %2992, %v1379_v12   ;;  %1465 = vperm.xlu1 %2991, %v1359_v58   ;;  %v3006_v12 = vld [vmem:[%s4633_s11 + $0x20] sm:$0xff]   ;;  %v3007_v58 = vld [vmem:[%s4633_s11 + $0x28] sm:$0xff]  }
 0x410   :  { %2945 = vmatpush3.bf16.msra.mxu1 %v3004_v44 }
 0x411   :  { %2946 = vmatprep.subr.bf16.mxu1 %v4880_v32 }
 0x412   :  { %1500 = vperm.xlu0 %2992, %v1366_v8   ;;  %1445 = vperm.xlu1 %2991, %v1355_v43   ;;  %v4881_v8 = vld [vmem:[#allocation3_spill] sm:$0xff] }
 0x413   :  { %v4882_v14 = vunpack.c.l.bf16 %v4881_v8  ;;  %v4883_v21 = vunpack.c.h.bf16 %v4881_v8 }
 0x414   :  { %2947 = vmatpush3.bf16.msra.mxu1 %v3005_v22  ;;  %v4896_v22 = vld [vmem:[#allocation15_spill] sm:$0xff] }
 0x415   :  { %2948 = vmatprep.subr.bf16.mxu1 %v4880_v32 }
 0x416   :  { %1505 = vperm.xlu0 %2992, %v1367_v15   ;;  %1485 = vperm.xlu1 %2991, %v1363_v18   ;;  %v3008_v18 = vld [vmem:[%s4633_s11 + $0x30] sm:$0xff]  }
 0x418   :  { %2949 = vmatpush3.bf16.msra.mxu1 %v3006_v12 }
 0x419   :  { %2950 = vmatprep.subr.bf16.mxu1 %v4880_v32 }
 0x41a   :  { %1570 = vperm.xlu0 %2992, %v1380_v0   ;;  %1490 = vperm.xlu1 %2991, %v1364_v54  }
 0x41c   :  { %2951 = vmatpush3.bf16.msra.mxu1 %v3007_v58 }
 0x41d   :  { %2952 = vmatprep.subr.bf16.mxu1 %v4880_v32 }
 0x41e   :  { %1550 = vperm.xlu0 %2992, %v1376_v29   ;;  %1400 = vperm.xlu1 %2991, %v1346_v16   ;;  %v4885_v29 = vunpack.c.l.bf16 %v4884_v62  ;;  %v4886_v16 = vld [vmem:[#allocation7_spill] sm:$0xff] }
 0x41f   :  { %v4887_v3 = vunpack.c.l.bf16 %v4886_v16 }
 0x420   :  { %2953 = vmatpush3.bf16.msra.mxu1 %v3008_v18 }
 0x421   :  { %2954 = vmatprep.subr.bf16.mxu1 %v4880_v32 }
 0x422   :  { %1575 = vperm.xlu0 %2992, %v1381_v10   ;;  %1470 = vperm.xlu1 %2991, %v1360_v25  }
 0x424   :  { %2955 = vmatpush3.bf16.msra.mxu1 %v3009_v4 }
 0x426   :  { %1515 = vperm.xlu1 %2991, %v1369_v9  }
 0x42a   :  { %1430 = vperm.xlu1 %2991, %v1352_v11   ;;  %v4889_v11 = vunpack.c.l.bf16 %v4888_v23 }
 0x42e   :  { %1495 = vperm.xlu1 %2991, %v1365_v31   ;;  %v4890_v31 = vunpack.c.h.bf16 %v4888_v23 }
 0x432   :  { %1540 = vperm.xlu1 %2991, %v1374_v51  }
 0x436   :  { %1475 = vperm.xlu1 %2991, %v1361_v41  }
 0x43a   :  { %1560 = vperm.xlu1 %2991, %v1378_v40   ;;  %v4892_v40 = vunpack.c.l.bf16 %v4891_v5 }
 0x43e   :  { %1480 = vperm.xlu1 %2991, %v1362_v34  }
 0x442   :  { %1545 = vperm.xlu1 %2991, %v1375_v36  }
 0x446   :  { %1525 = vperm.xlu1 %2991, %v1371_v60  }
 0x44a   :  { %1530 = vperm.xlu1 %2991, %v1372_v1   ;;  %v4893_v1 = vld [vmem:[#allocation9_spill] sm:$0xff] }
 0x44b   :  { %v4894_v24 = vunpack.c.l.bf16 %v4893_v1  ;;  %v4895_v61 = vunpack.c.h.bf16 %v4893_v1 }
 0x44e   :  { %1555 = vperm.xlu1 %2991, %v1377_v27  }
 0x452   :  { %1580 = vperm.xlu1 %2991, %v1382_v50  }
 0x456   :  { %1926 = vrot.lane.b32.xlu1 %v123_v33, %s3118_s7  ;;  %v4897_v33 = vunpack.c.l.bf16 %v4896_v22  ;;  %v4905_v22 = vld [vmem:[#allocation10_spill] sm:$0xff] }
 0x46d   :  { %v1386_v49 = vpop.permute.xlu1 %1385  ;;  %v4242_v39 = vpop.permute.xlu0 %1460 }
 0x46e   :  { %v1583_v43 = vmul.f32 %v4882_v14, %v1386_v49 }
 0x471   :  { %v1391_v46 = vpop.permute.xlu1 %1390  ;;  %v1426_v0 = vpop.permute.xlu0 %1425 }
 0x472   :  { %v1584_v15 = vmul.f32 %v4883_v21, %v1391_v46  ;;  %v4898_v46 = vld [vmem:[#allocation4_spill] sm:$0xff] }
 0x473   :  { %v4899_v8 = vunpack.c.l.bf16 %v4898_v46 }
 0x474   :  { %v1623_v13 = vadd.f32 %v1584_v15, %v1583_v43 }
 0x475   :  { %v1411_v57 = vpop.permute.xlu1 %1410  ;;  %v4260_v6 = vpop.permute.xlu0 %1510 }
 0x476   :  { %v1588_v48 = vmul.f32 %v1411_v57, %v4885_v29 }
 0x479   :  { %v1416_v54 = vpop.permute.xlu1 %1415  ;;  %v1406_v51 = vpop.permute.xlu0 %1405 }
 0x47a   :  { %v1589_v10 = vmul.f32 %v4887_v3, %v1416_v54  ;;  %v1587_v14 = vmul.f32 %v1406_v51, %v4899_v8  ;;  %v4901_v3 = vunpack.c.h.bf16 %v4886_v16 }
 0x47c   :  { %v1634_v63 = vadd.f32 %v1589_v10, %v1588_v48  ;;  %v1626_v4 = vsel %vm435_vm3, %v1587_v14, 0.0 }
 0x47d   :  { %v1436_v25 = vpop.permute.xlu1 %1435  ;;  %v1451_v36 = vpop.permute.xlu0 %1450 }
 0x47e   :  { %v1593_v59 = vmul.f32 %v4889_v11, %v1436_v25  ;;  %v1596_v44 = vmul.f32 %v4895_v61, %v1451_v36 }
 0x481   :  { %v1441_v9 = vpop.permute.xlu1 %1440  ;;  %v4268_v60 = vpop.permute.xlu0 %1535 }
 0x482   :  { %v1594_v19 = vmul.f32 %v4890_v31, %v1441_v9 }
 0x484   :  { %v1645_v38 = vadd.f32 %v1594_v19, %v1593_v59  ;;  %v4902_v19 = vunpack.c.h.bf16 %v4884_v62 }
 0x485   :  { %v1396_v41 = vpop.permute.xlu1 %1395  ;;  %v1456_v50 = vpop.permute.xlu0 %1455 }
 0x486   :  { %v1585_v47 = vmul.f32 %v4892_v40, %v1396_v41  ;;  %v1597_v12 = vmul.f32 %v1456_v50, %v4897_v33  ;;  %v1591_v51 = vmul.f32 %v1426_v0, %v4902_v19  ;;  %v4903_v40 = vld [vmem:[#allocation11_spill] sm:$0xff]  ;;  %v4906_v33 = vunpack.c.h.bf16 %v4905_v22 }
 0x488   :  { %v1624_v34 = vadd.f32 %v1623_v13, %v1585_v47  ;;  %v1648_v43 = vsel %vm435_vm3, %v1597_v12, 0.0  ;;  %v4900_v13 = vunpack.c.h.bf16 %v4891_v5  ;;  %v4904_v47 = vunpack.c.l.bf16 %v4903_v40 }
 0x489   :  { %v1421_v56 = vpop.permute.xlu1 %1420  ;;  %v4284_v31 = vpop.permute.xlu0 %1520 }
 0x48a   :  { %v1590_v10 = vmul.f32 %v4901_v3, %v1421_v56 }
 0x48c   :  { %v1635_v59 = vadd.f32 %v1634_v63, %v1590_v10  ;;  %v4912_v10 = vld [vmem:[#allocation18_spill] sm:$0xff] }
 0x48d   :  { %v1466_v42 = vpop.permute.xlu1 %1465 }
 0x48e   :  { %v1636_v36 = vadd.f32 %v1635_v59, %v1591_v51 }
 0x491   :  { %v1446_v52 = vpop.permute.xlu1 %1445 }
 0x492   :  { %v1595_v27 = vmul.f32 %v4894_v24, %v1446_v52  ;;  %v1566_v24 = vpop.permute.xlu0 %1565 }
 0x494   :  { %v1646_v28 = vadd.f32 %v1645_v38, %v1595_v27 }
 0x495   :  { %v1486_v37 = vpop.permute.xlu1 %1485 }
 0x496   :  { %v1647_v58 = vadd.f32 %v1646_v28, %v1596_v44  ;;  %v1501_v44 = vpop.permute.xlu0 %1500 }
 0x498   :  { %v1649_v15 = vadd.f32 %v1648_v43, %v1647_v58  ;;  %v4907_v43 = vunpack.c.l.bf16 %v4905_v22 }
 0x499   :  { %v1491_v49 = vpop.permute.xlu1 %1490 }
 0x49a   :  { %v1650_v29 = vrot.slane %v1649_v15, 4  ;;  %v1604_v12 = vmul.f32 %v4906_v33, %v1491_v49 }
 0x49c   :  { %v1651_v23 = vadd.f32 %v1650_v29, %v1649_v15  ;;  %v4908_v15 = vld [vmem:[#allocation13_spill] sm:$0xff] }
 0x49d   :  { %v1401_v21 = vpop.permute.xlu1 %1400 }
 0x49e   :  { %v1586_v18 = vmul.f32 %v4900_v13, %v1401_v21  ;;  %v1652_v5 = vrot.slane %v1651_v23, 2  ;;  %v1603_v21 = vmul.f32 %v4907_v43, %v1486_v37  ;;  %v4909_v13 = vunpack.c.l.bf16 %v4908_v15  ;;  %v1506_v37 = vpop.permute.xlu0 %1505 }
 0x4a0   :  { %v1625_v57 = vadd.f32 %v1624_v34, %v1586_v18  ;;  %v1653_v27 = vadd.f32 %v1652_v5, %v1651_v23  ;;  %v1667_v3 = vadd.f32 %v1604_v12, %v1603_v21 }
 0x4a1   :  { %v1471_v54 = vpop.permute.xlu1 %1470 }
 0x4a2   :  { %v1627_v48 = vadd.f32 %v1626_v4, %v1625_v57  ;;  %v1654_v62 = vrot.slane %v1653_v27, 1  ;;  %v4910_v57 = vld [vmem:[#allocation12_spill] sm:$0xff] }
 0x4a3   :  { %v4911_v4 = vunpack.c.l.bf16 %v4910_v57 }
 0x4a4   :  { %v1628_v25 = vrot.slane %v1627_v48, 4  ;;  %v1655_v14 = vadd.f32 %v1654_v62, %v1653_v27  ;;  %v4920_v62 = vld [vmem:[#allocation20_spill] sm:$0xff] }
 0x4a5   :  { %v1516_v9 = vpop.permute.xlu1 %1515  ;;  %v1599_v29 = vmul.f32 %v4911_v4, %v1466_v42 }
 0x4a6   :  { %v1629_v11 = vadd.f32 %v1628_v25, %v1627_v48  ;;  %v4913_v25 = vunpack.c.l.bf16 %v4912_v10 }
 0x4a8   :  { %v1630_v38 = vrot.slane %v1629_v11, 2  ;;  %v1598_v23 = vmul.f32 %v4242_v39, %v4913_v25 }
 0x4a9   :  { %v1431_v41 = vpop.permute.xlu1 %1430 }
 0x4aa   :  { %v1592_v34 = vmul.f32 %v1431_v41, %v4904_v47  ;;  %v1631_v56 = vadd.f32 %v1630_v38, %v1629_v11  ;;  %v4914_v11 = vunpack.c.h.bf16 %v4910_v57  ;;  %v1774_v38 = vpack.c.bf16 %v1655_v14, %v1655_v14  ;;  %v4915_v47 = vld [vmem:[#allocation14_spill] sm:$0xff] }
 0x4ab   :  { %v1656_v5 = vadd.f32 %v1599_v29, %v1598_v23  ;;  %v4924_v57 = vunpack.c.h.bf16 %v4915_v47 }
 0x4ac   :  { %v1637_v16 = vsel %vm435_vm3, %v1592_v34, 0.0  ;;  %v1632_v50 = vrot.slane %v1631_v56, 1  ;;  %v1600_v59 = vmul.f32 %v4914_v11, %v1471_v54  ;;  %v4916_v34 = vunpack.c.l.bf16 %v4915_v47 }
 0x4ad   :  { %v1638_v52 = vadd.f32 %v1637_v16, %v1636_v36  ;;  %v1496_v1 = vpop.permute.xlu1 %1495  ;;  %v4917_v36 = vunpack.c.h.bf16 %v4908_v15  ;;  %v1608_v4 = vmul.f32 %v4260_v6, %v4924_v57  ;;  %v4931_v6 = vld [vmem:[#allocation22_spill] sm:$0xff] }
 0x4ae   :  { %v1633_v58 = vadd.f32 %v1632_v50, %v1631_v56  ;;  %v1605_v18 = vmul.f32 %v4909_v13, %v1496_v1  ;;  %v4918_v56 = vld [vmem:[#allocation16_spill] sm:$0xff]  ;;  %v1657_v27 = vadd.f32 %v1656_v5, %v1600_v59  ;;  %v1806_v50 = vunpack.c.l.b16 %v1774_v38  ;;  %v1571_v13 = vpop.permute.xlu0 %1570 }
 0x4af   :  { %v1639_v63 = vrot.slane %v1638_v52, 4  ;;  %v1606_v16 = vmul.f32 %v4917_v36, %v1501_v44  ;;  %v4932_v47 = vunpack.c.l.bf16 %v4931_v6 }
 0x4b0   :  { %v1772_v49 = vpack.c.bf16 %v1633_v58, %v1633_v58  ;;  %v1668_v41 = vadd.f32 %v1667_v3, %v1605_v18  ;;  %v4925_v3 = vld [vmem:[#allocation19_spill] sm:$0xff] }
 0x4b1   :  { %v1640_v28 = vadd.f32 %v1639_v63, %v1638_v52  ;;  %v1541_v61 = vpop.permute.xlu1 %1540  ;;  %v4919_v52 = vunpack.c.l.bf16 %v4918_v56  ;;  %v4926_v25 = vunpack.c.h.bf16 %v4925_v3  ;;  %v4927_v59 = vunpack.c.l.bf16 %v4925_v3 }
 0x4b2   :  { %v1804_v1 = vunpack.c.l.b16 %v1772_v49  ;;  %v1551_v36 = vpop.permute.xlu0 %1550 }
 0x4b3   :  { %v1641_v0 = vrot.slane %v1640_v28, 2  ;;  %v1607_v39 = vmul.f32 %v1506_v37, %v4919_v52  ;;  %v1614_v23 = vmul.f32 %v4926_v25, %v1541_v61 }
 0x4b5   :  { %v1642_v46 = vadd.f32 %v1641_v0, %v1640_v28  ;;  %v1476_v8 = vpop.permute.xlu1 %1475  ;;  %v1669_v28 = vadd.f32 %v1668_v41, %v1606_v16  ;;  %v4921_v0 = vunpack.c.l.bf16 %v4920_v62  ;;  %v4929_v41 = vld [vmem:[#allocation23_spill] sm:$0xff]  ;;  %v4934_v16 = vld [vmem:[#allocation25_spill] sm:$0xff] }
 0x4b6   :  { %v1601_v42 = vmul.f32 %v1476_v8, %v4916_v34  ;;  %v4922_v8 = vld [vmem:[#allocation17_spill] sm:$0xff]  ;;  %v4930_v5 = vunpack.c.l.bf16 %v4929_v41  ;;  %v4935_v56 = vunpack.c.l.bf16 %v4934_v16 }
 0x4b7   :  { %v1643_v48 = vrot.slane %v1642_v46, 1  ;;  %v4923_v14 = vunpack.c.l.bf16 %v4922_v8  ;;  %v4928_v38 = vunpack.c.h.bf16 %v4922_v8  ;;  %v1576_v8 = vpop.permute.xlu0 %1575 }
 0x4b8   :  { %v1658_v12 = vadd.f32 %v1657_v27, %v1601_v42  ;;  %v4933_v42 = vunpack.c.h.bf16 %v4912_v10  ;;  %v1619_v52 = vmul.f32 %v4935_v56, %v1566_v24  ;;  %v4938_v10 = vunpack.c.h.bf16 %v4934_v16 }
 0x4b9   :  { %v1644_v19 = vadd.f32 %v1643_v48, %v1642_v46  ;;  %v1561_v51 = vpop.permute.xlu1 %1560  ;;  %v1670_v46 = vsel %vm435_vm3, %v1607_v39, 0.0  ;;  %v1609_v43 = vmul.f32 %v4923_v14, %v1516_v9  ;;  %v1610_v37 = vmul.f32 %v4928_v38, %v4284_v31 }
 0x4ba   :  { %v1671_v18 = vadd.f32 %v1670_v46, %v1669_v28 }
 0x4bb   :  { %v1773_v40 = vpack.c.bf16 %v1644_v19, %v1644_v19  ;;  %v1678_v48 = vadd.f32 %v1609_v43, %v1608_v4  ;;  %v1613_v19 = vmul.f32 %v4927_v59, %v4268_v60  ;;  %v4940_v43 = vld [vmem:[#allocation24_spill] sm:$0xff]  ;;  %v4943_v59 = vld [vmem:[#allocation26_spill] sm:$0xff] }
 0x4bc   :  { %v1672_v9 = vrot.slane %v1671_v18, 4 }
 0x4bd   :  { %v1805_v63 = vunpack.c.l.b16 %v1773_v40  ;;  %v1481_v54 = vpop.permute.xlu1 %1480  ;;  %v1618_v40 = vmul.f32 %v1561_v51, %v4930_v5  ;;  %v1689_v39 = vadd.f32 %v1614_v23, %v1613_v19  ;;  %v4944_v19 = vunpack.c.l.bf16 %v4943_v59 }
 0x4be   :  { %v1602_v22 = vmul.f32 %v1481_v54, %v4921_v0  ;;  %v4936_v54 = vld [vmem:[#allocation21_spill] sm:$0xff] }
 0x4bf   :  { %v1812_v33 = vsel %vm758_vm8, %v1805_v63, %v1804_v1  ;;  %v1679_v1 = vadd.f32 %v1678_v48, %v1610_v37  ;;  %v1673_v63 = vadd.f32 %v1672_v9, %v1671_v18  ;;  %v4937_v31 = vunpack.c.l.bf16 %v4936_v54 }
 0x4c0   :  { %v4314_v58 = vsel %vm760_vm9, %v1806_v50, %v1812_v33  ;;  %v1659_v44 = vsel %vm435_vm3, %v1602_v22, 0.0  ;;  %v1700_v28 = vadd.f32 %v1619_v52, %v1618_v40  ;;  %v1620_v22 = vmul.f32 %v4938_v10, %v1571_v13 }
 0x4c1   :  { %v1660_v21 = vadd.f32 %v1659_v44, %v1658_v12  ;;  %v1546_v15 = vpop.permute.xlu1 %1545  ;;  %v4939_v33 = vunpack.c.h.bf16 %v4931_v6  ;;  %v1674_v14 = vrot.slane %v1673_v63, 2  ;;  %v4942_v48 = vunpack.c.h.bf16 %v4929_v41 }
 0x4c2   :  { %v1615_v34 = vmul.f32 %v4932_v47, %v1546_v15  ;;  %v1701_v18 = vadd.f32 %v1700_v28, %v1620_v22 }
 0x4c3   :  { %v1661_v29 = vrot.slane %v1660_v21, 4  ;;  %v1616_v12 = vmul.f32 %v4939_v33, %v1551_v36  ;;  %v1621_v3 = vmul.f32 %v1576_v8, %v4942_v48 }
 0x4c4   :  { %v1690_v51 = vadd.f32 %v1689_v39, %v1615_v34 }
 0x4c5   :  { %v1662_v49 = vadd.f32 %v1661_v29, %v1660_v21  ;;  %v1526_v11 = vpop.permute.xlu1 %1525  ;;  %v4941_v21 = vunpack.c.l.bf16 %v4940_v43  ;;  %v1702_v5 = vadd.f32 %v1701_v18, %v1621_v3 }
 0x4c6   :  { %v1611_v61 = vmul.f32 %v1526_v11, %v4933_v42  ;;  %v1691_v57 = vadd.f32 %v1690_v51, %v1616_v12 }
 0x4c7   :  { %v1663_v60 = vrot.slane %v1662_v49, 2 }
 0x4c8   :  { %v1680_v62 = vadd.f32 %v1679_v1, %v1611_v61 }
 0x4c9   :  { %v1531_v27 = vpop.permute.xlu1 %1530  ;;  %v1664_v24 = vadd.f32 %v1663_v60, %v1662_v49  ;;  %v1675_v49 = vadd.f32 %v1674_v14, %v1673_v63 }
 0x4ca   :  { %v1612_v50 = vmul.f32 %v1531_v27, %v4937_v31 }
 0x4cb   :  { %v1665_v13 = vrot.slane %v1664_v24, 1  ;;  %v1676_v61 = vrot.slane %v1675_v49, 1 }
 0x4cc   :  { %v1681_v0 = vsel %vm435_vm3, %v1612_v50, 0.0 }
 0x4cd   :  { %v1682_v44 = vadd.f32 %v1681_v0, %v1680_v62  ;;  %v1556_v46 = vpop.permute.xlu1 %1555  ;;  %v1666_v6 = vadd.f32 %v1665_v13, %v1664_v24  ;;  %v1677_v1 = vadd.f32 %v1676_v61, %v1675_v49 }
 0x4ce   :  { %v1617_v15 = vmul.f32 %v1556_v46, %v4941_v21 }
 0x4cf   :  { %v1683_v4 = vrot.slane %v1682_v44, 4  ;;  %v1775_v56 = vpack.c.bf16 %v1666_v6, %v1666_v6  ;;  %v1776_v51 = vpack.c.bf16 %v1677_v1, %v1677_v1  ;;  %v3010_v6 = vld [vmem:[%s4636_s13] sm:$0xff]  }
 0x4d0   :  { %v1692_v29 = vsel %vm435_vm3, %v1617_v15, 0.0  ;;  %2961 = vmatpush3.bf16.msra.mxu0 %v3010_v6  ;;  %v4393_v1 = vld [vmem:[%s4637_s5] sm:$0xff]  }
 0x4d1   :  { %v1684_v25 = vadd.f32 %v1683_v4, %v1682_v44  ;;  %v1693_v23 = vadd.f32 %v1692_v29, %v1691_v57  ;;  %v1581_v11 = vpop.permute.xlu1 %1580  ;;  %v1807_v54 = vunpack.c.l.b16 %v1775_v56  ;;  %v1808_v12 = vunpack.c.l.b16 %v1776_v51  ;;  %v4945_v57 = vld [vmem:[#allocation31_spill] sm:$0xff]  ;;  %2962 = vmatprep.subr.bf16.mxu0 %v4880_v32 }
 0x4d2   :  { %v1622_v9 = vmul.f32 %v1581_v11, %v4944_v19  ;;  %v2868_v51 = vunpack.c.l.bf16 %v4393_v1 }
 0x4d3   :  { %v1685_v38 = vrot.slane %v1684_v25, 2  ;;  %v1694_v37 = vrot.slane %v1693_v23, 4  ;;  %v1814_v10 = vsel %vm762_vm10, %v1807_v54, %v4314_v58  ;;  %v2775_v58 = vld [vmem:[%s4635_s12] ss:$0 sm:$0xff] }
 0x4d4   :  { %v1703_v40 = vsel %vm435_vm3, %v1622_v9, 0.0  ;;  %v1815_v46 = vsel %vm764_vm11, %v1808_v12, %v1814_v10 }
 0x4d5   :  { %v1686_v47 = vadd.f32 %v1685_v38, %v1684_v25  ;;  %v1695_v34 = vadd.f32 %v1694_v37, %v1693_v23  ;;  %v1704_v42 = vadd.f32 %v1703_v40, %v1702_v5  ;;  %v1927_v38 = vpop.permute.xlu1 %1926 }
 0x4d7   :  { %v1687_v41 = vrot.slane %v1686_v47, 1  ;;  %v1696_v36 = vrot.slane %v1695_v34, 2  ;;  %v1705_v16 = vrot.slane %v1704_v42, 4 }
 0x4d9   :  { %v1688_v52 = vadd.f32 %v1687_v41, %v1686_v47  ;;  %v1697_v39 = vadd.f32 %v1696_v36, %v1695_v34  ;;  %v1706_v60 = vadd.f32 %v1705_v16, %v1704_v42  ;;  %v3011_v47 = vld [vmem:[%s4636_s13 + $0x8] sm:$0xff]  }
 0x4da   :  { %2963 = vmatpush3.bf16.msra.mxu0 %v3011_v47 }
 0x4db   :  { %v1698_v27 = vrot.slane %v1697_v39, 1  ;;  %v1707_v63 = vrot.slane %v1706_v60, 2  ;;  %v1777_v31 = vpack.c.bf16 %v1688_v52, %v1688_v52  ;;  %2968 = vmatprep.subr.bf16.mxu0 %v4880_v32  ;;  %v4946_v52 = vld [vmem:[#allocation2_spill] sm:$0xff] }
 0x4dd   :  { %v1699_v50 = vadd.f32 %v1698_v27, %v1697_v39  ;;  %v1708_v28 = vadd.f32 %v1707_v63, %v1706_v60  ;;  %v1809_v22 = vunpack.c.l.b16 %v1777_v31 }
 0x4df   :  { %v1778_v62 = vpack.c.bf16 %v1699_v50, %v1699_v50  ;;  %v1709_v0 = vrot.slane %v1708_v28, 1  ;;  %v1816_v14 = vsel %vm766_vm12, %v1809_v22, %v1815_v46  ;;  %v2869_v22 = vunpack.c.h.bf16 %v4393_v1  ;;  %v4412_v46 = vld [vmem:[%s4637_s5 + $0x10] sm:$0xff]  }
 0x4e1   :  { %v1710_v33 = vadd.f32 %v1709_v0, %v1708_v28  ;;  %v1810_v24 = vunpack.c.l.b16 %v1778_v62  ;;  %v4400_v28 = vld [vmem:[%s4637_s5 + $0x8] sm:$0xff]  }
 0x4e3   :  { %v1779_v44 = vpack.c.bf16 %v1710_v33, %v1710_v33  ;;  %v1817_v43 = vsel %vm768_vm13, %v1810_v24, %v1816_v14  ;;  %v2873_v24 = vunpack.c.h.bf16 %v4400_v28 }
 0x4e5   :  { %v1811_v8 = vunpack.c.l.b16 %v1779_v44  ;;  %v2872_v44 = vunpack.c.l.bf16 %v4400_v28 }
 0x4e7   :  { %v1818_v21 = vsel %vm770_vm14, %v1811_v8, %v1817_v43 }
 0x4e8   :  { %v1819_v15 = vpack.c.b16 %v1818_v21, %v1818_v21 }
 0x4ea   :  { %2957 = vmatmul.mubr.bf16.vlgmr.msra.gmra.mrb[4].mxu1 %v1819_v15 }
 0x5bd   :  { %v1903_v18 = vpop.f32.mrb[4].mxu1 }
 0x5be   :  { %v1909_v4 = vadd.f32 %v1903_v18, %v4945_v57  ;;  %v2958_v29 = vpop.f32.mrb[5].mxu1  ;;  %v2877_v57 = vunpack.c.h.bf16 %v4412_v46 }
 0x5bf   :  { %v1906_v48 = vpop.f32.mrb[6].mxu1 }
 0x5c0   :  { %v1917_v3 = vadd.f32 %v2775_v58, %v1909_v4  ;;  %v2959_v13 = vpop.f32.mrb[7].mxu1  ;;  %v2876_v4 = vunpack.c.l.bf16 %v4412_v46 }
 0x5c2   :  { %3100 = vtanh.f32 %v1917_v3  ;;  %v2776_v23 = vmul.f32 -1.442695, %v1917_v3 }
 0x5c4   :  { %3102 = vpow2.f32 %v2776_v23 }
 0x5cc   :  { %v3101_v25 = vpop.eup %3100 }
 0x5cd   :  { %1931 = vrot.lane.b32.xlu0 %v3101_v25, %s3119_s0 }
 0x5ce   :  { %v3103_v11 = vpop.eup %3102 }
 0x5cf   :  { %v1921_v49 = vadd.f32 1.0, %v3103_v11 }
 0x5d1   :  { %3104 = vrcp.f32 %v1921_v49 }
 0x5db   :  { %v3105_v59 = vpop.eup %3104 }
 0x5dc   :  { %v1929_v37 = vmul.f32 %v3105_v59, %v1927_v38 }
 0x63f   :  { %v1932_v19 = vpop.permute.xlu0 %1931 }
 0x640   :  { %v1934_v9 = vmul.f32 %v3105_v59, %v1932_v19 }
 0x642   :  { %1936 = vrot.lane.b32.xlu0 %v1934_v9, %s3118_s7 }
 0x6b4   :  { %v1937_v5 = vpop.permute.xlu0 %1936 }
 0x6b5   :  { %v4365_v40 = vadd.f32 %v1937_v5, %v1929_v37 }
 0x6b7   :  { %3106 = vtanh.f32 %v4365_v40 }
 0x6c1   :  { %v3107_v34 = vpop.eup %3106 }
 0x6c2   :  { %1942 = vrot.lane.b32.xlu1 %v3107_v34, %s3119_s0 }
 0x734   :  { %v1943_v42 = vpop.permute.xlu1 %1942 }
 0x735   :  { %v4376_v61 = vmul.f32 %v3105_v59, %v1943_v42  ;;  %v4435_v59 = vld [vmem:[%s4637_s5 + $0x18] sm:$0xff]  }
 0x736   :  { %v2881_v38 = vunpack.c.h.bf16 %v4435_v59  ;;  %v2880_v47 = vunpack.c.l.bf16 %v4435_v59 }
 0x737   :  { %v1946_v41 = vpack.c.bf16 %v4376_v61, %v4376_v61 }
 0x739   :  { %1952 = vrot.lane.b32.xlu0 %v1946_v41, %s3118_s7 }
 0x7ab   :  { %v1953_v36 = vpop.permute.xlu0 %1952 }
 0x7ac   :  { %2965 = vmatmul.mubr.msk.bf16.vlgmr.msra.gmra.mrb[8].mxu0 %vm212_vm2, %v1953_v36 }
 0x7ad   :  { %2972 = vmatprep.mubr.msk.bf16.mxu0 %vm3115_vm0, %v4880_v32 }
 0x87f   :  { %v4384_v16 = vpop.f32.mrb[8].mxu0 }
 0x880   :  { %v2010_v56 = vcombine.high %v4384_v16, %v4384_v16  ;;  %v2017_v39 = vrot.slane %v4384_v16, %v4946_v52  ;;  %v2966_v60 = vpop.f32.mrb[9].mxu0 }
 0x881   :  { %v2006_v27 = vpop.f32.mrb[10].mxu0 }
 0x882   :  { %v2024_v63 = vrot.slane %v2010_v56, %v4946_v52  ;;  %v2025_v54 = vcombine.high %v2017_v39, %v2017_v39  ;;  %v2033_v31 = vrot.slane %v2017_v39, %v4946_v52  ;;  %v2967_v50 = vpop.f32.mrb[11].mxu0 }
 0x884   :  { %v2026_v62 = vcombine.high %v2024_v63, %v2024_v63  ;;  %v2047_v0 = vrot.slane %v2025_v54, %v4946_v52  ;;  %v2055_v10 = vcombine.high %v2033_v31, %v2033_v31  ;;  %v2040_v33 = vrot.slane %v2024_v63, %v4946_v52 }
 0x885   :  { %v2070_v12 = vrot.slane %v2033_v31, %v3279_v30 }
 0x886   :  { %v2074_v8 = vrot.slane %v2047_v0, %v3279_v30  ;;  %v2057_v14 = vcombine.high %v2047_v0, %v2047_v0  ;;  %v2078_v43 = vrot.slane %v2055_v10, %v3279_v30  ;;  %v2054_v21 = vrot.slane %v2026_v62, %v4946_v52 }
 0x887   :  { %v2107_v15 = vmul.f32 %v2868_v51, %v2070_v12  ;;  %v2086_v3 = vrot.slane %v2040_v33, %v3279_v30  ;;  %v2056_v49 = vcombine.high %v2040_v33, %v2040_v33 }
 0x888   :  { %v2108_v18 = vmul.f32 %v2869_v22, %v2074_v8  ;;  %v2082_v58 = vrot.slane %v2057_v14, %v3279_v30  ;;  %v2090_v48 = vrot.slane %v2054_v21, %v3279_v30  ;;  %v2058_v13 = vcombine.high %v2054_v21, %v2054_v21 }
 0x889   :  { %v2115_v29 = vsel %vm212_vm2, %v2107_v15, 0.0  ;;  %v2109_v11 = vmul.f32 %v2872_v44, %v2078_v43  ;;  %v2111_v6 = vmul.f32 %v2876_v4, %v2086_v3  ;;  %v2094_v34 = vrot.slane %v2056_v49, %v3279_v30 }
 0x88a   :  { %2116 = vadd.xlane.f32.xlu1 %v2115_v29  ;;  %v2118_v25 = vsel %vm212_vm2, %v2108_v18, 0.0  ;;  %v2110_v23 = vmul.f32 %v2873_v24, %v2082_v58  ;;  %v2112_v9 = vmul.f32 %v2877_v57, %v2090_v48  ;;  %v2098_v37 = vrot.slane %v2058_v13, %v3279_v30  ;;  %v124_v58 = vld [vmem:[%s4638_s6] sm:$0xff]  ;;  %s3120_s6 = smov 96  }
 0x88b   :  { %2119 = vadd.xlane.f32.xlu0 %v2118_v25  ;;  %v2121_v5 = vsel %vm212_vm2, %v2109_v11, 0.0  ;;  %v2127_v36 = vsel %vm212_vm2, %v2111_v6, 0.0  ;;  %v2113_v56 = vmul.f32 %v2880_v47, %v2094_v34  ;;  %vm2139_vm3 = vcmp.gt.f32.partialorder %v124_v58, 0.5 }
 0x88c   :  { %v2124_v19 = vsel %vm212_vm2, %v2110_v23, 0.0  ;;  %v2130_v42 = vsel %vm212_vm2, %v2112_v9, 0.0  ;;  %v2114_v41 = vmul.f32 %v2881_v38, %v2098_v37 }
 0x88d   :  { %v2133_v60 = vsel %vm212_vm2, %v2113_v56, 0.0 }
 0x88e   :  { %2125 = vadd.xlane.f32.xlu1 %v2124_v19  ;;  %v2136_v39 = vsel %vm212_vm2, %v2114_v41, 0.0 }
 0x88f   :  { %2122 = vadd.xlane.f32.xlu0 %v2121_v5 }
 0x892   :  { %2131 = vadd.xlane.f32.xlu1 %v2130_v42 }
 0x893   :  { %2128 = vadd.xlane.f32.xlu0 %v2127_v36 }
 0x896   :  { %2137 = vadd.xlane.f32.xlu1 %v2136_v39 }
 0x897   :  { %2134 = vadd.xlane.f32.xlu0 %v2133_v60 }
 0x917   :  { %v2117_v27 = vpop.xlane.xlu1 %2116 }
 0x918   :  { %v2120_v63 = vpop.xlane.xlu0 %2119  ;;  %v2151_v50 = vrot.slane %v2117_v27, %v4847_v17 }
 0x919   :  { %v2155_v54 = vrot.slane %v2120_v63, %v4847_v17 }
 0x91b   :  { %v2126_v31 = vpop.xlane.xlu1 %2125  ;;  %v2180_v10 = vsel %vm758_vm8, %v2155_v54, %v2151_v50 }
 0x91c   :  { %v2123_v62 = vpop.xlane.xlu0 %2122  ;;  %v2163_v8 = vrot.slane %v2126_v31, %v4847_v17 }
 0x91d   :  { %v2159_v0 = vrot.slane %v2123_v62, %v4847_v17 }
 0x91f   :  { %v2181_v33 = vsel %vm760_vm9, %v2159_v0, %v2180_v10  ;;  %v2132_v12 = vpop.xlane.xlu1 %2131 }
 0x920   :  { %v2129_v14 = vpop.xlane.xlu0 %2128  ;;  %v2182_v21 = vsel %vm762_vm10, %v2163_v8, %v2181_v33  ;;  %v2171_v29 = vrot.slane %v2132_v12, %v4847_v17 }
 0x921   :  { %v2167_v43 = vrot.slane %v2129_v14, %v4847_v17 }
 0x923   :  { %v2183_v15 = vsel %vm764_vm11, %v2167_v43, %v2182_v21  ;;  %v2138_v18 = vpop.xlane.xlu1 %2137 }
 0x924   :  { %v2135_v48 = vpop.xlane.xlu0 %2134  ;;  %v2179_v13 = vrot.slane %v2138_v18, %v4847_v17  ;;  %v2184_v25 = vsel %vm766_vm12, %v2171_v29, %v2183_v15 }
 0x925   :  { %v2175_v3 = vrot.slane %v2135_v48, %v4847_v17 }
 0x927   :  { %v2185_v23 = vsel %vm768_vm13, %v2175_v3, %v2184_v25 }
 0x928   :  { %v2186_v11 = vsel %vm770_vm14, %v2179_v13, %v2185_v23 }
 0x929   :  { %v2188_v49 = vsel %vm2139_vm3, -1e+30, %v2186_v11 }
 0x92a   :  { %v2190_v19 = vsel %vm2189_vm5, %v2188_v49, -inf }
 0x92b   :  { %2191 = vmax.xlane.f32.xlu0 %v2190_v19 }
 0x9b8   :  { %v2192_v9 = vpop.xlane.xlu0 %2191 }
 0x9b9   :  { %v2193_v37 = vsub.f32 %v2188_v49, %v2192_v9 }
 0x9bb   :  { %v2194_v5 = vmul.f32 1.442695, %v2193_v37 }
 0x9bd   :  { %3108 = vpow2.f32 %v2194_v5 }
 0x9c7   :  { %v3109_v6 = vpop.eup %3108 }
 0x9c8   :  { %v2196_v34 = vsel %vm2189_vm5, %v3109_v6, 0.0 }
 0x9c9   :  { %2197 = vadd.xlane.f32.xlu1 %v2196_v34 }
 0xa56   :  { %v2198_v42 = vpop.xlane.xlu1 %2197 }
 0xa57   :  { %3110 = vrcp.f32 %v2198_v42 }
 0xa61   :  { %v3111_v41 = vpop.eup %3110 }
 0xa62   :  { %v2200_v36 = vmul.f32 %v3111_v41, %v3109_v6 }
 0xa64   :  { %v2211_v56 = vrot.slane %v2200_v36, %v3777_v53  ;;  %v2204_v39 = vrot.slane %v2200_v36, %v3279_v30  ;;  %v2218_v60 = vrot.slane %v2200_v36, %v3780_v2  ;;  %v2225_v27 = vrot.slane %v2200_v36, %v3783_v35  ;;  %v3012_v2 = vld [vmem:[%s4639_s14] sm:$0xff]   ;;  %v3013_v35 = vld [vmem:[%s4639_s14 + $0x8] sm:$0xff]  }
 0xa65   :  { %v2232_v63 = vrot.slane %v2200_v36, %v4857_v26  ;;  %v2239_v54 = vrot.slane %v2200_v36, %v3836_v20  ;;  %v2246_v31 = vrot.slane %v2200_v36, %v3873_v45  ;;  %v2253_v53 = vrot.slane %v2200_v36, %v4854_v7  ;;  %2969 = vmatpush3.bf16.msra.mxu0 %v3012_v2 }
 0xa66   :  { %2213 = vbcast.lane.b32.xlu1 %v2211_v56, 256  ;;  %2206 = vbcast.lane.b32.xlu0 %v2204_v39, 256 }
 0xa67   :  { %2970 = vmatprep.subr.bf16.mxu0 %v4880_v32 }
 0xa69   :  { %2971 = vmatpush3.bf16.msra.mxu0 %v3013_v35 }
 0xa6a   :  { %2220 = vbcast.lane.b32.xlu1 %v2218_v60, 256  ;;  %2227 = vbcast.lane.b32.xlu0 %v2225_v27, 256 }
 0xa6b   :  { %2976 = vmatprep.subr.bf16.mxu0 %v4880_v32 }
 0xa6e   :  { %2234 = vbcast.lane.b32.xlu1 %v2232_v63, 256  ;;  %2241 = vbcast.lane.b32.xlu0 %v2239_v54, 256 }
 0xa72   :  { %2248 = vbcast.lane.b32.xlu1 %v2246_v31, 256  ;;  %2255 = vbcast.lane.b32.xlu0 %v2253_v53, 256 }
 0xa76   :  { %2369 = vrot.lane.b32.xlu1 %v4384_v16, %s3120_s6 }
 0xad8   :  { %v2214_v20 = vpop.permute.xlu1 %2213  ;;  %v2207_v45 = vpop.permute.xlu0 %2206 }
 0xad9   :  { %v2258_v7 = vmul.f32 %v2869_v22, %v2214_v20  ;;  %v2257_v26 = vmul.f32 %v2868_v51, %v2207_v45 }
 0xadb   :  { %v2272_v16 = vsel %vm212_vm2, %v2258_v7, 0.0  ;;  %v2265_v50 = vsel %vm212_vm2, %v2257_v26, 0.0 }
 0xadc   :  { %v2273_v62 = vrot.slane %v2272_v16, 4  ;;  %v2266_v0 = vrot.slane %v2265_v50, 4  ;;  %v2221_v10 = vpop.permute.xlu1 %2220  ;;  %v2228_v33 = vpop.permute.xlu0 %2227 }
 0xadd   :  { %v2259_v12 = vmul.f32 %v2872_v44, %v2221_v10  ;;  %v2260_v8 = vmul.f32 %v2873_v24, %v2228_v33 }
 0xade   :  { %v2274_v14 = vadd.f32 %v2273_v62, %v2272_v16  ;;  %v2267_v43 = vadd.f32 %v2266_v0, %v2265_v50 }
 0xadf   :  { %v2279_v22 = vsel %vm212_vm2, %v2259_v12, 0.0  ;;  %v2286_v1 = vsel %vm212_vm2, %v2260_v8, 0.0 }
 0xae0   :  { %v2275_v51 = vrot.slane %v2274_v14, 2  ;;  %v2268_v21 = vrot.slane %v2267_v43, 2  ;;  %v2280_v15 = vrot.slane %v2279_v22, 4  ;;  %v2287_v18 = vrot.slane %v2286_v1, 4  ;;  %v2235_v58 = vpop.permute.xlu1 %2234  ;;  %v2242_v29 = vpop.permute.xlu0 %2241 }
 0xae1   :  { %v2261_v48 = vmul.f32 %v2876_v4, %v2235_v58  ;;  %v2262_v44 = vmul.f32 %v2877_v57, %v2242_v29 }
 0xae2   :  { %v2276_v28 = vadd.f32 %v2275_v51, %v2274_v14  ;;  %v2269_v24 = vadd.f32 %v2268_v21, %v2267_v43  ;;  %v2281_v3 = vadd.f32 %v2280_v15, %v2279_v22  ;;  %v2288_v13 = vadd.f32 %v2287_v18, %v2286_v1 }
 0xae3   :  { %v2293_v25 = vsel %vm212_vm2, %v2261_v48, 0.0  ;;  %v2300_v23 = vsel %vm212_vm2, %v2262_v44, 0.0 }
 0xae4   :  { %v2277_v11 = vrot.slane %v2276_v28, 1  ;;  %v2270_v49 = vrot.slane %v2269_v24, 1  ;;  %v2282_v19 = vrot.slane %v2281_v3, 2  ;;  %v2289_v9 = vrot.slane %v2288_v13, 2  ;;  %v2249_v37 = vpop.permute.xlu1 %2248  ;;  %v2256_v5 = vpop.permute.xlu0 %2255 }
 0xae5   :  { %v2294_v6 = vrot.slane %v2293_v25, 4  ;;  %v2301_v34 = vrot.slane %v2300_v23, 4  ;;  %v2263_v46 = vmul.f32 %v2880_v47, %v2249_v37  ;;  %v2264_v57 = vmul.f32 %v2881_v38, %v2256_v5 }
 0xae6   :  { %v2278_v4 = vadd.f32 %v2277_v11, %v2276_v28  ;;  %v2271_v42 = vadd.f32 %v2270_v49, %v2269_v24  ;;  %v2283_v41 = vadd.f32 %v2282_v19, %v2281_v3  ;;  %v2290_v36 = vadd.f32 %v2289_v9, %v2288_v13 }
 0xae7   :  { %v2295_v56 = vadd.f32 %v2294_v6, %v2293_v25  ;;  %v2302_v39 = vadd.f32 %v2301_v34, %v2300_v23  ;;  %v2307_v60 = vsel %vm212_vm2, %v2263_v46, 0.0  ;;  %v2314_v27 = vsel %vm212_vm2, %v2264_v57, 0.0  ;;  %v3014_v57 = vld [vmem:[%s4640_s15] sm:$0xff]  }
 0xae8   :  { %v2322_v63 = vpack.c.bf16 %v2278_v4, %v2278_v4  ;;  %v2321_v54 = vpack.c.bf16 %v2271_v42, %v2271_v42  ;;  %v2284_v31 = vrot.slane %v2283_v41, 1  ;;  %v2291_v53 = vrot.slane %v2290_v36, 1  ;;  %v3015_v4 = vld [vmem:[%s4640_s15 + $0x8] sm:$0xff]   ;;  %v2370_v42 = vpop.permute.xlu1 %2369 }
 0xae9   :  { %v2296_v2 = vrot.slane %v2295_v56, 2  ;;  %v2303_v35 = vrot.slane %v2302_v39, 2  ;;  %v2308_v47 = vrot.slane %v2307_v60, 4  ;;  %v2315_v20 = vrot.slane %v2314_v27, 4 }
 0xaea   :  { %v2285_v59 = vadd.f32 %v2284_v31, %v2283_v41  ;;  %v2292_v38 = vadd.f32 %v2291_v53, %v2290_v36  ;;  %v2342_v50 = vunpack.c.l.b16 %v2322_v63  ;;  %v2341_v62 = vunpack.c.l.b16 %v2321_v54 }
 0xaeb   :  { %v2297_v45 = vadd.f32 %v2296_v2, %v2295_v56  ;;  %v2304_v7 = vadd.f32 %v2303_v35, %v2302_v39  ;;  %v2309_v26 = vadd.f32 %v2308_v47, %v2307_v60  ;;  %v2316_v16 = vadd.f32 %v2315_v20, %v2314_v27  ;;  %v2835_v35 = vld [vmem:[%s4642_s2] sm:$0xff]  }
 0xaec   :  { %v2323_v0 = vpack.c.bf16 %v2285_v59, %v2285_v59  ;;  %v2324_v10 = vpack.c.bf16 %v2292_v38, %v2292_v38  ;;  %v2349_v15 = vsel %vm758_vm8, %v2342_v50, %v2341_v62  ;;  %v2893_v50 = vld [vmem:[%s4642_s2 + $0x8] sm:$0xff]  }
 0xaed   :  { %v2298_v33 = vrot.slane %v2297_v45, 1  ;;  %v2305_v12 = vrot.slane %v2304_v7, 1  ;;  %v2310_v8 = vrot.slane %v2309_v26, 2  ;;  %v2317_v14 = vrot.slane %v2316_v16, 2 }
 0xaee   :  { %v2343_v43 = vunpack.c.l.b16 %v2323_v0  ;;  %v2344_v18 = vunpack.c.l.b16 %v2324_v10 }
 0xaef   :  { %v2299_v22 = vadd.f32 %v2298_v33, %v2297_v45  ;;  %v2306_v1 = vadd.f32 %v2305_v12, %v2304_v7  ;;  %v2311_v51 = vadd.f32 %v2310_v8, %v2309_v26  ;;  %v2318_v21 = vadd.f32 %v2317_v14, %v2316_v16  ;;  %v2894_v16 = vld [vmem:[%s4642_s2 + $0x10] sm:$0xff]  }
 0xaf0   :  { %v2350_v58 = vsel %vm760_vm9, %v2343_v43, %v2349_v15  ;;  %v2837_v7 = vunpack.c.h.bf16 %v2835_v35  ;;  %v2836_v26 = vunpack.c.l.bf16 %v2835_v35  ;;  %v2844_v12 = vunpack.c.l.bf16 %v2894_v16 }
 0xaf1   :  { %v2325_v29 = vpack.c.bf16 %v2299_v22, %v2299_v22  ;;  %v2326_v48 = vpack.c.bf16 %v2306_v1, %v2306_v1  ;;  %v2312_v44 = vrot.slane %v2311_v51, 1  ;;  %v2319_v28 = vrot.slane %v2318_v21, 1 }
 0xaf2   :  { %v2351_v13 = vsel %vm762_vm10, %v2344_v18, %v2350_v58  ;;  %v2840_v8 = vunpack.c.l.bf16 %v2893_v50  ;;  %v2841_v15 = vunpack.c.h.bf16 %v2893_v50 }
 0xaf3   :  { %v2345_v24 = vunpack.c.l.b16 %v2325_v29  ;;  %v2313_v3 = vadd.f32 %v2312_v44, %v2311_v51  ;;  %v2346_v25 = vunpack.c.l.b16 %v2326_v48  ;;  %v2320_v23 = vadd.f32 %v2319_v28, %v2318_v21  ;;  %v2896_v51 = vld [vmem:[%s4642_s2 + $0x20] sm:$0xff]   ;;  %v2895_v28 = vld [vmem:[%s4642_s2 + $0x18] sm:$0xff]  }
 0xaf4   :  { %v2852_v18 = vunpack.c.l.bf16 %v2896_v51 }
 0xaf5   :  { %v2352_v11 = vsel %vm764_vm11, %v2345_v24, %v2351_v13  ;;  %v2327_v49 = vpack.c.bf16 %v2313_v3, %v2313_v3  ;;  %v2328_v19 = vpack.c.bf16 %v2320_v23, %v2320_v23  ;;  %v2845_v24 = vunpack.c.h.bf16 %v2894_v16 }
 0xaf6   :  { %v2353_v37 = vsel %vm766_vm12, %v2346_v25, %v2352_v11  ;;  %v2848_v3 = vunpack.c.l.bf16 %v2895_v28 }
 0xaf7   :  { %v2347_v9 = vunpack.c.l.b16 %v2327_v49  ;;  %v2348_v5 = vunpack.c.l.b16 %v2328_v19  ;;  %v2897_v49 = vld [vmem:[%s4642_s2 + $0x28] sm:$0xff]   ;;  %v2853_v19 = vunpack.c.h.bf16 %v2896_v51 }
 0xaf9   :  { %v2354_v6 = vsel %vm768_vm13, %v2347_v9, %v2353_v37  ;;  %v2856_v9 = vunpack.c.l.bf16 %v2897_v49 }
 0xafa   :  { %v2355_v34 = vsel %vm770_vm14, %v2348_v5, %v2354_v6 }
 0xafb   :  { %v2356_v46 = vpack.c.b16 %v2355_v34, %v2355_v34 }
 0xafd   :  { %2973 = vmatmul.mubr.msk.bf16.vlgmr.msra.gmra.mrb[12].mxu0 %vm212_vm2, %v2356_v46  ;;  %v2849_v46 = vunpack.c.h.bf16 %v2895_v28 }
 0xafe   :  { %2980 = vmatprep.mubr.msk.bf16.mxu0 %vm3115_vm0, %v4880_v32  ;;  %2977 = vmatpush3.bf16.msra.mxu0 %v3014_v57  ;;  %vm2738_vm0 = vcmask 1047680  }
 0xaff   :  { %2978 = vmatprep.subr.bf16.mxu0 %v4880_v32 }
 0xb02   :  { %2979 = vmatpush3.bf16.msra.mxu0 %v3015_v4 }
 0xbd0   :  { %v2409_v41 = vpop.f32.mrb[12].mxu0 }
 0xbd1   :  { %v2410_v36 = vadd.f32 %v2409_v41, %v2370_v42  ;;  %v2974_v56 = vpop.f32.mrb[13].mxu0 }
 0xbd2   :  { %v2412_v39 = vpop.f32.mrb[14].mxu0  ;;  %v2899_v56 = vld [vmem:[%s4642_s2 + $0x38] sm:$0xff]  }
 0xbd3   :  { %3112 = vtanh.f32 %v2410_v36  ;;  %v2975_v60 = vpop.f32.mrb[15].mxu0  ;;  %v2857_v39 = vunpack.c.h.bf16 %v2897_v49 }
 0xbdd   :  { %v3113_v27 = vpop.eup %3112 }
 0xbde   :  { %2640 = vst.msk [vmem:[%s4641_s19] sm:$0xff] %vm212_vm2, %v3113_v27  ;;  %v2416_v63 = vpack.c.bf16 %v3113_v27, %v3113_v27 }
 0xbe0   :  { %2981 = vmatmul.mubr.msk.bf16.vlgmr.msra.gmra.mrb[16].mxu0 %vm212_vm2, %v2416_v63  ;;  %v2864_v63 = vunpack.c.l.bf16 %v2899_v56 }
 0xcb3   :  { %v2470_v54 = vpop.f32.mrb[16].mxu0 }
 0xcb4   :  { %v2477_v31 = vcombine.high %v2470_v54, %v2470_v54  ;;  %v2484_v53 = vrot.slane %v2470_v54, %v4946_v52  ;;  %v2982_v2 = vpop.f32.mrb[17].mxu0 }
 0xcb5   :  { %v2473_v47 = vpop.f32.mrb[18].mxu0 }
 0xcb6   :  { %v2491_v20 = vrot.slane %v2477_v31, %v4946_v52  ;;  %v2492_v59 = vcombine.high %v2484_v53, %v2484_v53  ;;  %v2500_v38 = vrot.slane %v2484_v53, %v4946_v52  ;;  %v2983_v45 = vpop.f32.mrb[19].mxu0  ;;  %v2865_v47 = vunpack.c.h.bf16 %v2899_v56 }
 0xcb8   :  { %v2514_v62 = vrot.slane %v2492_v59, %v4946_v52  ;;  %v2522_v0 = vcombine.high %v2500_v38, %v2500_v38  ;;  %v2545_v10 = vrot.slane %v2500_v38, %v3279_v30  ;;  %v2507_v33 = vrot.slane %v2491_v20, %v4946_v52 }
 0xcb9   :  { %v2493_v21 = vcombine.high %v2491_v20, %v2491_v20 }
 0xcba   :  { %v2583_v14 = vmul.f32 %v2837_v7, %v2545_v10  ;;  %v2582_v43 = vmul.f32 %v2836_v26, %v2545_v10  ;;  %v2553_v22 = vrot.slane %v2522_v0, %v3279_v30  ;;  %v2549_v1 = vrot.slane %v2514_v62, %v3279_v30 }
 0xcbb   :  { %v2524_v58 = vcombine.high %v2514_v62, %v2514_v62  ;;  %v2561_v44 = vrot.slane %v2507_v33, %v3279_v30  ;;  %v2521_v13 = vrot.slane %v2493_v21, %v4946_v52  ;;  %v2523_v37 = vcombine.high %v2507_v33, %v2507_v33  ;;  %v2898_v52 = vld [vmem:[%s4642_s2 + $0x30] sm:$0xff]  }
 0xcbc   :  { %2600 = vadd.xlane.f32.xlu1 %v2583_v14  ;;  %2598 = vadd.xlane.f32.xlu0 %v2582_v43  ;;  %v2586_v29 = vmul.f32 %v2844_v12, %v2553_v22  ;;  %v2584_v48 = vmul.f32 %v2840_v8, %v2549_v1  ;;  %v2585_v25 = vmul.f32 %v2841_v15, %v2549_v1  ;;  %v2860_v57 = vunpack.c.l.bf16 %v2898_v52 }
 0xcbd   :  { %v2590_v23 = vmul.f32 %v2852_v18, %v2561_v44  ;;  %v2557_v11 = vrot.slane %v2524_v58, %v3279_v30  ;;  %v2587_v5 = vmul.f32 %v2845_v24, %v2553_v22  ;;  %v2565_v34 = vrot.slane %v2521_v13, %v3279_v30 }
 0xcbe   :  { %v2591_v4 = vmul.f32 %v2853_v19, %v2561_v44  ;;  %v2569_v41 = vrot.slane %v2523_v37, %v3279_v30  ;;  %v2525_v36 = vcombine.high %v2521_v13, %v2521_v13  ;;  %v2861_v2 = vunpack.c.h.bf16 %v2898_v52 }
 0xcbf   :  { %v2588_v6 = vmul.f32 %v2848_v3, %v2557_v11  ;;  %v2592_v42 = vmul.f32 %v2856_v9, %v2565_v34  ;;  %v2589_v60 = vmul.f32 %v2849_v46, %v2557_v11  ;;  %v2593_v31 = vmul.f32 %v2857_v39, %v2565_v34 }
 0xcc0   :  { %2606 = vadd.xlane.f32.xlu1 %v2586_v29  ;;  %2602 = vadd.xlane.f32.xlu0 %v2584_v48  ;;  %v2594_v27 = vmul.f32 %v2860_v57, %v2569_v41  ;;  %v2573_v54 = vrot.slane %v2525_v36, %v3279_v30  ;;  %v2595_v35 = vmul.f32 %v2861_v2, %v2569_v41 }
 0xcc2   :  { %v2596_v53 = vmul.f32 %v2864_v63, %v2573_v54  ;;  %v2597_v20 = vmul.f32 %v2865_v47, %v2573_v54 }
 0xcc4   :  { %2604 = vadd.xlane.f32.xlu0 %v2585_v25  ;;  %2614 = vadd.xlane.f32.xlu1 %v2590_v23 }
 0xcc8   :  { %2608 = vadd.xlane.f32.xlu0 %v2587_v5  ;;  %2610 = vadd.xlane.f32.xlu1 %v2588_v6 }
 0xccc   :  { %2616 = vadd.xlane.f32.xlu0 %v2591_v4  ;;  %2618 = vadd.xlane.f32.xlu1 %v2592_v42 }
 0xcd0   :  { %2612 = vadd.xlane.f32.xlu0 %v2589_v60  ;;  %2622 = vadd.xlane.f32.xlu1 %v2594_v27 }
 0xcd4   :  { %2620 = vadd.xlane.f32.xlu0 %v2593_v31  ;;  %2626 = vadd.xlane.f32.xlu1 %v2596_v53 }
 0xcd8   :  { %2624 = vadd.xlane.f32.xlu0 %v2595_v35 }
 0xcdc   :  { %2628 = vadd.xlane.f32.xlu0 %v2597_v20 }
 0xce5   :  { %2631 = vrot.lane.b32.xlu1 %v4376_v61, %s3118_s7 }
 0xcf2   :  { %2636 = vrot.lane.b32.xlu0 %v4365_v40, %s3120_s6 }
 0xd49   :  { %v2601_v59 = vpop.xlane.xlu1 %2600  ;;  %v2599_v30 = vpop.xlane.xlu0 %2598 }
 0xd4a   :  { %v2664_v61 = vrot.slane %v2601_v59, %v4846_v55  ;;  %v2660_v40 = vrot.slane %v2599_v30, %v4847_v17 }
 0xd4c   :  { %v2665_v58 = vsel %vm567_vm4, %v2664_v61, %v2660_v40 }
 0xd4d   :  { %v2607_v38 = vpop.xlane.xlu1 %2606  ;;  %v2603_v45 = vpop.xlane.xlu0 %2602 }
 0xd4e   :  { %v2669_v14 = vrot.slane %v2603_v45, %v4847_v17  ;;  %v2678_v22 = vrot.slane %v2607_v38, %v4847_v17 }
 0xd51   :  { %v2605_v7 = vpop.xlane.xlu0 %2604  ;;  %v2615_v26 = vpop.xlane.xlu1 %2614 }
 0xd52   :  { %v2673_v12 = vrot.slane %v2605_v7, %v4846_v55  ;;  %v2696_v11 = vrot.slane %v2615_v26, %v4847_v17 }
 0xd54   :  { %v2674_v21 = vsel %vm567_vm4, %v2673_v12, %v2669_v14 }
 0xd55   :  { %v2609_v16 = vpop.xlane.xlu0 %2608  ;;  %v2611_v50 = vpop.xlane.xlu1 %2610  ;;  %v2729_v44 = vsel %vm758_vm8, %v2674_v21, %v2665_v58 }
 0xd56   :  { %v2682_v8 = vrot.slane %v2609_v16, %v4846_v55  ;;  %v2687_v15 = vrot.slane %v2611_v50, %v4847_v17 }
 0xd58   :  { %v2683_v18 = vsel %vm567_vm4, %v2682_v8, %v2678_v22 }
 0xd59   :  { %v2617_v62 = vpop.xlane.xlu0 %2616  ;;  %v2619_v0 = vpop.xlane.xlu1 %2618  ;;  %v2730_v13 = vsel %vm760_vm9, %v2683_v18, %v2729_v44 }
 0xd5a   :  { %v2700_v28 = vrot.slane %v2617_v62, %v4846_v55  ;;  %v2705_v25 = vrot.slane %v2619_v0, %v4847_v17 }
 0xd5c   :  { %v2701_v37 = vsel %vm567_vm4, %v2700_v28, %v2696_v11 }
 0xd5d   :  { %v2613_v10 = vpop.xlane.xlu0 %2612  ;;  %v2623_v33 = vpop.xlane.xlu1 %2622 }
 0xd5e   :  { %v2691_v43 = vrot.slane %v2613_v10, %v4846_v55  ;;  %v2714_v19 = vrot.slane %v2623_v33, %v4847_v17 }
 0xd60   :  { %v2692_v29 = vsel %vm567_vm4, %v2691_v43, %v2687_v15 }
 0xd61   :  { %v2621_v1 = vpop.xlane.xlu0 %2620  ;;  %v2627_v51 = vpop.xlane.xlu1 %2626  ;;  %v2731_v49 = vsel %vm762_vm10, %v2692_v29, %v2730_v13 }
 0xd62   :  { %v2709_v48 = vrot.slane %v2621_v1, %v4846_v55  ;;  %v2732_v34 = vsel %vm764_vm11, %v2701_v37, %v2731_v49  ;;  %v2723_v52 = vrot.slane %v2627_v51, %v4847_v17 }
 0xd64   :  { %v2710_v9 = vsel %vm567_vm4, %v2709_v48, %v2705_v25 }
 0xd65   :  { %v2625_v24 = vpop.xlane.xlu0 %2624  ;;  %v2632_v3 = vpop.permute.xlu1 %2631  ;;  %v2733_v57 = vsel %vm766_vm12, %v2710_v9, %v2732_v34 }
 0xd66   :  { %v2718_v23 = vrot.slane %v2625_v24, %v4846_v55  ;;  %2634 = vst.msk [vmem:[%s4643_s16] sm:$0xff] %vm212_vm2, %v2632_v3 }
 0xd68   :  { %v2719_v5 = vsel %vm567_vm4, %v2718_v23, %v2714_v19 }
 0xd69   :  { %v2629_v6 = vpop.xlane.xlu0 %2628  ;;  %v2734_v4 = vsel %vm768_vm13, %v2719_v5, %v2733_v57 }
 0xd6a   :  { %v2727_v46 = vrot.slane %v2629_v6, %v4846_v55 }
 0xd6c   :  { %v2728_v42 = vsel %vm567_vm4, %v2727_v46, %v2723_v52 }
 0xd6d   :  { %v2735_v41 = vsel %vm770_vm14, %v2728_v42, %v2734_v4  ;;  %v2637_v36 = vpop.permute.xlu0 %2636 }
 0xd6e   :  { %2737 = vst.msk [vmem:[%s4644_s18] sm:$0xff] %vm142_vm1, %v2735_v41 }
 0xd6f   :  { %2639 = vst.msk [vmem:[%s4645_s17] sm:$0xff] %vm212_vm2, %v2637_v36 }
 0xd70   :  { %2739 = vst.msk [vmem:[%s4644_s18] sm:$0xff] %vm2738_vm0, %v4880_v32 }

// kernel: attn_decoder_step.1
= control target key start
LH: loop header
LB: loop body
LE: loop exit
PB: predicated region body
PF: predicated region fallthrough
CT: control target
= control target key end

     0   :  { %v4687_v0 = vmov 0.0   ;;  %vm3115_vm0 = vmmov 0   ;;  %v3116_v3 = vmov 0   ;;  %vm142_vm1 = vcmask 130048   ;;  %s4626_s7 = inlined_call_operand.vmem [shape: bf16[16,32], index: 7, kind: input, shape index: {}]   ;;  %s4627_s9 = inlined_call_operand.vmem [shape: bf16[32,256], index: 9, kind: input, shape index: {}]   ;;  %s4628_s0 = inlined_call_operand.vmem [shape: f32[8,16], index: 0, kind: input, shape index: {}]   ;;  %s4629_s3 = inlined_call_operand.vmem [shape: f32[8,32], index: 3, kind: input, shape index: {}]   ;;  %s4630_s10 = inlined_call_operand.vmem [shape: bf16[32,128], index: 10, kind: input, shape index: {}]   ;;  %s4631_s8 = inlined_call_operand.vmem [shape: f32[1,32], index: 8, kind: input, shape index: {}]   ;;  %s4632_s1 = inlined_call_operand.vmem [shape: bf16[8,36,128], index: 1, kind: input, shape index: {}]   ;;  %s4633_s11 = inlined_call_operand.vmem [shape: bf16[128,128], index: 11, kind: input, shape index: {}]   ;;  %s4634_s4 = inlined_call_operand.vmem [shape: f32[8,32], index: 4, kind: input, shape index: {}]   ;;  %s4635_s12 = inlined_call_operand.vmem [shape: f32[1,128], index: 12, kind: input, shape index: {}]   ;;  %s4636_s13 = inlined_call_operand.vmem [shape: bf16[32,64], index: 13, kind: input, shape index: {}]   ;;  %s4637_s5 = inlined_call_operand.vmem [shape: bf16[8,8,32], index: 5, kind: input, shape index: {}]   ;;  %s4638_s6 = inlined_call_operand.vmem [shape: f32[8,8], index: 6, kind: input, shape index: {}]   ;;  %s4639_s14 = inlined_call_operand.vmem [shape: bf16[32,32], index: 14, kind: input, shape index: {}]   ;;  %s4640_s15 = inlined_call_operand.vmem [shape: bf16[32,128], index: 15, kind: input, shape index: {}]   ;;  %s4641_s19 = inlined_call_operand.vmem [shape: f32[8,32], index: 19, kind: output, shape index: {3}]   ;;  %s4642_s2 = inlined_call_operand.vmem [shape: bf16[8,16,128], index: 2, kind: input, shape index: {}]   ;;  %s4643_s16 = inlined_call_operand.vmem [shape: f32[8,32], index: 16, kind: output, shape index: {0}]   ;;  %s4644_s18 = inlined_call_operand.vmem [shape: f32[8,128], index: 18, kind: output, shape index: {2}]   ;;  %s4645_s17 = inlined_call_operand.vmem [shape: f32[8,32], index: 17, kind: output, shape index: {1}]  }
   0x1   :  { %4772 = sst [smem:[#allocation62_spill]] %s4626_s7  ;;  %2926 = vmatprep.subr.bf16.mxu0 %v4687_v0  ;;  %2928 = vmatprep.mubr.msk.bf16.mxu0 %vm3115_vm0, %v4687_v0  ;;  %vm212_vm2 = vcmask 261120   ;;  %v3000_v11 = vld [vmem:[%s4630_s10] sm:$0xff]   ;;  %v3001_v12 = vld [vmem:[%s4630_s10 + $0x8] sm:$0xff]   ;;  %v3117_v13 = vmov 1966171168   ;;  %v262_v15 = vlaneseq }
   0x2   :  { %4773 = sst [smem:[#allocation63_spill]] %s4627_s9  ;;  %s4776_s20 = sld [smem:[#allocation62_spill]]  ;;  %248 = vmatprep.mubr.bf16.mxu1 %v3116_v3  ;;  %2992 = vset.pattern.permute.xlu0 %v3116_v3  ;;  %v260_v14 = vunpack.c.l.s4 %v3117_v13  ;;  %v2756_v16 = vld [vmem:[%s4631_s8] ss:$0 sm:$0xff]  ;;  %v3285_v34 = vld [vmem:[%s4632_s1 + $0x10] sm:$0x3] }
   0x3   :  { %4774 = sst [smem:[#allocation64_spill]] %s4628_s0  ;;  %s4777_s22 = sld [smem:[#allocation63_spill]]  ;;  %2991 = vset.pattern.permute.xlu1 %v3116_v3  ;;  %v3265_v19 = vshrl.u32 %v262_v15, 7  ;;  %v3276_v29 = vld [vmem:[%s4632_s1] sm:$0xff]   ;;  %4782 = vst [vmem:[#allocation4_spill] sm:$0xff] %v3285_v34  ;;  %v4676_v38 = vunpack.c.l.bf16 %v3285_v34  ;;  %vm435_vm3 = vcmask 1043456  }
   0x4   :  { %4775 = sst [smem:[#allocation65_spill]] %s4629_s3  ;;  %s4778_s3 = sld [smem:[#allocation64_spill]]  ;;  %v261_v18 = vunpack.c.0.s8 %v260_v14  ;;  %4781 = vst [vmem:[#allocation3_spill] sm:$0xff] %v3276_v29  ;;  %v4686_v35 = vunpack.c.l.bf16 %v3276_v29  ;;  %v4685_v42 = vunpack.c.h.bf16 %v3276_v29  ;;  %v3299_v43 = vld [vmem:[%s4632_s1 + $0x14] ss:$12 sps:$4 sm:$0xff]   ;;  %v3305_v44 = vld [vmem:[%s4632_s1 + $0x8] sm:$0xff]  }
   0x5   :  { %v3279_v30 = vsub.s32 0, %v3265_v19  ;;  %4783 = vst [vmem:[#allocation5_spill] sm:$0xff] %v3299_v43  ;;  %4784 = vst [vmem:[#allocation6_spill] sm:$0xff] %v3305_v44  ;;  %v4684_v47 = vunpack.c.l.bf16 %v3299_v43  ;;  %v4680_v50 = vunpack.c.l.bf16 %v3305_v44  ;;  %v3321_v51 = vld [vmem:[%s4632_s1 + $0x18] sm:$0xff]   ;;  %v4675_v57 = vunpack.c.h.bf16 %v3305_v44  ;;  %v3332_v58 = vld [vmem:[%s4632_s1 + $0x28] sm:$0xff]   ;;  %s3118_s7 = smov 32  }
   0x6   :  { %v3268_v24 = vsub.s32 %v261_v18, %v3265_v19  ;;  %4785 = vst [vmem:[#allocation7_spill] sm:$0xff] %v3321_v51  ;;  %v4683_v53 = vunpack.c.l.bf16 %v3321_v51  ;;  %4786 = vst [vmem:[#allocation8_spill] sm:$0xff] %v3332_v58  ;;  %v4674_v60 = vunpack.c.h.bf16 %v3321_v51  ;;  %vm567_vm4 = vcmask 130112   ;;  %s3119_s0 = smov 64  }
   0x7   :  { %vm574_vm5 = vcmask 195712   ;;  %vm581_vm6 = vcmask 261312   ;;  %vm588_vm7 = vcmask 326912   ;;  %vm758_vm8 = vcmask 1041409  }
   0x8   :  { %v2993_v1 = vld [vmem:[%s4776_s20] sm:$0xff]   ;;  %s4779_s20 = sld [smem:[#allocation65_spill]]  ;;  %4780 = vst [vmem:[#allocation2_spill] sm:$0xff] %v3268_v24  ;;  %vm760_vm9 = vcmask 1042434   ;;  %vm762_vm10 = vcmask 1043459   ;;  %vm764_vm11 = vcmask 1044484  }
   0x9   :  { %v2994_v2 = vld [vmem:[%s4777_s22 + $0x4] ss:$8 sps:$4 sm:$0xff]   ;;  %2927 = vmatpush3.bf16.msra.mxu0 %v2993_v1  ;;  %v2996_v4 = vld [vmem:[%s4777_s22] ss:$8 sps:$4 sm:$0xff]   ;;  %v2997_v7 = vld [vmem:[%s4777_s22 + $0x14] ss:$8 sps:$4 sm:$0xff]   ;;  %v4682_v1 = vunpack.c.l.bf16 %v3332_v58 }
   0xa   :  { %v125_v5 = vld [vmem:[%s4778_s3] sm:$0xff]  ;;  %216 = vmatprep.subr.bf16.mxu1 %v2994_v2  ;;  %2932 = vmatprep.subr.bf16.mxu0 %v4687_v0  ;;  %v2999_v8 = vld [vmem:[%s4777_s22 + $0x10] ss:$8 sps:$4 sm:$0xff]   ;;  %vm766_vm12 = vcmask 1045509   ;;  %vm768_vm13 = vcmask 1046534   ;;  %vm770_vm14 = vcmask 1047559  }
   0xb   :  { %v126_v6 = vpack.c.bf16 %v125_v5, %v125_v5  ;;  %217 = vmatpush1.bf16.msra.mxu1 %v2996_v4  ;;  %v3345_v2 = vld [vmem:[%s4632_s1 + $0x30] sm:$0xff]   ;;  %v4681_v4 = vunpack.c.h.bf16 %v3332_v58  ;;  %vm773_vm15 = vcmask 293888  }
   0xc   :  { %218 = vmatprep.subr.bf16.mxu1 %v2997_v7  ;;  %4787 = vst [vmem:[#allocation9_spill] sm:$0xff] %v3345_v2  ;;  %v4679_v7 = vunpack.c.l.bf16 %v3345_v2  ;;  %v4678_v18 = vunpack.c.h.bf16 %v3345_v2 }
   0xd   :  { %2929 = vmatmul.mubr.msk.bf16.vlgmr.msra.gmra.mrb[0].mxu0 %vm142_vm1, %v126_v6 }
   0xe   :  { %v122_v9 = vld [vmem:[%s4779_s20] sm:$0xff]  ;;  %2936 = vmatprep.mubr.msk.bf16.mxu0 %vm3115_vm0, %v4687_v0  ;;  %2933 = vmatpush3.bf16.msra.mxu0 %v3000_v11  ;;  %v4673_v11 = vunpack.c.h.bf16 %v3299_v43 }
   0xf   :  { %v187_v10 = vpack.c.bf16 %v122_v9, %v122_v9  ;;  %219 = vmatpush1.bf16.msra.mxu1 %v2999_v8  ;;  %2934 = vmatprep.subr.bf16.mxu0 %v4687_v0  ;;  %v3359_v8 = vld [vmem:[%s4632_s1 + $0x50] sm:$0xff]   ;;  %v3364_v9 = vld [vmem:[%s4632_s1 + $0x24] sm:$0x3] }
  0x10   :  { %2940 = vmatprep.subr.bf16.mxu1 %v4687_v0  ;;  %4788 = vst [vmem:[#allocation10_spill] sm:$0xff] %v3359_v8  ;;  %4789 = vst [vmem:[#allocation11_spill] sm:$0xff] %v3364_v9  ;;  %v4671_v14 = vunpack.c.h.bf16 %v3359_v8 }
  0x12   :  { %2763 = vmatmul.mubr.msk.bf16.vlgmr.msra.gmra.mrb[0].mxu1 %vm212_vm2, %v187_v10  ;;  %2935 = vmatpush3.bf16.msra.mxu0 %v3001_v12 }
  0x13   :  { %2956 = vmatprep.mubr.msk.bf16.mxu1 %vm3115_vm0, %v4687_v0  ;;  %2960 = vmatprep.subr.bf16.mxu0 %v4687_v0 }
  0xe0   :  { %v180_v17 = vpop.f32.mrb[0].mxu0 }
  0xe1   :  { %v181_v20 = vadd.f32 %v2756_v16, %v180_v17  ;;  %v2930_v21 = vpop.f32.mrb[1].mxu0  ;;  %v4672_v16 = vunpack.c.l.bf16 %v3364_v9 }
  0xe2   :  { %v183_v22 = vpop.f32.mrb[2].mxu0 }
  0xe3   :  { %3016 = vtanh.f32 %v181_v20  ;;  %v2931_v23 = vpop.f32.mrb[3].mxu0 }
  0xe4   :  { %v3387_v23 = vld [vmem:[%s4632_s1 + $0x40] sm:$0xff]  }
  0xe5   :  { %v3270_v25 = vpop.f32.mrb[0].mxu1  ;;  %4790 = vst [vmem:[#allocation12_spill] sm:$0xff] %v3387_v23 }
  0xe6   :  { %v252_v26 = vpop.f32.mrb[1].mxu1 }
  0xe7   :  { %v265_v27 = vrot.slane %v252_v26, %v3268_v24  ;;  %v254_v28 = vpop.f32.mrb[2].mxu1  ;;  %v258_v54 = vcombine.high %v252_v26, %v252_v26 }
  0xe8   :  { %v255_v31 = vpop.f32.mrb[3].mxu1 }
  0xe9   :  { %v273_v32 = vcombine.high %v265_v27, %v265_v27  ;;  %v281_v33 = vrot.slane %v265_v27, %v3268_v24  ;;  %v272_v61 = vrot.slane %v258_v54, %v3268_v24  ;;  %v4670_v27 = vunpack.c.l.bf16 %v3359_v8 }
  0xea   :  { %v4668_v31 = vunpack.c.l.bf16 %v3387_v23 }
  0xeb   :  { %v350_v37 = vrot.slane %v281_v33, %v3279_v30  ;;  %v3291_v40 = vrot.slane %v273_v32, %v3268_v24  ;;  %v303_v55 = vcombine.high %v281_v33, %v281_v33  ;;  %v3351_v5 = vrot.slane %v272_v61, %v3268_v24  ;;  %v3399_v32 = vld [vmem:[%s4632_s1 + $0x58] sm:$0xff]  }
  0xec   :  { %4791 = vst [vmem:[#allocation13_spill] sm:$0xff] %v3399_v32 }
  0xed   :  { %v3017_v36 = vpop.eup %3016  ;;  %v387_v41 = vmul.f32 %v4686_v35, %v350_v37  ;;  %v391_v45 = vmul.f32 %v350_v37, %v4676_v38  ;;  %v354_v46 = vrot.slane %v3291_v40, %v3279_v30  ;;  %v388_v49 = vmul.f32 %v4685_v42, %v350_v37 }
  0xee   :  { %v1711_v39 = vpack.c.bf16 %v3017_v36, %v3017_v36  ;;  %v389_v56 = vmul.f32 %v4680_v50, %v350_v37  ;;  %v358_v62 = vrot.slane %v303_v55, %v3279_v30  ;;  %v390_v63 = vmul.f32 %v4675_v57, %v350_v37 }
  0xef   :  { %427 = vadd.xlane.f32.xlu0 %v387_v41  ;;  %v436_v48 = vsel %vm435_vm3, %v391_v45, 0.0  ;;  %v392_v52 = vmul.f32 %v354_v46, %v4684_v47  ;;  %v393_v59 = vmul.f32 %v4683_v53, %v354_v46  ;;  %v394_v3 = vmul.f32 %v4674_v60, %v354_v46  ;;  %v3412_v45 = vld [vmem:[%s4632_s1 + $0x48] ss:$28 sps:$4 sm:$0xff]  }
  0xf0   :  { %2937 = vmatmul.mubr.msk.bf16.vlgmr.msra.gmra.mrb[4].mxu0 %vm212_vm2, %v1711_v39  ;;  %437 = vadd.xlane.f32.xlu1 %v436_v48  ;;  %v397_v6 = vmul.f32 %v4682_v1, %v358_v62  ;;  %v398_v10 = vmul.f32 %v4681_v4, %v358_v62  ;;  %v366_v12 = vrot.slane %v3351_v5, %v3279_v30  ;;  %v4669_v37 = vunpack.c.l.bf16 %v3399_v32 }
  0xf1   :  { %2964 = vmatprep.mubr.msk.bf16.mxu0 %vm3115_vm0, %v4687_v0  ;;  %v399_v13 = vmul.f32 %v4679_v7, %v358_v62  ;;  %v395_v17 = vmul.f32 %v354_v46, %v4673_v11  ;;  %v305_v20 = vcombine.high %v3291_v40, %v3291_v40  ;;  %v396_v22 = vmul.f32 %v354_v46, %v4672_v16  ;;  %v3417_v46 = vld [vmem:[%s4632_s1 + $0x38] sm:$0x3] }
  0xf2   :  { %v408_v21 = vmul.f32 %v4671_v14, %v366_v12  ;;  %v400_v26 = vmul.f32 %v4678_v18, %v358_v62  ;;  %v407_v36 = vmul.f32 %v4670_v27, %v366_v12  ;;  %v274_v39 = vcombine.high %v272_v61, %v272_v61  ;;  %4792 = vst [vmem:[#allocation14_spill] sm:$0xff] %v3412_v45 }
  0xf3   :  { %429 = vadd.xlane.f32.xlu0 %v388_v49  ;;  %v3393_v28 = vrot.slane %v305_v20, %v3279_v30  ;;  %v447_v33 = vsel %vm435_vm3, %v396_v22, 0.0  ;;  %v4666_v41 = vunpack.c.h.bf16 %v3387_v23  ;;  %4793 = vst [vmem:[#allocation15_spill] sm:$0xff] %v3417_v46  ;;  %v409_v48 = vmul.f32 %v4669_v37, %v366_v12 }
  0xf4   :  { %439 = vadd.xlane.f32.xlu1 %v392_v52  ;;  %v4661_v49 = vunpack.c.h.bf16 %v3399_v32  ;;  %v302_v52 = vrot.slane %v274_v39, %v3268_v24  ;;  %v4663_v55 = vunpack.c.l.bf16 %v3412_v45  ;;  %v557_v18 = vand.u32 127, %v262_v15 }
  0xf5   :  { %v403_v40 = vmul.f32 %v4668_v31, %v3393_v28  ;;  %v404_v54 = vmul.f32 %v4666_v41, %v3393_v28 }
  0xf6   :  { %v410_v61 = vmul.f32 %v4661_v49, %v366_v12  ;;  %v562_v50 = vadd.s32 4294967288, %v557_v18  ;;  %v569_v1 = vadd.s32 4294967280, %v557_v18  ;;  %v576_v53 = vadd.s32 4294967272, %v557_v18 }
  0xf7   :  { %431 = vadd.xlane.f32.xlu0 %v389_v56  ;;  %v4677_v56 = vunpack.c.l.bf16 %v3417_v46  ;;  %v583_v47 = vadd.s32 4294967264, %v557_v18  ;;  %v3620_v24 = vsub.s32 %v557_v18, %v3265_v19 }
  0xf8   :  { %441 = vadd.xlane.f32.xlu1 %v393_v59  ;;  %v3431_v59 = vld [vmem:[%s4632_s1 + $0x60] sm:$0x3]  ;;  %v3615_v35 = vsub.s32 %v562_v50, %v3265_v19  ;;  %v3623_v15 = vsub.s32 %v569_v1, %v3265_v19 }
  0xf9   :  { %4794 = vst [vmem:[#allocation16_spill] sm:$0xff] %v3431_v59  ;;  %4806 = vst [vmem:[#allocation28_spill] sm:$0xff] %v3620_v24 }
  0xfa   :  { %4805 = vst [vmem:[#allocation27_spill] sm:$0xff] %v3615_v35 }
  0xfb   :  { %433 = vadd.xlane.f32.xlu0 %v390_v63  ;;  %v4652_v63 = vunpack.c.l.bf16 %v3431_v59 }
  0xfc   :  { %443 = vadd.xlane.f32.xlu1 %v394_v3  ;;  %v370_v3 = vrot.slane %v302_v52, %v3279_v30 }
  0xff   :  { %450 = vadd.xlane.f32.xlu0 %v397_v6  ;;  %v405_v6 = vmul.f32 %v3393_v28, %v4663_v55 }
 0x100   :  { %452 = vadd.xlane.f32.xlu1 %v398_v10  ;;  %v401_v10 = vmul.f32 %v358_v62, %v4677_v56  ;;  %v411_v62 = vmul.f32 %v366_v12, %v4652_v63 }
 0x102   :  { %v458_v22 = vsel %vm435_vm3, %v401_v10, 0.0 }
 0x103   :  { %454 = vadd.xlane.f32.xlu0 %v399_v13  ;;  %v4649_v13 = vunpack.c.h.bf16 %v3412_v45 }
 0x104   :  { %445 = vadd.xlane.f32.xlu1 %v395_v17  ;;  %v3446_v17 = vld [vmem:[%s4632_s1 + $0x68] sm:$0xff]  }
 0x105   :  { %4795 = vst [vmem:[#allocation17_spill] sm:$0xff] %v3446_v17  ;;  %v4647_v20 = vunpack.c.h.bf16 %v3446_v17 }
 0x107   :  { %474 = vadd.xlane.f32.xlu0 %v408_v21  ;;  %v304_v21 = vcombine.high %v3351_v5, %v3351_v5  ;;  %v414_v12 = vmul.f32 %v4647_v20, %v370_v3 }
 0x108   :  { %456 = vadd.xlane.f32.xlu1 %v400_v26  ;;  %v412_v26 = vmul.f32 %v370_v3, %v4649_v13 }
 0x109   :  { %v374_v39 = vrot.slane %v304_v21, %v3279_v30 }
 0x10b   :  { %448 = vadd.xlane.f32.xlu0 %v447_v33  ;;  %v3459_v33 = vld [vmem:[%s4632_s1 + $0x3c] ss:$52 sps:$4 sm:$0xff]  }
 0x10c   :  { %472 = vadd.xlane.f32.xlu1 %v407_v36  ;;  %4796 = vst [vmem:[#allocation18_spill] sm:$0xff] %v3459_v33  ;;  %v3464_v36 = vld [vmem:[%s4632_s1 + $0x78] sm:$0xff]   ;;  %v4667_v5 = vunpack.c.l.bf16 %v3459_v33  ;;  %v4651_v21 = vunpack.c.h.bf16 %v3459_v33 }
 0x10d   :  { %4797 = vst [vmem:[#allocation19_spill] sm:$0xff] %v3464_v36 }
 0x10f   :  { %463 = vadd.xlane.f32.xlu0 %v403_v40  ;;  %v480_v40 = vsel %vm435_vm3, %v411_v62, 0.0 }
 0x110   :  { %476 = vadd.xlane.f32.xlu1 %v409_v48  ;;  %v4648_v48 = vunpack.c.h.bf16 %v3464_v36 }
 0x112   :  { %v418_v10 = vmul.f32 %v4648_v48, %v374_v39 }
 0x113   :  { %465 = vadd.xlane.f32.xlu0 %v404_v54  ;;  %v3475_v54 = vld [vmem:[%s4632_s1 + $0x4c] sm:$0x3] }
 0x114   :  { %478 = vadd.xlane.f32.xlu1 %v410_v61  ;;  %4798 = vst [vmem:[#allocation20_spill] sm:$0xff] %v3475_v54  ;;  %v402_v61 = vmul.f32 %v3393_v28, %v4667_v5 }
 0x117   :  { %467 = vadd.xlane.f32.xlu0 %v405_v6  ;;  %v4650_v6 = vunpack.c.l.bf16 %v3446_v17 }
 0x118   :  { %459 = vadd.xlane.f32.xlu1 %v458_v22  ;;  %v4656_v22 = vunpack.c.l.bf16 %v3475_v54 }
 0x119   :  { %v413_v62 = vmul.f32 %v4650_v6, %v370_v3  ;;  %v306_v6 = vcombine.high %v302_v52, %v302_v52 }
 0x11b   :  { %483 = vadd.xlane.f32.xlu0 %v412_v26  ;;  %v3488_v26 = vld [vmem:[%s4632_s1 + $0x74] sm:$0x3] }
 0x11c   :  { %481 = vadd.xlane.f32.xlu1 %v480_v40  ;;  %4799 = vst [vmem:[#allocation21_spill] sm:$0xff] %v3488_v26  ;;  %v4654_v40 = vunpack.c.l.bf16 %v3464_v36  ;;  %v4653_v20 = vunpack.c.l.bf16 %v3488_v26 }
 0x11e   :  { %v417_v48 = vmul.f32 %v4654_v40, %v374_v39  ;;  %v416_v63 = vmul.f32 %v370_v3, %v4653_v20  ;;  %v3530_v40 = vld [vmem:[%s4632_s1 + $0x90] sm:$0xff]  }
 0x11f   :  { %487 = vadd.xlane.f32.xlu0 %v414_v12  ;;  %v415_v12 = vmul.f32 %v370_v3, %v4651_v21  ;;  %4803 = vst [vmem:[#allocation25_spill] sm:$0xff] %v3530_v40 }
 0x120   :  { %461 = vadd.xlane.f32.xlu1 %v402_v61  ;;  %v3498_v61 = vld [vmem:[%s4632_s1 + $0x80] sm:$0xff]   ;;  %v491_v20 = vsel %vm435_vm3, %v416_v63, 0.0  ;;  %v3542_v63 = vld [vmem:[%s4632_s1 + $0x9c] sm:$0x3] }
 0x121   :  { %4800 = vst [vmem:[#allocation22_spill] sm:$0xff] %v3498_v61  ;;  %v4655_v13 = vunpack.c.l.bf16 %v3498_v61  ;;  %4804 = vst [vmem:[#allocation26_spill] sm:$0xff] %v3542_v63 }
 0x123   :  { %496 = vadd.xlane.f32.xlu0 %v418_v10  ;;  %v406_v10 = vmul.f32 %v3393_v28, %v4656_v22  ;;  %v3518_v28 = vld [vmem:[%s4632_s1 + $0x88] sm:$0x3]  ;;  %v419_v52 = vmul.f32 %v4655_v13, %v374_v39  ;;  %v4660_v22 = vunpack.c.h.bf16 %v3530_v40 }
 0x124   :  { %485 = vadd.xlane.f32.xlu1 %v413_v62  ;;  %v3513_v62 = vld [vmem:[%s4632_s1 + $0x8c] ss:$12 sps:$4 sm:$0xff]   ;;  %4802 = vst [vmem:[#allocation24_spill] sm:$0xff] %v3518_v28 }
 0x125   :  { %v469_v21 = vsel %vm435_vm3, %v406_v10, 0.0  ;;  %4801 = vst [vmem:[#allocation23_spill] sm:$0xff] %v3513_v62  ;;  %v4658_v3 = vunpack.c.l.bf16 %v3513_v62  ;;  %v4659_v10 = vunpack.c.l.bf16 %v3518_v28  ;;  %v3629_v28 = vsub.s32 %v583_v47, %v3265_v19 }
 0x127   :  { %489 = vadd.xlane.f32.xlu0 %v415_v12  ;;  %v378_v12 = vrot.slane %v306_v6, %v3279_v30  ;;  %v421_v6 = vmul.f32 %v374_v39, %v4659_v10 }
 0x128   :  { %494 = vadd.xlane.f32.xlu1 %v417_v48  ;;  %v4657_v48 = vunpack.c.h.bf16 %v3498_v61 }
 0x129   :  { %v422_v13 = vmul.f32 %v378_v12, %v4658_v3  ;;  %v4664_v3 = vunpack.c.h.bf16 %v3513_v62 }
 0x12b   :  { %470 = vadd.xlane.f32.xlu0 %v469_v21  ;;  %v420_v21 = vmul.f32 %v4657_v48, %v374_v39  ;;  %v424_v48 = vmul.f32 %v4660_v22, %v378_v12  ;;  %v4665_v39 = vunpack.c.l.bf16 %v3542_v63  ;;  %v425_v10 = vmul.f32 %v378_v12, %v4664_v3 }
 0x12c   :  { %498 = vadd.xlane.f32.xlu1 %v419_v52  ;;  %v502_v52 = vsel %vm435_vm3, %v421_v6, 0.0  ;;  %v3626_v63 = vsub.s32 %v576_v53, %v3265_v19 }
 0x12f   :  { %492 = vadd.xlane.f32.xlu0 %v491_v20  ;;  %v4662_v20 = vunpack.c.l.bf16 %v3530_v40 }
 0x130   :  { %500 = vadd.xlane.f32.xlu1 %v420_v21 }
 0x131   :  { %v423_v21 = vmul.f32 %v4662_v20, %v378_v12 }
 0x133   :  { %505 = vadd.xlane.f32.xlu0 %v422_v13  ;;  %v426_v13 = vmul.f32 %v378_v12, %v4665_v39 }
 0x134   :  { %503 = vadd.xlane.f32.xlu1 %v502_v52 }
 0x135   :  { %v513_v6 = vsel %vm435_vm3, %v426_v13, 0.0 }
 0x137   :  { %509 = vadd.xlane.f32.xlu0 %v424_v48 }
 0x138   :  { %507 = vadd.xlane.f32.xlu1 %v423_v21 }
 0x13b   :  { %511 = vadd.xlane.f32.xlu0 %v425_v10 }
 0x13c   :  { %514 = vadd.xlane.f32.xlu1 %v513_v6 }
 0x17c   :  { %v3557_v22 = vpop.xlane.xlu0 %427 }
 0x17d   :  { %v3559_v49 = vpop.xlane.xlu1 %437  ;;  %v561_v53 = vrot.slane %v3557_v22, %v3620_v24 }
 0x180   :  { %v3561_v52 = vpop.xlane.xlu0 %429 }
 0x181   :  { %v3563_v48 = vpop.xlane.xlu1 %439  ;;  %v566_v50 = vrot.slane %v3561_v52, %v3615_v35 }
 0x182   :  { %v593_v47 = vrot.slane %v3563_v48, %v3620_v24 }
 0x183   :  { %v568_v32 = vsel %vm567_vm4, %v566_v50, %v561_v53 }
 0x184   :  { %v3565_v20 = vpop.xlane.xlu0 %431 }
 0x185   :  { %v3567_v55 = vpop.xlane.xlu1 %441  ;;  %v573_v1 = vrot.slane %v3565_v20, %v3623_v15 }
 0x186   :  { %v597_v18 = vrot.slane %v3567_v55, %v3615_v35 }
 0x187   :  { %v575_v34 = vsel %vm574_vm5, %v573_v1, %v568_v32  ;;  %v587_v32 = vrot.slane %v3559_v49, %v3629_v28 }
 0x188   :  { %v3569_v3 = vpop.xlane.xlu0 %433  ;;  %v598_v8 = vsel %vm567_vm4, %v597_v18, %v593_v47 }
 0x189   :  { %v3571_v12 = vpop.xlane.xlu1 %443  ;;  %v580_v62 = vrot.slane %v3569_v3, %v3626_v63 }
 0x18a   :  { %v602_v61 = vrot.slane %v3571_v12, %v3623_v15 }
 0x18b   :  { %v582_v58 = vsel %vm581_vm6, %v580_v62, %v575_v34 }
 0x18c   :  { %v3573_v10 = vpop.xlane.xlu0 %450  ;;  %v603_v46 = vsel %vm574_vm5, %v602_v61, %v598_v8 }
 0x18d   :  { %v3575_v21 = vpop.xlane.xlu1 %452  ;;  %v617_v36 = vrot.slane %v3573_v10, %v3620_v24 }
 0x18e   :  { %v621_v17 = vrot.slane %v3575_v21, %v3615_v35 }
 0x190   :  { %v3577_v13 = vpop.xlane.xlu0 %454  ;;  %v622_v50 = vsel %vm567_vm4, %v621_v17, %v617_v36 }
 0x191   :  { %v3579_v6 = vpop.xlane.xlu1 %445  ;;  %v626_v59 = vrot.slane %v3577_v13, %v3623_v15 }
 0x192   :  { %v607_v54 = vrot.slane %v3579_v6, %v3626_v63 }
 0x193   :  { %v627_v8 = vsel %vm574_vm5, %v626_v59, %v622_v50 }
 0x194   :  { %v3581_v39 = vpop.xlane.xlu0 %474  ;;  %v608_v18 = vsel %vm581_vm6, %v607_v54, %v603_v46 }
 0x195   :  { %v3583_v41 = vpop.xlane.xlu1 %456 }
 0x196   :  { %v631_v2 = vrot.slane %v3583_v41, %v3626_v63 }
 0x198   :  { %v3585_v5 = vpop.xlane.xlu0 %448  ;;  %v632_v59 = vsel %vm581_vm6, %v631_v2, %v627_v8 }
 0x199   :  { %v3587_v31 = vpop.xlane.xlu1 %472  ;;  %v612_v45 = vrot.slane %v3585_v5, %v3629_v28 }
 0x19a   :  { %v665_v34 = vrot.slane %v3587_v31, %v3620_v24 }
 0x19b   :  { %v613_v61 = vsel %vm588_vm7, %v612_v45, %v608_v18  ;;  %v589_v45 = vsel %vm588_vm7, %v587_v32, %v582_v58 }
 0x19c   :  { %v3589_v37 = vpop.xlane.xlu0 %463  ;;  %v759_v58 = vsel %vm758_vm8, %v613_v61, %v589_v45 }
 0x19d   :  { %v3591_v27 = vpop.xlane.xlu1 %476  ;;  %v645_v44 = vrot.slane %v3589_v37, %v3615_v35 }
 0x19e   :  { %v674_v32 = vrot.slane %v3591_v27, %v3623_v15 }
 0x1a0   :  { %v3593_v14 = vpop.xlane.xlu0 %465 }
 0x1a1   :  { %v3595_v16 = vpop.xlane.xlu1 %478  ;;  %v650_v46 = vrot.slane %v3593_v14, %v3623_v15 }
 0x1a4   :  { %v3597_v11 = vpop.xlane.xlu0 %467 }
 0x1a5   :  { %v3599_v60 = vpop.xlane.xlu1 %459  ;;  %v655_v2 = vrot.slane %v3597_v11, %v3626_v63 }
 0x1a6   :  { %v636_v17 = vrot.slane %v3599_v60, %v3629_v28 }
 0x1a8   :  { %v3601_v57 = vpop.xlane.xlu0 %483 }
 0x1a9   :  { %v3603_v38 = vpop.xlane.xlu1 %481  ;;  %v689_v36 = vrot.slane %v3601_v57, %v3620_v24 }
 0x1ac   :  { %v3605_v56 = vpop.xlane.xlu0 %487 }
 0x1ad   :  { %v3608_v7 = vpop.xlane.xlu1 %461  ;;  %v698_v8 = vrot.slane %v3605_v56, %v3623_v15 }
 0x1ae   :  { %v641_v33 = vrot.slane %v3608_v7, %v3620_v24 }
 0x1b0   :  { %v3610_v4 = vpop.xlane.xlu0 %496  ;;  %v646_v47 = vsel %vm567_vm4, %v645_v44, %v641_v33  ;;  %v669_v44 = vrot.slane %v3581_v39, %v3615_v35 }
 0x1b1   :  { %v3612_v42 = vpop.xlane.xlu1 %485  ;;  %v651_v62 = vsel %vm574_vm5, %v650_v46, %v646_v47 }
 0x1b2   :  { %v693_v53 = vrot.slane %v3612_v42, %v3615_v35  ;;  %v670_v46 = vsel %vm567_vm4, %v669_v44, %v665_v34 }
 0x1b3   :  { %v675_v29 = vsel %vm574_vm5, %v674_v32, %v670_v46 }
 0x1b4   :  { %v3617_v0 = vpop.xlane.xlu0 %489  ;;  %v694_v50 = vsel %vm567_vm4, %v693_v53, %v689_v36 }
 0x1b5   :  { %v3631_v26 = vpop.xlane.xlu1 %494 }
 0x1b6   :  { %v713_v61 = vrot.slane %v3631_v26, %v3620_v24 }
 0x1b8   :  { %v3637_v40 = vpop.xlane.xlu0 %470 }
 0x1b9   :  { %v3661_v23 = vpop.xlane.xlu1 %498  ;;  %v660_v18 = vrot.slane %v3637_v40, %v3629_v28 }
 0x1ba   :  { %4807 = vst [vmem:[#allocation29_spill] sm:$0xff] %v3661_v23  ;;  %v722_v34 = vrot.slane %v3661_v23, %v3623_v15 }
 0x1bc   :  { %v3665_v9 = vpop.xlane.xlu0 %492 }
 0x1bd   :  { %v3683_v1 = vpop.xlane.xlu1 %500 }
 0x1be   :  { %4808 = vst [vmem:[#allocation30_spill] sm:$0xff] %v3683_v1 }
 0x1c0   :  { %v3693_v54 = vpop.xlane.xlu0 %505 }
 0x1c1   :  { %v3713_v53 = vpop.xlane.xlu1 %503  ;;  %v737_v23 = vrot.slane %v3693_v54, %v3620_v24 }
 0x1c2   :  { %4810 = vst [vmem:[#allocation32_spill] sm:$0xff] %v3713_v53 }
 0x1c3   :  { %v1765_v33 = vpop.f32.mrb[4].mxu0 }
 0x1c4   :  { %v3704_v51 = vadd.f32 %v1765_v33, %v3270_v25  ;;  %v2938_v43 = vpop.f32.mrb[5].mxu0  ;;  %v637_v25 = vsel %vm588_vm7, %v636_v17, %v632_v59  ;;  %v3721_v36 = vpop.xlane.xlu0 %509  ;;  %v679_v33 = vrot.slane %v3595_v16, %v3626_v63  ;;  %v717_v17 = vrot.slane %v3610_v4, %v3615_v35 }
 0x1c5   :  { %v1768_v47 = vpop.f32.mrb[6].mxu0  ;;  %v703_v43 = vrot.slane %v3617_v0, %v3626_v63  ;;  %v708_v59 = vrot.slane %v3665_v9, %v3629_v28 }
 0x1c6   :  { %4809 = vst [vmem:[#allocation31_spill] sm:$0xff] %v3704_v51  ;;  %v2939_v45 = vpop.f32.mrb[7].mxu0  ;;  %v699_v51 = vsel %vm574_vm5, %v698_v8, %v694_v50  ;;  %v656_v47 = vsel %vm581_vm6, %v655_v2, %v651_v62  ;;  %v761_v50 = vsel %vm760_vm9, %v637_v25, %v759_v58  ;;  %v684_v62 = vrot.slane %v3603_v38, %v3629_v28  ;;  %v3742_v8 = vpop.xlane.xlu1 %507 }
 0x1c7   :  { %v661_v44 = vsel %vm588_vm7, %v660_v18, %v656_v47  ;;  %v727_v45 = vrot.slane %v3683_v1, %v3626_v63  ;;  %v732_v2 = vrot.slane %v3713_v53, %v3629_v28  ;;  %v704_v18 = vsel %vm581_vm6, %v703_v43, %v699_v51 }
 0x1c8   :  { %v718_v47 = vsel %vm567_vm4, %v717_v17, %v713_v61  ;;  %v741_v32 = vrot.slane %v3742_v8, %v3615_v35  ;;  %v3750_v46 = vpop.xlane.xlu0 %511  ;;  %v763_v58 = vsel %vm762_vm10, %v661_v44, %v761_v50  ;;  %v746_v53 = vrot.slane %v3721_v36, %v3623_v15 }
 0x1c9   :  { %v723_v25 = vsel %vm574_vm5, %v722_v34, %v718_v47  ;;  %v751_v51 = vrot.slane %v3750_v46, %v3626_v63  ;;  %v680_v43 = vsel %vm581_vm6, %v679_v33, %v675_v29  ;;  %v709_v61 = vsel %vm588_vm7, %v708_v59, %v704_v18 }
 0x1ca   :  { %v728_v17 = vsel %vm581_vm6, %v727_v45, %v723_v25  ;;  %v742_v24 = vsel %vm567_vm4, %v741_v32, %v737_v23  ;;  %v685_v35 = vsel %vm588_vm7, %v684_v62, %v680_v43  ;;  %v3763_v1 = vpop.xlane.xlu1 %514 }
 0x1cb   :  { %v733_v34 = vsel %vm588_vm7, %v732_v2, %v728_v17  ;;  %v747_v44 = vsel %vm574_vm5, %v746_v53, %v742_v24  ;;  %v756_v50 = vrot.slane %v3763_v1, %v3629_v28  ;;  %v765_v33 = vsel %vm764_vm11, %v685_v35, %v763_v58 }
 0x1cc   :  { %v752_v29 = vsel %vm581_vm6, %v751_v51, %v747_v44  ;;  %v767_v59 = vsel %vm766_vm12, %v709_v61, %v765_v33  ;;  %v3777_v53 = vsub.s32 1, %v3265_v19  ;;  %v3780_v2 = vsub.s32 2, %v3265_v19 }
 0x1cd   :  { %v757_v23 = vsel %vm588_vm7, %v756_v50, %v752_v29  ;;  %v769_v45 = vsel %vm768_vm13, %v733_v34, %v767_v59  ;;  %v3783_v35 = vsub.s32 3, %v3265_v19 }
 0x1ce   :  { %v771_v62 = vsel %vm770_vm14, %v757_v23, %v769_v45 }
 0x1cf   :  { %v774_v24 = vsel %vm773_vm15, %v771_v62, -inf }
 0x1d0   :  { %775 = vmax.xlane.f32.xlu0 %v774_v24 }
 0x25d   :  { %v3785_v18 = vpop.xlane.xlu0 %775 }
 0x25e   :  { %v3789_v47 = vrot.slane %v3785_v18, %v3279_v30  ;;  %v3793_v32 = vrot.slane %v3785_v18, %v3777_v53  ;;  %v3797_v58 = vrot.slane %v3785_v18, %v3780_v2  ;;  %v3801_v25 = vrot.slane %v3785_v18, %v3783_v35 }
 0x260   :  { %v819_v51 = vsub.f32 %v3561_v52, %v3789_v47  ;;  %v818_v43 = vsub.f32 %v3557_v22, %v3789_v47  ;;  %v830_v61 = vsub.f32 %v3577_v13, %v3797_v58  ;;  %v823_v17 = vsub.f32 %v3563_v48, %v3793_v32 }
 0x261   :  { %v834_v29 = vsub.f32 %v3589_v37, %v3801_v25  ;;  %v824_v52 = vsub.f32 %v3567_v55, %v3793_v32  ;;  %v3816_v22 = vsub.s32 4, %v3265_v19  ;;  %v827_v48 = vsub.f32 %v3585_v5, %v3793_v32 }
 0x262   :  { %v860_v34 = vmul.f32 1.442695, %v819_v51  ;;  %v858_v44 = vmul.f32 1.442695, %v818_v43  ;;  %v882_v50 = vmul.f32 1.442695, %v830_v61  ;;  %v820_v23 = vsub.f32 %v3565_v20, %v3789_v47 }
 0x263   :  { %v868_v33 = vmul.f32 1.442695, %v823_v17  ;;  %4811 = vst [vmem:[#allocation33_spill] sm:$0xff] %v3816_v22  ;;  %v890_v13 = vmul.f32 1.442695, %v834_v29  ;;  %v3824_v37 = vrot.slane %v3785_v18, %v3816_v22  ;;  %v835_v55 = vsub.f32 %v3593_v14, %v3801_v25 }
 0x264   :  { %3018 = vpow2.f32 %v860_v34  ;;  %v870_v59 = vmul.f32 1.442695, %v824_v52  ;;  %v876_v45 = vmul.f32 1.442695, %v827_v48  ;;  %v862_v62 = vmul.f32 1.442695, %v820_v23 }
 0x265   :  { %3020 = vpow2.f32 %v858_v44  ;;  %v825_v24 = vsub.f32 %v3571_v12, %v3793_v32  ;;  %v3836_v20 = vsub.s32 5, %v3265_v19  ;;  %v892_v43 = vmul.f32 1.442695, %v835_v55 }
 0x266   :  { %3022 = vpow2.f32 %v882_v50  ;;  %v839_v14 = vsub.f32 %v3581_v39, %v3824_v37  ;;  %v828_v12 = vsub.f32 %v3573_v10, %v3797_v58  ;;  %v836_v39 = vsub.f32 %v3597_v11, %v3801_v25 }
 0x267   :  { %3024 = vpow2.f32 %v868_v33  ;;  %v872_v61 = vmul.f32 1.442695, %v825_v24  ;;  %v3850_v44 = vrot.slane %v3785_v18, %v3836_v20  ;;  %v829_v10 = vsub.f32 %v3575_v21, %v3797_v58 }
 0x268   :  { %3026 = vpow2.f32 %v890_v13  ;;  %v900_v50 = vmul.f32 1.442695, %v839_v14  ;;  %v878_v29 = vmul.f32 1.442695, %v828_v12  ;;  %v894_v13 = vmul.f32 1.442695, %v836_v39 }
 0x269   :  { %3028 = vpow2.f32 %v870_v59  ;;  %v843_v48 = vsub.f32 %v3601_v57, %v3850_v44  ;;  %v880_v11 = vmul.f32 1.442695, %v829_v10  ;;  %v821_v59 = vsub.f32 %v3569_v3, %v3789_v47 }
 0x26a   :  { %3030 = vpow2.f32 %v876_v45  ;;  %v3873_v45 = vsub.s32 6, %v3265_v19  ;;  %v837_v57 = vsub.f32 %v3637_v40, %v3801_v25  ;;  %v826_v3 = vsub.f32 %v3579_v6, %v3793_v32 }
 0x26b   :  { %3032 = vpow2.f32 %v862_v62  ;;  %v908_v55 = vmul.f32 1.442695, %v843_v48  ;;  %v864_v62 = vmul.f32 1.442695, %v821_v59  ;;  %v845_v40 = vsub.f32 %v3605_v56, %v3850_v44 }
 0x26c   :  { %3034 = vpow2.f32 %v892_v43  ;;  %v3887_v14 = vrot.slane %v3785_v18, %v3873_v45  ;;  %v874_v12 = vmul.f32 1.442695, %v826_v3  ;;  %v833_v6 = vsub.f32 %v3608_v7, %v3801_v25 }
 0x26d   :  { %3036 = vpow2.f32 %v872_v61  ;;  %v896_v61 = vmul.f32 1.442695, %v837_v57  ;;  %v3900_v39 = vsub.s32 7, %v3265_v19  ;;  %v822_v7 = vsub.f32 %v3559_v49, %v3789_v47 }
 0x26e   :  { %v3830_v5 = vpop.eup %3018  ;;  %3038 = vpow2.f32 %v900_v50  ;;  %v849_v56 = vsub.f32 %v3610_v4, %v3887_v14  ;;  %v888_v10 = vmul.f32 1.442695, %v833_v6  ;;  %v846_v4 = vsub.f32 %v3617_v0, %v3850_v44 }
 0x26f   :  { %v3832_v51 = vpop.eup %3020  ;;  %982 = vperm.xlu0 %2992, %v3830_v5   ;;  %3040 = vpow2.f32 %v878_v29  ;;  %4819 = vst [vmem:[#allocation41_spill] sm:$0xff] %v3900_v39  ;;  %v912_v29 = vmul.f32 1.442695, %v845_v40  ;;  %v3914_v19 = vrot.slane %v3785_v18, %v3900_v39  ;;  %v831_v49 = vsub.f32 %v3583_v41, %v3797_v58 }
 0x270   :  { %979 = vperm.xlu1 %2991, %v3832_v51   ;;  %v3843_v17 = vpop.eup %3022  ;;  %3042 = vpow2.f32 %v894_v13  ;;  %v920_v48 = vmul.f32 1.442695, %v849_v56  ;;  %v914_v18 = vmul.f32 1.442695, %v846_v4  ;;  %v838_v57 = vsub.f32 %v3587_v31, %v3824_v37 }
 0x271   :  { %4812 = vst [vmem:[#allocation34_spill] sm:$0xff] %v3843_v17  ;;  %v3845_v34 = vpop.eup %3024  ;;  %3044 = vpow2.f32 %v880_v11  ;;  %v866_v11 = vmul.f32 1.442695, %v822_v7  ;;  %v884_v0 = vmul.f32 1.442695, %v831_v49  ;;  %v832_v40 = vsub.f32 %v3599_v60, %v3797_v58 }
 0x272   :  { %v3857_v33 = vpop.eup %3026  ;;  %3046 = vpow2.f32 %v908_v55  ;;  %v853_v55 = vsub.f32 %v3693_v54, %v3914_v19  ;;  %v898_v54 = vmul.f32 1.442695, %v838_v57  ;;  %v840_v56 = vsub.f32 %v3591_v27, %v3824_v37 }
 0x273   :  { %1015 = vperm.xlu0 %2992, %v3843_v17   ;;  %4813 = vst [vmem:[#allocation35_spill] sm:$0xff] %v3857_v33  ;;  %v3859_v52 = vpop.eup %3028  ;;  %3048 = vpow2.f32 %v864_v62  ;;  %v856_v7 = vsub.f32 %v3750_v46, %v3914_v19  ;;  %v841_v46 = vsub.f32 %v3595_v16, %v3824_v37  ;;  %v4847_v17 = vld [vmem:[#allocation28_spill] sm:$0xff] }
 0x274   :  { %994 = vperm.xlu1 %2991, %v3845_v34   ;;  %v3867_v23 = vpop.eup %3030  ;;  %3050 = vpow2.f32 %v896_v61  ;;  %v928_v3 = vmul.f32 1.442695, %v853_v55  ;;  %v847_v61 = vsub.f32 %v3665_v9, %v3850_v44  ;;  %v886_v9 = vmul.f32 1.442695, %v832_v40  ;;  %v4833_v40 = vld [vmem:[#allocation29_spill] sm:$0xff] }
 0x275   :  { %4814 = vst [vmem:[#allocation36_spill] sm:$0xff] %v3867_v23  ;;  %v3869_v21 = vpop.eup %3032  ;;  %3052 = vpow2.f32 %v874_v12 }
 0x276   :  { %4815 = vst [vmem:[#allocation37_spill] sm:$0xff] %v3869_v21  ;;  %v3880_v24 = vpop.eup %3034  ;;  %3054 = vpow2.f32 %v912_v29  ;;  %v916_v6 = vmul.f32 1.442695, %v847_v61  ;;  %v855_v29 = vsub.f32 %v3721_v36, %v3914_v19  ;;  %v902_v36 = vmul.f32 1.442695, %v840_v56 }
 0x277   :  { %1027 = vperm.xlu0 %2992, %v3857_v33   ;;  %4816 = vst [vmem:[#allocation38_spill] sm:$0xff] %v3880_v24  ;;  %v3882_v43 = vpop.eup %3036  ;;  %3056 = vpow2.f32 %v888_v10 }
 0x278   :  { %997 = vperm.xlu1 %2991, %v3859_v52   ;;  %4817 = vst [vmem:[#allocation39_spill] sm:$0xff] %v3882_v43  ;;  %v3894_v32 = vpop.eup %3038  ;;  %3058 = vpow2.f32 %v920_v48  ;;  %v932_v58 = vmul.f32 1.442695, %v855_v29  ;;  %v844_v48 = vsub.f32 %v3612_v42, %v3850_v44  ;;  %v904_v42 = vmul.f32 1.442695, %v841_v46 }
 0x279   :  { %4818 = vst [vmem:[#allocation40_spill] sm:$0xff] %v3894_v32  ;;  %v3896_v50 = vpop.eup %3040  ;;  %3060 = vpow2.f32 %v866_v11  ;;  %v934_v11 = vmul.f32 1.442695, %v856_v7  ;;  %v848_v44 = vsub.f32 %v3631_v26, %v3887_v14  ;;  %v4837_v7 = vld [vmem:[#allocation30_spill] sm:$0xff] }
 0x27a   :  { %v3907_v25 = vpop.eup %3042  ;;  %3062 = vpow2.f32 %v914_v18  ;;  %v910_v49 = vmul.f32 1.442695, %v844_v48 }
 0x27b   :  { %1006 = vperm.xlu0 %2992, %v3867_v23   ;;  %4820 = vst [vmem:[#allocation42_spill] sm:$0xff] %v3907_v25  ;;  %v3909_v13 = vpop.eup %3044  ;;  %3064 = vpow2.f32 %v884_v0  ;;  %v918_v16 = vmul.f32 1.442695, %v848_v44  ;;  %v857_v44 = vsub.f32 %v3763_v1, %v3914_v19 }
 0x27c   :  { %985 = vperm.xlu1 %2991, %v3869_v21   ;;  %4821 = vst [vmem:[#allocation43_spill] sm:$0xff] %v3909_v13  ;;  %v3921_v47 = vpop.eup %3046  ;;  %3066 = vpow2.f32 %v928_v3  ;;  %v842_v3 = vsub.f32 %v3603_v38, %v3824_v37  ;;  %v854_v37 = vsub.f32 %v3742_v8, %v3914_v19 }
 0x27d   :  { %v3923_v59 = vpop.eup %3048  ;;  %3068 = vpow2.f32 %v898_v54 }
 0x27e   :  { %4822 = vst [vmem:[#allocation44_spill] sm:$0xff] %v3923_v59  ;;  %v3931_v62 = vpop.eup %3050  ;;  %3070 = vpow2.f32 %v916_v6  ;;  %v906_v26 = vmul.f32 1.442695, %v842_v3  ;;  %v850_v6 = vsub.f32 %v4833_v40, %v3887_v14  ;;  %v936_v3 = vmul.f32 1.442695, %v857_v44 }
 0x27f   :  { %1030 = vperm.xlu0 %2992, %v3880_v24   ;;  %4823 = vst [vmem:[#allocation45_spill] sm:$0xff] %v3931_v62  ;;  %v3933_v41 = vpop.eup %3052  ;;  %3072 = vpow2.f32 %v886_v9 }
 0x280   :  { %1000 = vperm.xlu1 %2991, %v3882_v43   ;;  %v3941_v12 = vpop.eup %3054  ;;  %3074 = vpow2.f32 %v932_v58  ;;  %v922_v38 = vmul.f32 1.442695, %v850_v6  ;;  %v930_v58 = vmul.f32 1.442695, %v854_v37 }
 0x281   :  { %4824 = vst [vmem:[#allocation46_spill] sm:$0xff] %v3941_v12  ;;  %v3943_v31 = vpop.eup %3056  ;;  %3076 = vpow2.f32 %v902_v36  ;;  %v851_v36 = vsub.f32 %v4837_v7, %v3887_v14 }
 0x282   :  { %v3951_v10 = vpop.eup %3058  ;;  %3078 = vpow2.f32 %v934_v11 }
 0x283   :  { %1042 = vperm.xlu0 %2992, %v3894_v32   ;;  %4825 = vst [vmem:[#allocation47_spill] sm:$0xff] %v3951_v10  ;;  %v3953_v60 = vpop.eup %3060  ;;  %3080 = vpow2.f32 %v910_v49  ;;  %v924_v11 = vmul.f32 1.442695, %v851_v36  ;;  %v4839_v49 = vld [vmem:[#allocation32_spill] sm:$0xff] }
 0x284   :  { %1009 = vperm.xlu1 %2991, %v3896_v50   ;;  %v3961_v4 = vpop.eup %3062  ;;  %3082 = vpow2.f32 %v904_v42  ;;  %v852_v46 = vsub.f32 %v4839_v49, %v3887_v14 }
 0x285   :  { %4826 = vst [vmem:[#allocation48_spill] sm:$0xff] %v3961_v4  ;;  %v3963_v27 = vpop.eup %3064  ;;  %3084 = vpow2.f32 %v918_v16 }
 0x286   :  { %v3969_v18 = vpop.eup %3066  ;;  %3086 = vpow2.f32 %v906_v26  ;;  %v926_v8 = vmul.f32 1.442695, %v852_v46 }
 0x287   :  { %1033 = vperm.xlu0 %2992, %v3907_v25   ;;  %4827 = vst [vmem:[#allocation49_spill] sm:$0xff] %v3969_v18  ;;  %v3971_v55 = vpop.eup %3068  ;;  %3088 = vpow2.f32 %v922_v38 }
 0x288   :  { %1012 = vperm.xlu1 %2991, %v3909_v13   ;;  %4828 = vst [vmem:[#allocation50_spill] sm:$0xff] %v3971_v55  ;;  %v3977_v0 = vpop.eup %3070  ;;  %3090 = vpow2.f32 %v930_v58 }
 0x289   :  { %4829 = vst [vmem:[#allocation51_spill] sm:$0xff] %v3977_v0  ;;  %v3979_v57 = vpop.eup %3072  ;;  %3092 = vpow2.f32 %v924_v11 }
 0x28a   :  { %4830 = vst [vmem:[#allocation52_spill] sm:$0xff] %v3979_v57  ;;  %v3985_v61 = vpop.eup %3074  ;;  %3094 = vpow2.f32 %v926_v8 }
 0x28b   :  { %1054 = vperm.xlu0 %2992, %v3921_v47   ;;  %4831 = vst [vmem:[#allocation53_spill] sm:$0xff] %v3985_v61  ;;  %v3987_v54 = vpop.eup %3076  ;;  %3096 = vpow2.f32 %v936_v3 }
 0x28c   :  { %988 = vperm.xlu1 %2991, %v3923_v59   ;;  %4832 = vst [vmem:[#allocation54_spill] sm:$0xff] %v3987_v54  ;;  %v3993_v29 = vpop.eup %3078 }
 0x28d   :  { %4834 = vst [vmem:[#allocation29_spill] sm:$0xff] %v3993_v29  ;;  %v3995_v9 = vpop.eup %3080 }
 0x28e   :  { %4835 = vst [vmem:[#allocation55_spill] sm:$0xff] %v3995_v9  ;;  %v4001_v56 = vpop.eup %3082 }
 0x28f   :  { %1036 = vperm.xlu0 %2992, %v3931_v62   ;;  %4836 = vst [vmem:[#allocation56_spill] sm:$0xff] %v4001_v56  ;;  %v4006_v48 = vpop.eup %3084 }
 0x290   :  { %1003 = vperm.xlu1 %2991, %v3933_v41   ;;  %4838 = vst [vmem:[#allocation30_spill] sm:$0xff] %v4006_v48  ;;  %v4011_v42 = vpop.eup %3086 }
 0x291   :  { %4840 = vst [vmem:[#allocation32_spill] sm:$0xff] %v4011_v42  ;;  %v4016_v16 = vpop.eup %3088 }
 0x292   :  { %4841 = vst [vmem:[#allocation57_spill] sm:$0xff] %v4016_v16  ;;  %v4019_v26 = vpop.eup %3090 }
 0x293   :  { %1060 = vperm.xlu0 %2992, %v3941_v12   ;;  %4842 = vst [vmem:[#allocation58_spill] sm:$0xff] %v4019_v26  ;;  %v4022_v14 = vpop.eup %3092 }
 0x294   :  { %1024 = vperm.xlu1 %2991, %v3943_v31   ;;  %4843 = vst [vmem:[#allocation59_spill] sm:$0xff] %v4022_v14  ;;  %v4025_v40 = vpop.eup %3094 }
 0x295   :  { %4844 = vst [vmem:[#allocation60_spill] sm:$0xff] %v4025_v40  ;;  %v4028_v1 = vpop.eup %3096 }
 0x296   :  { %4845 = vst [vmem:[#allocation61_spill] sm:$0xff] %v4028_v1 }
 0x297   :  { %1072 = vperm.xlu0 %2992, %v3951_v10  }
 0x298   :  { %991 = vperm.xlu1 %2991, %v3953_v60  }
 0x29b   :  { %1063 = vperm.xlu0 %2992, %v3961_v4  }
 0x29c   :  { %1018 = vperm.xlu1 %2991, %v3963_v27  }
 0x29f   :  { %1084 = vperm.xlu0 %2992, %v3969_v18  }
 0x2a0   :  { %1039 = vperm.xlu1 %2991, %v3971_v55   ;;  %v4846_v55 = vld [vmem:[#allocation27_spill] sm:$0xff] }
 0x2a3   :  { %1066 = vperm.xlu0 %2992, %v3977_v0  }
 0x2a4   :  { %1021 = vperm.xlu1 %2991, %v3979_v57  }
 0x2a7   :  { %1090 = vperm.xlu0 %2992, %v3985_v61  }
 0x2a8   :  { %1045 = vperm.xlu1 %2991, %v3987_v54  }
 0x2ab   :  { %1093 = vperm.xlu0 %2992, %v3993_v29  }
 0x2ac   :  { %1057 = vperm.xlu1 %2991, %v3995_v9  }
 0x2b0   :  { %1048 = vperm.xlu1 %2991, %v4001_v56  }
 0x2b4   :  { %1069 = vperm.xlu1 %2991, %v4006_v48  }
 0x2b8   :  { %1051 = vperm.xlu1 %2991, %v4011_v42  }
 0x2bc   :  { %1075 = vperm.xlu1 %2991, %v4016_v16  }
 0x2c0   :  { %1087 = vperm.xlu1 %2991, %v4019_v26  }
 0x2c4   :  { %1078 = vperm.xlu1 %2991, %v4022_v14  }
 0x2c8   :  { %1081 = vperm.xlu1 %2991, %v4025_v40  }
 0x2cc   :  { %1096 = vperm.xlu1 %2991, %v4028_v1  }
 0x2ee   :  { %v983_v19 = vpop.permute.xlu0 %982 }
 0x2ef   :  { %v980_v6 = vpop.permute.xlu1 %979  ;;  %v1105_v42 = vrot.slane %v983_v19, %v4846_v55 }
 0x2f0   :  { %v1101_v56 = vrot.slane %v980_v6, %v4847_v17 }
 0x2f2   :  { %v4031_v37 = vpop.permute.xlu0 %1015  ;;  %v1106_v19 = vsel %vm567_vm4, %v1105_v42, %v1101_v56 }
 0x2f3   :  { %v995_v38 = vpop.permute.xlu1 %994  ;;  %v1158_v6 = vrot.slane %v4031_v37, %v3623_v15 }
 0x2f4   :  { %v1125_v12 = vrot.slane %v995_v38, %v4847_v17 }
 0x2f6   :  { %v1028_v7 = vpop.permute.xlu0 %1027 }
 0x2f7   :  { %v998_v58 = vpop.permute.xlu1 %997 }
 0x2f8   :  { %v1129_v33 = vrot.slane %v998_v58, %v4846_v55 }
 0x2fa   :  { %v1007_v49 = vpop.permute.xlu0 %1006 }
 0x2fb   :  { %v986_v36 = vpop.permute.xlu1 %985 }
 0x2fc   :  { %v1110_v26 = vrot.slane %v986_v36, %v3623_v15  ;;  %v1177_v36 = vrot.slane %v1028_v7, %v4846_v55 }
 0x2fe   :  { %v1031_v8 = vpop.permute.xlu0 %1030 }
 0x2ff   :  { %v1001_v11 = vpop.permute.xlu1 %1000  ;;  %v1182_v56 = vrot.slane %v1031_v8, %v3623_v15 }
 0x300   :  { %v1134_v39 = vrot.slane %v1001_v11, %v3623_v15  ;;  %v1130_v11 = vsel %vm567_vm4, %v1129_v33, %v1125_v12 }
 0x302   :  { %v4033_v0 = vpop.permute.xlu0 %1042  ;;  %v1135_v42 = vsel %vm574_vm5, %v1134_v39, %v1130_v11 }
 0x303   :  { %v1010_v46 = vpop.permute.xlu1 %1009 }
 0x304   :  { %v1149_v13 = vrot.slane %v1010_v46, %v4847_v17 }
 0x306   :  { %v4035_v4 = vpop.permute.xlu0 %1033 }
 0x307   :  { %v1013_v44 = vpop.permute.xlu1 %1012 }
 0x308   :  { %v1153_v43 = vrot.slane %v1013_v44, %v4846_v55  ;;  %v1144_v44 = vrot.slane %v1007_v49, %v3629_v28  ;;  %v1201_v49 = vrot.slane %v4033_v0, %v4846_v55 }
 0x30a   :  { %v1055_v62 = vpop.permute.xlu0 %1054 }
 0x30b   :  { %v989_v3 = vpop.permute.xlu1 %988 }
 0x30c   :  { %v1115_v38 = vrot.slane %v989_v3, %v3626_v63 }
 0x30e   :  { %v4037_v25 = vpop.permute.xlu0 %1036 }
 0x30f   :  { %v1004_v40 = vpop.permute.xlu1 %1003  ;;  %v1192_v0 = vrot.slane %v4037_v25, %v3629_v28 }
 0x310   :  { %v1139_v21 = vrot.slane %v1004_v40, %v3626_v63  ;;  %v1111_v40 = vsel %vm574_vm5, %v1110_v26, %v1106_v19  ;;  %v1187_v26 = vrot.slane %v4035_v4, %v3626_v63 }
 0x312   :  { %v4041_v23 = vpop.permute.xlu0 %1060  ;;  %v1140_v37 = vsel %vm581_vm6, %v1139_v21, %v1135_v42  ;;  %v1116_v21 = vsel %vm581_vm6, %v1115_v38, %v1111_v40 }
 0x313   :  { %v1025_v1 = vpop.permute.xlu1 %1024 }
 0x314   :  { %v1173_v57 = vrot.slane %v1025_v1, %v4847_v17  ;;  %v1154_v1 = vsel %vm567_vm4, %v1153_v43, %v1149_v13  ;;  %v1221_v43 = vrot.slane %v1055_v62, %v4847_v17  ;;  %v1230_v62 = vrot.slane %v4041_v23, %v3623_v15 }
 0x315   :  { %v1159_v13 = vsel %vm574_vm5, %v1158_v6, %v1154_v1 }
 0x316   :  { %v4045_v24 = vpop.permute.xlu0 %1072  ;;  %v1178_v7 = vsel %vm567_vm4, %v1177_v36, %v1173_v57  ;;  %v1145_v57 = vsel %vm588_vm7, %v1144_v44, %v1140_v37 }
 0x317   :  { %v992_v16 = vpop.permute.xlu1 %991  ;;  %v1183_v4 = vsel %vm574_vm5, %v1182_v56, %v1178_v7  ;;  %v1249_v11 = vrot.slane %v4045_v24, %v4846_v55 }
 0x318   :  { %v1120_v33 = vrot.slane %v992_v16, %v3629_v28  ;;  %v1188_v23 = vsel %vm581_vm6, %v1187_v26, %v1183_v4 }
 0x31a   :  { %v4049_v14 = vpop.permute.xlu0 %1063 }
 0x31b   :  { %v1019_v18 = vpop.permute.xlu1 %1018 }
 0x31c   :  { %v1163_v12 = vrot.slane %v1019_v18, %v3626_v63 }
 0x31e   :  { %v4053_v61 = vpop.permute.xlu0 %1084  ;;  %v1164_v16 = vsel %vm581_vm6, %v1163_v12, %v1159_v13 }
 0x31f   :  { %v4039_v10 = vpop.permute.xlu1 %1039  ;;  %v1269_v40 = vrot.slane %v4053_v61, %v4847_v17 }
 0x320   :  { %v1197_v18 = vrot.slane %v4039_v10, %v4847_v17 }
 0x322   :  { %v4074_v48 = vpop.permute.xlu0 %1066  ;;  %v1202_v44 = vsel %vm567_vm4, %v1201_v49, %v1197_v18 }
 0x323   :  { %v1022_v54 = vpop.permute.xlu1 %1021 }
 0x324   :  { %v1168_v46 = vrot.slane %v1022_v54, %v3629_v28 }
 0x326   :  { %v1091_v3 = vpop.permute.xlu0 %1090  ;;  %v1169_v25 = vsel %vm588_vm7, %v1168_v46, %v1164_v16  ;;  %v1193_v46 = vsel %vm588_vm7, %v1192_v0, %v1188_v23 }
 0x327   :  { %v4043_v9 = vpop.permute.xlu1 %1045  ;;  %v1278_v12 = vrot.slane %v1091_v3, %v3623_v15 }
 0x328   :  { %v1206_v54 = vrot.slane %v4043_v9, %v3623_v15 }
 0x32a   :  { %v1094_v49 = vpop.permute.xlu0 %1093 }
 0x32b   :  { %v1058_v29 = vpop.permute.xlu1 %1057  ;;  %v1283_v18 = vrot.slane %v1094_v49, %v3626_v63  ;;  %v4856_v49 = vld [vmem:[#allocation35_spill] sm:$0xff] }
 0x32c   :  { %v1225_v39 = vrot.slane %v1058_v29, %v4846_v55  ;;  %v1121_v29 = vsel %vm588_vm7, %v1120_v33, %v1116_v21 }
 0x32d   :  { %v1290_v38 = vsel %vm758_vm8, %v1145_v57, %v1121_v29 }
 0x32e   :  { %v1226_v19 = vsel %vm567_vm4, %v1225_v39, %v1221_v43  ;;  %v1291_v42 = vsel %vm760_vm9, %v1169_v25, %v1290_v38  ;;  %v1240_v43 = vrot.slane %v4074_v48, %v3629_v28 }
 0x32f   :  { %v4047_v59 = vpop.permute.xlu1 %1048  ;;  %v1231_v1 = vsel %vm574_vm5, %v1230_v62, %v1226_v19 }
 0x330   :  { %v1211_v10 = vrot.slane %v4047_v59, %v3626_v63 }
 0x333   :  { %v4051_v32 = vpop.permute.xlu1 %1069 }
 0x334   :  { %v1245_v59 = vrot.slane %v4051_v32, %v4847_v17  ;;  %v1235_v32 = vrot.slane %v4049_v14, %v3626_v63  ;;  %v1292_v14 = vsel %vm762_vm10, %v1193_v46, %v1291_v42 }
 0x337   :  { %v4057_v22 = vpop.permute.xlu1 %1051 }
 0x338   :  { %v1216_v6 = vrot.slane %v4057_v22, %v3629_v28  ;;  %v1207_v22 = vsel %vm574_vm5, %v1206_v54, %v1202_v44 }
 0x339   :  { %v1212_v24 = vsel %vm581_vm6, %v1211_v10, %v1207_v22 }
 0x33a   :  { %v1217_v7 = vsel %vm588_vm7, %v1216_v6, %v1212_v24 }
 0x33b   :  { %v1076_v58 = vpop.permute.xlu1 %1075  ;;  %v1293_v13 = vsel %vm764_vm11, %v1217_v7, %v1292_v14  ;;  %v4854_v7 = vld [vmem:[#allocation41_spill] sm:$0xff]  ;;  %v4859_v14 = vld [vmem:[#allocation34_spill] sm:$0xff] }
 0x33c   :  { %v1254_v56 = vrot.slane %v1076_v58, %v3623_v15  ;;  %v1250_v58 = vsel %vm567_vm4, %v1249_v11, %v1245_v59 }
 0x33e   :  { %v1255_v39 = vsel %vm574_vm5, %v1254_v56, %v1250_v58  ;;  %v4849_v56 = vld [vmem:[#allocation43_spill] sm:$0xff] }
 0x33f   :  { %v1088_v8 = vpop.permute.xlu1 %1087 }
 0x340   :  { %v1273_v9 = vrot.slane %v1088_v8, %v4846_v55  ;;  %v1236_v8 = vsel %vm581_vm6, %v1235_v32, %v1231_v1  ;;  %v4851_v1 = vld [vmem:[#allocation37_spill] sm:$0xff] }
 0x341   :  { %v1241_v54 = vsel %vm588_vm7, %v1240_v43, %v1236_v8 }
 0x342   :  { %v1274_v33 = vsel %vm567_vm4, %v1273_v9, %v1269_v40  ;;  %v1294_v29 = vsel %vm766_vm12, %v1241_v54, %v1293_v13  ;;  %v4861_v13 = vld [vmem:[#allocation50_spill] sm:$0xff] }
 0x343   :  { %v1079_v36 = vpop.permute.xlu1 %1078  ;;  %v1279_v15 = vsel %vm574_vm5, %v1278_v12, %v1274_v33  ;;  %vm2189_vm5 = vcmask 64512  }
 0x344   :  { %v1259_v37 = vrot.slane %v1079_v36, %v3626_v63  ;;  %v1284_v62 = vsel %vm581_vm6, %v1283_v18, %v1279_v15 }
 0x346   :  { %v1260_v21 = vsel %vm581_vm6, %v1259_v37, %v1255_v39  ;;  %v4858_v39 = vld [vmem:[#allocation56_spill] sm:$0xff] }
 0x347   :  { %v1082_v61 = vpop.permute.xlu1 %1081 }
 0x348   :  { %v1264_v26 = vrot.slane %v1082_v61, %v3629_v28  ;;  %v4855_v61 = vld [vmem:[#allocation58_spill] sm:$0xff] }
 0x34a   :  { %v1265_v57 = vsel %vm588_vm7, %v1264_v26, %v1260_v21  ;;  %v4857_v26 = vld [vmem:[#allocation33_spill] sm:$0xff]  ;;  %v4860_v21 = vld [vmem:[#allocation32_spill] sm:$0xff] }
 0x34b   :  { %v1097_v0 = vpop.permute.xlu1 %1096  ;;  %v1295_v16 = vsel %vm768_vm13, %v1265_v57, %v1294_v29  ;;  %v4862_v57 = vld [vmem:[#allocation53_spill] sm:$0xff] }
 0x34c   :  { %v1288_v4 = vrot.slane %v1097_v0, %v3629_v28 }
 0x34e   :  { %v1289_v48 = vsel %vm588_vm7, %v1288_v4, %v1284_v62  ;;  %v4863_v4 = vld [vmem:[#allocation40_spill] sm:$0xff]  ;;  %v4864_v62 = vld [vmem:[#allocation59_spill] sm:$0xff] }
 0x34f   :  { %v1296_v3 = vsel %vm770_vm14, %v1289_v48, %v1295_v16  ;;  %v4865_v48 = vld [vmem:[#allocation44_spill] sm:$0xff] }
 0x350   :  { %v1298_v10 = vsel %vm773_vm15, %v1296_v3, 0.0  ;;  %v4866_v3 = vld [vmem:[#allocation29_spill] sm:$0xff] }
 0x351   :  { %1299 = vadd.xlane.f32.xlu0 %v1298_v10 }
 0x3de   :  { %v1300_v63 = vpop.xlane.xlu0 %1299 }
 0x3df   :  { %3098 = vrcp.f32 %v1300_v63  ;;  %v4867_v63 = vld [vmem:[#allocation38_spill] sm:$0xff] }
 0x3e9   :  { %v3099_v25 = vpop.eup %3098 }
 0x3ea   :  { %v4154_v28 = vrot.slane %v3099_v25, %v3783_v35  ;;  %v1306_v19 = vrot.slane %v3099_v25, %v3279_v30  ;;  %v1310_v36 = vrot.slane %v3099_v25, %v3777_v53  ;;  %v4164_v44 = vrot.slane %v3099_v25, %v3836_v20 }
 0x3eb   :  { %v1330_v22 = vrot.slane %v3099_v25, %v3873_v45  ;;  %v1334_v33 = vrot.slane %v3099_v25, %v4854_v7  ;;  %v1322_v46 = vrot.slane %v3099_v25, %v4857_v26 }
 0x3ec   :  { %v1358_v6 = vmul.f32 %v3943_v31, %v4154_v28  ;;  %v1343_v9 = vmul.f32 %v3832_v51, %v1306_v19  ;;  %v1351_v23 = vmul.f32 %v3933_v41, %v1310_v36  ;;  %v1344_v11 = vmul.f32 %v3830_v5, %v1306_v19 }
 0x3ed   :  { %v1368_v59 = vmul.f32 %v3921_v47, %v4164_v44  ;;  %v1348_v31 = vmul.f32 %v3845_v34, %v1310_v36  ;;  %v1347_v51 = vmul.f32 %v3953_v60, %v1306_v19  ;;  %v1349_v38 = vmul.f32 %v3859_v52, %v1310_v36  ;;  %v4848_v47 = vld [vmem:[#allocation30_spill] sm:$0xff]  ;;  %v4850_v60 = vld [vmem:[#allocation52_spill] sm:$0xff] }
 0x3ee   :  { %1460 = vperm.xlu0 %2992, %v1358_v6   ;;  %1385 = vperm.xlu1 %2991, %v1343_v9   ;;  %v1314_v41 = vrot.slane %v3099_v25, %v3780_v2  ;;  %v1373_v34 = vmul.f32 %v4848_v47, %v1330_v22  ;;  %v1345_v24 = vmul.f32 %v4851_v1, %v1306_v19  ;;  %v4868_v6 = vld [vmem:[#allocation55_spill] sm:$0xff]  ;;  %v4874_v47 = vld [vmem:[#allocation45_spill] sm:$0xff] }
 0x3ef   :  { %v1379_v12 = vmul.f32 %v4855_v61, %v1334_v33  ;;  %v1359_v58 = vmul.f32 %v4856_v49, %v4154_v28  ;;  %v1366_v8 = vmul.f32 %v4858_v39, %v1322_v46  ;;  %v1367_v15 = vmul.f32 %v4860_v21, %v1322_v46  ;;  %v3003_v61 = vld [vmem:[%s4633_s11 + $0x8] sm:$0xff]  }
 0x3f0   :  { %v1356_v5 = vmul.f32 %v3963_v27, %v1314_v41  ;;  %v1353_v40 = vmul.f32 %v3896_v50, %v1314_v41  ;;  %v1354_v42 = vmul.f32 %v4849_v56, %v1314_v41  ;;  %v1357_v52 = vmul.f32 %v4850_v60, %v1314_v41  ;;  %v4852_v27 = vld [vmem:[#allocation46_spill] sm:$0xff]  ;;  %v4853_v50 = vld [vmem:[#allocation39_spill] sm:$0xff]  ;;  %v4875_v56 = vld [vmem:[#allocation57_spill] sm:$0xff] }
 0x3f1   :  { %v1370_v37 = vmul.f32 %v4852_v27, %v4164_v44  ;;  %v1350_v32 = vmul.f32 %v4853_v50, %v1310_v36  ;;  %v1355_v43 = vmul.f32 %v4859_v14, %v1314_v41  ;;  %v1363_v18 = vmul.f32 %v4861_v13, %v1322_v46 }
 0x3f2   :  { %1425 = vperm.xlu0 %2992, %v1351_v23   ;;  %1390 = vperm.xlu1 %2991, %v1344_v11   ;;  %v1380_v0 = vmul.f32 %v4862_v57, %v1334_v33  ;;  %v1364_v54 = vmul.f32 %v4863_v4, %v1322_v46  ;;  %v1376_v29 = vmul.f32 %v4864_v62, %v1330_v22  ;;  %v4869_v23 = vld [vmem:[#allocation36_spill] sm:$0xff]  ;;  %v3009_v4 = vld [vmem:[%s4633_s11 + $0x38] sm:$0xff]  }
 0x3f3   :  { %v1346_v16 = vmul.f32 %v4865_v48, %v1306_v19  ;;  %v1381_v10 = vmul.f32 %v4866_v3, %v1334_v33  ;;  %v1360_v25 = vmul.f32 %v4867_v63, %v4154_v28  ;;  %v1369_v9 = vmul.f32 %v4868_v6, %v4164_v44  ;;  %v4871_v19 = vld [vmem:[#allocation47_spill] sm:$0xff]  ;;  %v4884_v62 = vld [vmem:[#allocation5_spill] sm:$0xff] }
 0x3f4   :  { %v1352_v11 = vmul.f32 %v4869_v23, %v1310_v36  ;;  %v1375_v36 = vmul.f32 %v4875_v56, %v1330_v22  ;;  %v4888_v23 = vld [vmem:[#allocation8_spill] sm:$0xff] }
 0x3f6   :  { %1510 = vperm.xlu0 %2992, %v1368_v59   ;;  %1410 = vperm.xlu1 %2991, %v1348_v31   ;;  %v4870_v59 = vld [vmem:[#allocation54_spill] sm:$0xff] }
 0x3f7   :  { %v1365_v31 = vmul.f32 %v4870_v59, %v1322_v46 }
 0x3fa   :  { %1405 = vperm.xlu0 %2992, %v1347_v51   ;;  %1415 = vperm.xlu1 %2991, %v1349_v38   ;;  %v1374_v51 = vmul.f32 %v4871_v19, %v1330_v22  ;;  %v4872_v38 = vld [vmem:[#allocation42_spill] sm:$0xff] }
 0x3fb   :  { %v1361_v41 = vmul.f32 %v4872_v38, %v4154_v28 }
 0x3fe   :  { %1450 = vperm.xlu0 %2992, %v1356_v5   ;;  %1435 = vperm.xlu1 %2991, %v1353_v40   ;;  %v4873_v5 = vld [vmem:[#allocation49_spill] sm:$0xff] }
 0x3ff   :  { %v1378_v40 = vmul.f32 %v4873_v5, %v1334_v33  ;;  %v4891_v5 = vld [vmem:[#allocation6_spill] sm:$0xff] }
 0x402   :  { %1535 = vperm.xlu0 %2992, %v1373_v34   ;;  %1440 = vperm.xlu1 %2991, %v1354_v42   ;;  %v1362_v34 = vmul.f32 %v4874_v47, %v4154_v28  ;;  %v4876_v42 = vld [vmem:[#allocation48_spill] sm:$0xff]  ;;  %v3002_v28 = vld [vmem:[%s4633_s11] sm:$0xff]  }
 0x403   :  { %v1371_v60 = vmul.f32 %v4876_v42, %v4164_v44  ;;  %2941 = vmatpush3.bf16.msra.mxu1 %v3002_v28 }
 0x406   :  { %1455 = vperm.xlu0 %2992, %v1357_v52   ;;  %1395 = vperm.xlu1 %2991, %v1345_v24   ;;  %v4877_v52 = vld [vmem:[#allocation51_spill] sm:$0xff]  ;;  %v4878_v24 = vld [vmem:[#allocation60_spill] sm:$0xff] }
 0x407   :  { %v1372_v1 = vmul.f32 %v4877_v52, %v4164_v44  ;;  %v1377_v27 = vmul.f32 %v4878_v24, %v1330_v22  ;;  %v3004_v44 = vld [vmem:[%s4633_s11 + $0x10] sm:$0xff]   ;;  %v3005_v22 = vld [vmem:[%s4633_s11 + $0x18] sm:$0xff]  }
 0x40a   :  { %1520 = vperm.xlu0 %2992, %v1370_v37   ;;  %1420 = vperm.xlu1 %2991, %v1350_v32   ;;  %v4879_v37 = vld [vmem:[#allocation61_spill] sm:$0xff]  ;;  %v4880_v32 = vmov 0.0  }
 0x40b   :  { %v1382_v50 = vmul.f32 %v4879_v37, %v1334_v33  ;;  %2942 = vmatprep.subr.bf16.mxu1 %v4880_v32  ;;  %v123_v33 = vld [vmem:[%s4634_s4] sm:$0xff] }
 0x40c   :  { %2943 = vmatpush3.bf16.msra.mxu1 %v3003_v61 }
 0x40d   :  { %2944 = vmatprep.subr.bf16.mxu1 %v4880_v32 }
 0x40e   :  { %1565 = vperm.xlu0 %2992, %v1379_v12   ;;  %1465 = vperm.xlu1 %2991, %v1359_v58   ;;  %v3006_v12 = vld [vmem:[%s4633_s11 + $0x20] sm:$0xff]   ;;  %v3007_v58 = vld [vmem:[%s4633_s11 + $0x28] sm:$0xff]  }
 0x410   :  { %2945 = vmatpush3.bf16.msra.mxu1 %v3004_v44 }
 0x411   :  { %2946 = vmatprep.subr.bf16.mxu1 %v4880_v32 }
 0x412   :  { %1500 = vperm.xlu0 %2992, %v1366_v8   ;;  %1445 = vperm.xlu1 %2991, %v1355_v43   ;;  %v4881_v8 = vld [vmem:[#allocation3_spill] sm:$0xff] }
 0x413   :  { %v4882_v14 = vunpack.c.l.bf16 %v4881_v8  ;;  %v4883_v21 = vunpack.c.h.bf16 %v4881_v8 }
 0x414   :  { %2947 = vmatpush3.bf16.msra.mxu1 %v3005_v22  ;;  %v4896_v22 = vld [vmem:[#allocation15_spill] sm:$0xff] }
 0x415   :  { %2948 = vmatprep.subr.bf16.mxu1 %v4880_v32 }
 0x416   :  { %1505 = vperm.xlu0 %2992, %v1367_v15   ;;  %1485 = vperm.xlu1 %2991, %v1363_v18   ;;  %v3008_v18 = vld [vmem:[%s4633_s11 + $0x30] sm:$0xff]  }
 0x418   :  { %2949 = vmatpush3.bf16.msra.mxu1 %v3006_v12 }
 0x419   :  { %2950 = vmatprep.subr.bf16.mxu1 %v4880_v32 }
 0x41a   :  { %1570 = vperm.xlu0 %2992, %v1380_v0   ;;  %1490 = vperm.xlu1 %2991, %v1364_v54  }
 0x41c   :  { %2951 = vmatpush3.bf16.msra.mxu1 %v3007_v58 }
 0x41d   :  { %2952 = vmatprep.subr.bf16.mxu1 %v4880_v32 }
 0x41e   :  { %1550 = vperm.xlu0 %2992, %v1376_v29   ;;  %1400 = vperm.xlu1 %2991, %v1346_v16   ;;  %v4885_v29 = vunpack.c.l.bf16 %v4884_v62  ;;  %v4886_v16 = vld [vmem:[#allocation7_spill] sm:$0xff] }
 0x41f   :  { %v4887_v3 = vunpack.c.l.bf16 %v4886_v16 }
 0x420   :  { %2953 = vmatpush3.bf16.msra.mxu1 %v3008_v18 }
 0x421   :  { %2954 = vmatprep.subr.bf16.mxu1 %v4880_v32 }
 0x422   :  { %1575 = vperm.xlu0 %2992, %v1381_v10   ;;  %1470 = vperm.xlu1 %2991, %v1360_v25  }
 0x424   :  { %2955 = vmatpush3.bf16.msra.mxu1 %v3009_v4 }
 0x426   :  { %1515 = vperm.xlu1 %2991, %v1369_v9  }
 0x42a   :  { %1430 = vperm.xlu1 %2991, %v1352_v11   ;;  %v4889_v11 = vunpack.c.l.bf16 %v4888_v23 }
 0x42e   :  { %1495 = vperm.xlu1 %2991, %v1365_v31   ;;  %v4890_v31 = vunpack.c.h.bf16 %v4888_v23 }
 0x432   :  { %1540 = vperm.xlu1 %2991, %v1374_v51  }
 0x436   :  { %1475 = vperm.xlu1 %2991, %v1361_v41  }
 0x43a   :  { %1560 = vperm.xlu1 %2991, %v1378_v40   ;;  %v4892_v40 = vunpack.c.l.bf16 %v4891_v5 }
 0x43e   :  { %1480 = vperm.xlu1 %2991, %v1362_v34  }
 0x442   :  { %1545 = vperm.xlu1 %2991, %v1375_v36  }
 0x446   :  { %1525 = vperm.xlu1 %2991, %v1371_v60  }
 0x44a   :  { %1530 = vperm.xlu1 %2991, %v1372_v1   ;;  %v4893_v1 = vld [vmem:[#allocation9_spill] sm:$0xff] }
 0x44b   :  { %v4894_v24 = vunpack.c.l.bf16 %v4893_v1  ;;  %v4895_v61 = vunpack.c.h.bf16 %v4893_v1 }
 0x44e   :  { %1555 = vperm.xlu1 %2991, %v1377_v27  }
 0x452   :  { %1580 = vperm.xlu1 %2991, %v1382_v50  }
 0x456   :  { %1926 = vrot.lane.b32.xlu1 %v123_v33, %s3118_s7  ;;  %v4897_v33 = vunpack.c.l.bf16 %v4896_v22  ;;  %v4905_v22 = vld [vmem:[#allocation10_spill] sm:$0xff] }
 0x46d   :  { %v1386_v49 = vpop.permute.xlu1 %1385  ;;  %v4242_v39 = vpop.permute.xlu0 %1460 }
 0x46e   :  { %v1583_v43 = vmul.f32 %v4882_v14, %v1386_v49 }
 0x471   :  { %v1391_v46 = vpop.permute.xlu1 %1390  ;;  %v1426_v0 = vpop.permute.xlu0 %1425 }
 0x472   :  { %v1584_v15 = vmul.f32 %v4883_v21, %v1391_v46  ;;  %v4898_v46 = vld [vmem:[#allocation4_spill] sm:$0xff] }
 0x473   :  { %v4899_v8 = vunpack.c.l.bf16 %v4898_v46 }
 0x474   :  { %v1623_v13 = vadd.f32 %v1584_v15, %v1583_v43 }
 0x475   :  { %v1411_v57 = vpop.permute.xlu1 %1410  ;;  %v4260_v6 = vpop.permute.xlu0 %1510 }
 0x476   :  { %v1588_v48 = vmul.f32 %v1411_v57, %v4885_v29 }
 0x479   :  { %v1416_v54 = vpop.permute.xlu1 %1415  ;;  %v1406_v51 = vpop.permute.xlu0 %1405 }
 0x47a   :  { %v1589_v10 = vmul.f32 %v4887_v3, %v1416_v54  ;;  %v1587_v14 = vmul.f32 %v1406_v51, %v4899_v8  ;;  %v4901_v3 = vunpack.c.h.bf16 %v4886_v16 }
 0x47c   :  { %v1634_v63 = vadd.f32 %v1589_v10, %v1588_v48  ;;  %v1626_v4 = vsel %vm435_vm3, %v1587_v14, 0.0 }
 0x47d   :  { %v1436_v25 = vpop.permute.xlu1 %1435  ;;  %v1451_v36 = vpop.permute.xlu0 %1450 }
 0x47e   :  { %v1593_v59 = vmul.f32 %v4889_v11, %v1436_v25  ;;  %v1596_v44 = vmul.f32 %v4895_v61, %v1451_v36 }
 0x481   :  { %v1441_v9 = vpop.permute.xlu1 %1440  ;;  %v4268_v60 = vpop.permute.xlu0 %1535 }
 0x482   :  { %v1594_v19 = vmul.f32 %v4890_v31, %v1441_v9 }
 0x484   :  { %v1645_v38 = vadd.f32 %v1594_v19, %v1593_v59  ;;  %v4902_v19 = vunpack.c.h.bf16 %v4884_v62 }
 0x485   :  { %v1396_v41 = vpop.permute.xlu1 %1395  ;;  %v1456_v50 = vpop.permute.xlu0 %1455 }
 0x486   :  { %v1585_v47 = vmul.f32 %v4892_v40, %v1396_v41  ;;  %v1597_v12 = vmul.f32 %v1456_v50, %v4897_v33  ;;  %v1591_v51 = vmul.f32 %v1426_v0, %v4902_v19  ;;  %v4903_v40 = vld [vmem:[#allocation11_spill] sm:$0xff]  ;;  %v4906_v33 = vunpack.c.h.bf16 %v4905_v22 }
 0x488   :  { %v1624_v34 = vadd.f32 %v1623_v13, %v1585_v47  ;;  %v1648_v43 = vsel %vm435_vm3, %v1597_v12, 0.0  ;;  %v4900_v13 = vunpack.c.h.bf16 %v4891_v5  ;;  %v4904_v47 = vunpack.c.l.bf16 %v4903_v40 }
 0x489   :  { %v1421_v56 = vpop.permute.xlu1 %1420  ;;  %v4284_v31 = vpop.permute.xlu0 %1520 }
 0x48a   :  { %v1590_v10 = vmul.f32 %v4901_v3, %v1421_v56 }
 0x48c   :  { %v1635_v59 = vadd.f32 %v1634_v63, %v1590_v10  ;;  %v4912_v10 = vld [vmem:[#allocation18_spill] sm:$0xff] }
 0x48d   :  { %v1466_v42 = vpop.permute.xlu1 %1465 }
 0x48e   :  { %v1636_v36 = vadd.f32 %v1635_v59, %v1591_v51 }
 0x491   :  { %v1446_v52 = vpop.permute.xlu1 %1445 }
 0x492   :  { %v1595_v27 = vmul.f32 %v4894_v24, %v1446_v52  ;;  %v1566_v24 = vpop.permute.xlu0 %1565 }
 0x494   :  { %v1646_v28 = vadd.f32 %v1645_v38, %v1595_v27 }
 0x495   :  { %v1486_v37 = vpop.permute.xlu1 %1485 }
 0x496   :  { %v1647_v58 = vadd.f32 %v1646_v28, %v1596_v44  ;;  %v1501_v44 = vpop.permute.xlu0 %1500 }
 0x498   :  { %v1649_v15 = vadd.f32 %v1648_v43, %v1647_v58  ;;  %v4907_v43 = vunpack.c.l.bf16 %v4905_v22 }
 0x499   :  { %v1491_v49 = vpop.permute.xlu1 %1490 }
 0x49a   :  { %v1650_v29 = vrot.slane %v1649_v15, 4  ;;  %v1604_v12 = vmul.f32 %v4906_v33, %v1491_v49 }
 0x49c   :  { %v1651_v23 = vadd.f32 %v1650_v29, %v1649_v15  ;;  %v4908_v15 = vld [vmem:[#allocation13_spill] sm:$0xff] }
 0x49d   :  { %v1401_v21 = vpop.permute.xlu1 %1400 }
 0x49e   :  { %v1586_v18 = vmul.f32 %v4900_v13, %v1401_v21  ;;  %v1652_v5 = vrot.slane %v1651_v23, 2  ;;  %v1603_v21 = vmul.f32 %v4907_v43, %v1486_v37  ;;  %v4909_v13 = vunpack.c.l.bf16 %v4908_v15  ;;  %v1506_v37 = vpop.permute.xlu0 %1505 }
 0x4a0   :  { %v1625_v57 = vadd.f32 %v1624_v34, %v1586_v18  ;;  %v1653_v27 = vadd.f32 %v1652_v5, %v1651_v23  ;;  %v1667_v3 = vadd.f32 %v1604_v12, %v1603_v21 }
 0x4a1   :  { %v1471_v54 = vpop.permute.xlu1 %1470 }
 0x4a2   :  { %v1627_v48 = vadd.f32 %v1626_v4, %v1625_v57  ;;  %v1654_v62 = vrot.slane %v1653_v27, 1  ;;  %v4910_v57 = vld [vmem:[#allocation12_spill] sm:$0xff] }
 0x4a3   :  { %v4911_v4 = vunpack.c.l.bf16 %v4910_v57 }
 0x4a4   :  { %v1628_v25 = vrot.slane %v1627_v48, 4  ;;  %v1655_v14 = vadd.f32 %v1654_v62, %v1653_v27  ;;  %v4920_v62 = vld [vmem:[#allocation20_spill] sm:$0xff] }
 0x4a5   :  { %v1516_v9 = vpop.permute.xlu1 %1515  ;;  %v1599_v29 = vmul.f32 %v4911_v4, %v1466_v42 }
 0x4a6   :  { %v1629_v11 = vadd.f32 %v1628_v25, %v1627_v48  ;;  %v4913_v25 = vunpack.c.l.bf16 %v4912_v10 }
 0x4a8   :  { %v1630_v38 = vrot.slane %v1629_v11, 2  ;;  %v1598_v23 = vmul.f32 %v4242_v39, %v4913_v25 }
 0x4a9   :  { %v1431_v41 = vpop.permute.xlu1 %1430 }
 0x4aa   :  { %v1592_v34 = vmul.f32 %v1431_v41, %v4904_v47  ;;  %v1631_v56 = vadd.f32 %v1630_v38, %v1629_v11  ;;  %v4914_v11 = vunpack.c.h.bf16 %v4910_v57  ;;  %v1774_v38 = vpack.c.bf16 %v1655_v14, %v1655_v14  ;;  %v4915_v47 = vld [vmem:[#allocation14_spill] sm:$0xff] }
 0x4ab   :  { %v1656_v5 = vadd.f32 %v1599_v29, %v1598_v23  ;;  %v4924_v57 = vunpack.c.h.bf16 %v4915_v47 }
 0x4ac   :  { %v1637_v16 = vsel %vm435_vm3, %v1592_v34, 0.0  ;;  %v1632_v50 = vrot.slane %v1631_v56, 1  ;;  %v1600_v59 = vmul.f32 %v4914_v11, %v1471_v54  ;;  %v4916_v34 = vunpack.c.l.bf16 %v4915_v47 }
 0x4ad   :  { %v1638_v52 = vadd.f32 %v1637_v16, %v1636_v36  ;;  %v1496_v1 = vpop.permute.xlu1 %1495  ;;  %v4917_v36 = vunpack.c.h.bf16 %v4908_v15  ;;  %v1608_v4 = vmul.f32 %v4260_v6, %v4924_v57  ;;  %v4931_v6 = vld [vmem:[#allocation22_spill] sm:$0xff] }
 0x4ae   :  { %v1633_v58 = vadd.f32 %v1632_v50, %v1631_v56  ;;  %v1605_v18 = vmul.f32 %v4909_v13, %v1496_v1  ;;  %v4918_v56 = vld [vmem:[#allocation16_spill] sm:$0xff]  ;;  %v1657_v27 = vadd.f32 %v1656_v5, %v1600_v59  ;;  %v1806_v50 = vunpack.c.l.b16 %v1774_v38  ;;  %v1571_v13 = vpop.permute.xlu0 %1570 }
 0x4af   :  { %v1639_v63 = vrot.slane %v1638_v52, 4  ;;  %v1606_v16 = vmul.f32 %v4917_v36, %v1501_v44  ;;  %v4932_v47 = vunpack.c.l.bf16 %v4931_v6 }
 0x4b0   :  { %v1772_v49 = vpack.c.bf16 %v1633_v58, %v1633_v58  ;;  %v1668_v41 = vadd.f32 %v1667_v3, %v1605_v18  ;;  %v4925_v3 = vld [vmem:[#allocation19_spill] sm:$0xff] }
 0x4b1   :  { %v1640_v28 = vadd.f32 %v1639_v63, %v1638_v52  ;;  %v1541_v61 = vpop.permute.xlu1 %1540  ;;  %v4919_v52 = vunpack.c.l.bf16 %v4918_v56  ;;  %v4926_v25 = vunpack.c.h.bf16 %v4925_v3  ;;  %v4927_v59 = vunpack.c.l.bf16 %v4925_v3 }
 0x4b2   :  { %v1804_v1 = vunpack.c.l.b16 %v1772_v49  ;;  %v1551_v36 = vpop.permute.xlu0 %1550 }
 0x4b3   :  { %v1641_v0 = vrot.slane %v1640_v28, 2  ;;  %v1607_v39 = vmul.f32 %v1506_v37, %v4919_v52  ;;  %v1614_v23 = vmul.f32 %v4926_v25, %v1541_v61 }
 0x4b5   :  { %v1642_v46 = vadd.f32 %v1641_v0, %v1640_v28  ;;  %v1476_v8 = vpop.permute.xlu1 %1475  ;;  %v1669_v28 = vadd.f32 %v1668_v41, %v1606_v16  ;;  %v4921_v0 = vunpack.c.l.bf16 %v4920_v62  ;;  %v4929_v41 = vld [vmem:[#allocation23_spill] sm:$0xff]  ;;  %v4934_v16 = vld [vmem:[#allocation25_spill] sm:$0xff] }
 0x4b6   :  { %v1601_v42 = vmul.f32 %v1476_v8, %v4916_v34  ;;  %v4922_v8 = vld [vmem:[#allocation17_spill] sm:$0xff]  ;;  %v4930_v5 = vunpack.c.l.bf16 %v4929_v41  ;;  %v4935_v56 = vunpack.c.l.bf16 %v4934_v16 }
 0x4b7   :  { %v1643_v48 = vrot.slane %v1642_v46, 1  ;;  %v4923_v14 = vunpack.c.l.bf16 %v4922_v8  ;;  %v4928_v38 = vunpack.c.h.bf16 %v4922_v8  ;;  %v1576_v8 = vpop.permute.xlu0 %1575 }
 0x4b8   :  { %v1658_v12 = vadd.f32 %v1657_v27, %v1601_v42  ;;  %v4933_v42 = vunpack.c.h.bf16 %v4912_v10  ;;  %v1619_v52 = vmul.f32 %v4935_v56, %v1566_v24  ;;  %v4938_v10 = vunpack.c.h.bf16 %v4934_v16 }
 0x4b9   :  { %v1644_v19 = vadd.f32 %v1643_v48, %v1642_v46  ;;  %v1561_v51 = vpop.permute.xlu1 %1560  ;;  %v1670_v46 = vsel %vm435_vm3, %v1607_v39, 0.0  ;;  %v1609_v43 = vmul.f32 %v4923_v14, %v1516_v9  ;;  %v1610_v37 = vmul.f32 %v4928_v38, %v4284_v31 }
 0x4ba   :  { %v1671_v18 = vadd.f32 %v1670_v46, %v1669_v28 }
 0x4bb   :  { %v1773_v40 = vpack.c.bf16 %v1644_v19, %v1644_v19  ;;  %v1678_v48 = vadd.f32 %v1609_v43, %v1608_v4  ;;  %v1613_v19 = vmul.f32 %v4927_v59, %v4268_v60  ;;  %v4940_v43 = vld [vmem:[#allocation24_spill] sm:$0xff]  ;;  %v4943_v59 = vld [vmem:[#allocation26_spill] sm:$0xff] }
 0x4bc   :  { %v1672_v9 = vrot.slane %v1671_v18, 4 }
 0x4bd   :  { %v1805_v63 = vunpack.c.l.b16 %v1773_v40  ;;  %v1481_v54 = vpop.permute.xlu1 %1480  ;;  %v1618_v40 = vmul.f32 %v1561_v51, %v4930_v5  ;;  %v1689_v39 = vadd.f32 %v1614_v23, %v1613_v19  ;;  %v4944_v19 = vunpack.c.l.bf16 %v4943_v59 }
 0x4be   :  { %v1602_v22 = vmul.f32 %v1481_v54, %v4921_v0  ;;  %v4936_v54 = vld [vmem:[#allocation21_spill] sm:$0xff] }
 0x4bf   :  { %v1812_v33 = vsel %vm758_vm8, %v1805_v63, %v1804_v1  ;;  %v1679_v1 = vadd.f32 %v1678_v48, %v1610_v37  ;;  %v1673_v63 = vadd.f32 %v1672_v9, %v1671_v18  ;;  %v4937_v31 = vunpack.c.l.bf16 %v4936_v54 }
 0x4c0   :  { %v4314_v58 = vsel %vm760_vm9, %v1806_v50, %v1812_v33  ;;  %v1659_v44 = vsel %vm435_vm3, %v1602_v22, 0.0  ;;  %v1700_v28 = vadd.f32 %v1619_v52, %v1618_v40  ;;  %v1620_v22 = vmul.f32 %v4938_v10, %v1571_v13 }
 0x4c1   :  { %v1660_v21 = vadd.f32 %v1659_v44, %v1658_v12  ;;  %v1546_v15 = vpop.permute.xlu1 %1545  ;;  %v4939_v33 = vunpack.c.h.bf16 %v4931_v6  ;;  %v1674_v14 = vrot.slane %v1673_v63, 2  ;;  %v4942_v48 = vunpack.c.h.bf16 %v4929_v41 }
 0x4c2   :  { %v1615_v34 = vmul.f32 %v4932_v47, %v1546_v15  ;;  %v1701_v18 = vadd.f32 %v1700_v28, %v1620_v22 }
 0x4c3   :  { %v1661_v29 = vrot.slane %v1660_v21, 4  ;;  %v1616_v12 = vmul.f32 %v4939_v33, %v1551_v36  ;;  %v1621_v3 = vmul.f32 %v1576_v8, %v4942_v48 }
 0x4c4   :  { %v1690_v51 = vadd.f32 %v1689_v39, %v1615_v34 }
 0x4c5   :  { %v1662_v49 = vadd.f32 %v1661_v29, %v1660_v21  ;;  %v1526_v11 = vpop.permute.xlu1 %1525  ;;  %v4941_v21 = vunpack.c.l.bf16 %v4940_v43  ;;  %v1702_v5 = vadd.f32 %v1701_v18, %v1621_v3 }
 0x4c6   :  { %v1611_v61 = vmul.f32 %v1526_v11, %v4933_v42  ;;  %v1691_v57 = vadd.f32 %v1690_v51, %v1616_v12 }
 0x4c7   :  { %v1663_v60 = vrot.slane %v1662_v49, 2 }
 0x4c8   :  { %v1680_v62 = vadd.f32 %v1679_v1, %v1611_v61 }
 0x4c9   :  { %v1531_v27 = vpop.permute.xlu1 %1530  ;;  %v1664_v24 = vadd.f32 %v1663_v60, %v1662_v49  ;;  %v1675_v49 = vadd.f32 %v1674_v14, %v1673_v63 }
 0x4ca   :  { %v1612_v50 = vmul.f32 %v1531_v27, %v4937_v31 }
 0x4cb   :  { %v1665_v13 = vrot.slane %v1664_v24, 1  ;;  %v1676_v61 = vrot.slane %v1675_v49, 1 }
 0x4cc   :  { %v1681_v0 = vsel %vm435_vm3, %v1612_v50, 0.0 }
 0x4cd   :  { %v1682_v44 = vadd.f32 %v1681_v0, %v1680_v62  ;;  %v1556_v46 = vpop.permute.xlu1 %1555  ;;  %v1666_v6 = vadd.f32 %v1665_v13, %v1664_v24  ;;  %v1677_v1 = vadd.f32 %v1676_v61, %v1675_v49 }
 0x4ce   :  { %v1617_v15 = vmul.f32 %v1556_v46, %v4941_v21 }
 0x4cf   :  { %v1683_v4 = vrot.slane %v1682_v44, 4  ;;  %v1775_v56 = vpack.c.bf16 %v1666_v6, %v1666_v6  ;;  %v1776_v51 = vpack.c.bf16 %v1677_v1, %v1677_v1  ;;  %v3010_v6 = vld [vmem:[%s4636_s13] sm:$0xff]  }
 0x4d0   :  { %v1692_v29 = vsel %vm435_vm3, %v1617_v15, 0.0  ;;  %2961 = vmatpush3.bf16.msra.mxu0 %v3010_v6  ;;  %v4393_v1 = vld [vmem:[%s4637_s5] sm:$0xff]  }
 0x4d1   :  { %v1684_v25 = vadd.f32 %v1683_v4, %v1682_v44  ;;  %v1693_v23 = vadd.f32 %v1692_v29, %v1691_v57  ;;  %v1581_v11 = vpop.permute.xlu1 %1580  ;;  %v1807_v54 = vunpack.c.l.b16 %v1775_v56  ;;  %v1808_v12 = vunpack.c.l.b16 %v1776_v51  ;;  %v4945_v57 = vld [vmem:[#allocation31_spill] sm:$0xff]  ;;  %2962 = vmatprep.subr.bf16.mxu0 %v4880_v32 }
 0x4d2   :  { %v1622_v9 = vmul.f32 %v1581_v11, %v4944_v19  ;;  %v2868_v51 = vunpack.c.l.bf16 %v4393_v1 }
 0x4d3   :  { %v1685_v38 = vrot.slane %v1684_v25, 2  ;;  %v1694_v37 = vrot.slane %v1693_v23, 4  ;;  %v1814_v10 = vsel %vm762_vm10, %v1807_v54, %v4314_v58  ;;  %v2775_v58 = vld [vmem:[%s4635_s12] ss:$0 sm:$0xff] }
 0x4d4   :  { %v1703_v40 = vsel %vm435_vm3, %v1622_v9, 0.0  ;;  %v1815_v46 = vsel %vm764_vm11, %v1808_v12, %v1814_v10 }
 0x4d5   :  { %v1686_v47 = vadd.f32 %v1685_v38, %v1684_v25  ;;  %v1695_v34 = vadd.f32 %v1694_v37, %v1693_v23  ;;  %v1704_v42 = vadd.f32 %v1703_v40, %v1702_v5  ;;  %v1927_v38 = vpop.permute.xlu1 %1926 }
 0x4d7   :  { %v1687_v41 = vrot.slane %v1686_v47, 1  ;;  %v1696_v36 = vrot.slane %v1695_v34, 2  ;;  %v1705_v16 = vrot.slane %v1704_v42, 4 }
 0x4d9   :  { %v1688_v52 = vadd.f32 %v1687_v41, %v1686_v47  ;;  %v1697_v39 = vadd.f32 %v1696_v36, %v1695_v34  ;;  %v1706_v60 = vadd.f32 %v1705_v16, %v1704_v42  ;;  %v3011_v47 = vld [vmem:[%s4636_s13 + $0x8] sm:$0xff]  }
 0x4da   :  { %2963 = vmatpush3.bf16.msra.mxu0 %v3011_v47 }
 0x4db   :  { %v1698_v27 = vrot.slane %v1697_v39, 1  ;;  %v1707_v63 = vrot.slane %v1706_v60, 2  ;;  %v1777_v31 = vpack.c.bf16 %v1688_v52, %v1688_v52  ;;  %2968 = vmatprep.subr.bf16.mxu0 %v4880_v32  ;;  %v4946_v52 = vld [vmem:[#allocation2_spill] sm:$0xff] }
 0x4dd   :  { %v1699_v50 = vadd.f32 %v1698_v27, %v1697_v39  ;;  %v1708_v28 = vadd.f32 %v1707_v63, %v1706_v60  ;;  %v1809_v22 = vunpack.c.l.b16 %v1777_v31 }
 0x4df   :  { %v1778_v62 = vpack.c.bf16 %v1699_v50, %v1699_v50  ;;  %v1709_v0 = vrot.slane %v1708_v28, 1  ;;  %v1816_v14 = vsel %vm766_vm12, %v1809_v22, %v1815_v46  ;;  %v2869_v22 = vunpack.c.h.bf16 %v4393_v1  ;;  %v4412_v46 = vld [vmem:[%s4637_s5 + $0x10] sm:$0xff]  }
 0x4e1   :  { %v1710_v33 = vadd.f32 %v1709_v0, %v1708_v28  ;;  %v1810_v24 = vunpack.c.l.b16 %v1778_v62  ;;  %v4400_v28 = vld [vmem:[%s4637_s5 + $0x8] sm:$0xff]  }
 0x4e3   :  { %v1779_v44 = vpack.c.bf16 %v1710_v33, %v1710_v33  ;;  %v1817_v43 = vsel %vm768_vm13, %v1810_v24, %v1816_v14  ;;  %v2873_v24 = vunpack.c.h.bf16 %v4400_v28 }
 0x4e5   :  { %v1811_v8 = vunpack.c.l.b16 %v1779_v44  ;;  %v2872_v44 = vunpack.c.l.bf16 %v4400_v28 }
 0x4e7   :  { %v1818_v21 = vsel %vm770_vm14, %v1811_v8, %v1817_v43 }
 0x4e8   :  { %v1819_v15 = vpack.c.b16 %v1818_v21, %v1818_v21 }
 0x4ea   :  { %2957 = vmatmul.mubr.bf16.vlgmr.msra.gmra.mrb[4].mxu1 %v1819_v15 }
 0x5bd   :  { %v1903_v18 = vpop.f32.mrb[4].mxu1 }
 0x5be   :  { %v1909_v4 = vadd.f32 %v1903_v18, %v4945_v57  ;;  %v2958_v29 = vpop.f32.mrb[5].mxu1  ;;  %v2877_v57 = vunpack.c.h.bf16 %v4412_v46 }
 0x5bf   :  { %v1906_v48 = vpop.f32.mrb[6].mxu1 }
 0x5c0   :  { %v1917_v3 = vadd.f32 %v2775_v58, %v1909_v4  ;;  %v2959_v13 = vpop.f32.mrb[7].mxu1  ;;  %v2876_v4 = vunpack.c.l.bf16 %v4412_v46 }
 0x5c2   :  { %3100 = vtanh.f32 %v1917_v3  ;;  %v2776_v23 = vmul.f32 -1.442695, %v1917_v3 }
 0x5c4   :  { %3102 = vpow2.f32 %v2776_v23 }
 0x5cc   :  { %v3101_v25 = vpop.eup %3100 }
 0x5cd   :  { %1931 = vrot.lane.b32.xlu0 %v3101_v25, %s3119_s0 }
 0x5ce   :  { %v3103_v11 = vpop.eup %3102 }
 0x5cf   :  { %v1921_v49 = vadd.f32 1.0, %v3103_v11 }
 0x5d1   :  { %3104 = vrcp.f32 %v1921_v49 }
 0x5db   :  { %v3105_v59 = vpop.eup %3104 }
 0x5dc   :  { %v1929_v37 = vmul.f32 %v3105_v59, %v1927_v38 }
 0x63f   :  { %v1932_v19 = vpop.permute.xlu0 %1931 }
 0x640   :  { %v1934_v9 = vmul.f32 %v3105_v59, %v1932_v19 }
 0x642   :  { %1936 = vrot.lane.b32.xlu0 %v1934_v9, %s3118_s7 }
 0x6b4   :  { %v1937_v5 = vpop.permute.xlu0 %1936 }
 0x6b5   :  { %v4365_v40 = vadd.f32 %v1937_v5, %v1929_v37 }
 0x6b7   :  { %3106 = vtanh.f32 %v4365_v40 }
 0x6c1   :  { %v3107_v34 = vpop.eup %3106 }
 0x6c2   :  { %1942 = vrot.lane.b32.xlu1 %v3107_v34, %s3119_s0 }
 0x734   :  { %v1943_v42 = vpop.permute.xlu1 %1942 }
 0x735   :  { %v4376_v61 = vmul.f32 %v3105_v59, %v1943_v42  ;;  %v4435_v59 = vld [vmem:[%s4637_s5 + $0x18] sm:$0xff]  }
 0x736   :  { %v2881_v38 = vunpack.c.h.bf16 %v4435_v59  ;;  %v2880_v47 = vunpack.c.l.bf16 %v4435_v59 }
 0x737   :  { %v1946_v41 = vpack.c.bf16 %v4376_v61, %v4376_v61 }
 0x739   :  { %1952 = vrot.lane.b32.xlu0 %v1946_v41, %s3118_s7 }
 0x7ab   :  { %v1953_v36 = vpop.permute.xlu0 %1952 }
 0x7ac   :  { %2965 = vmatmul.mubr.msk.bf16.vlgmr.msra.gmra.mrb[8].mxu0 %vm212_vm2, %v1953_v36 }
 0x7ad   :  { %2972 = vmatprep.mubr.msk.bf16.mxu0 %vm3115_vm0, %v4880_v32 }
 0x87f   :  { %v4384_v16 = vpop.f32.mrb[8].mxu0 }
 0x880   :  { %v2010_v56 = vcombine.high %v4384_v16, %v4384_v16  ;;  %v2017_v39 = vrot.slane %v4384_v16, %v4946_v52  ;;  %v2966_v60 = vpop.f32.mrb[9].mxu0 }
 0x881   :  { %v2006_v27 = vpop.f32.mrb[10].mxu0 }
 0x882   :  { %v2024_v63 = vrot.slane %v2010_v56, %v4946_v52  ;;  %v2025_v54 = vcombine.high %v2017_v39, %v2017_v39  ;;  %v2033_v31 = vrot.slane %v2017_v39, %v4946_v52  ;;  %v2967_v50 = vpop.f32.mrb[11].mxu0 }
 0x884   :  { %v2026_v62 = vcombine.high %v2024_v63, %v2024_v63  ;;  %v2047_v0 = vrot.slane %v2025_v54, %v4946_v52  ;;  %v2055_v10 = vcombine.high %v2033_v31, %v2033_v31  ;;  %v2040_v33 = vrot.slane %v2024_v63, %v4946_v52 }
 0x885   :  { %v2070_v12 = vrot.slane %v2033_v31, %v3279_v30 }
 0x886   :  { %v2074_v8 = vrot.slane %v2047_v0, %v3279_v30  ;;  %v2057_v14 = vcombine.high %v2047_v0, %v2047_v0  ;;  %v2078_v43 = vrot.slane %v2055_v10, %v3279_v30  ;;  %v2054_v21 = vrot.slane %v2026_v62, %v4946_v52 }
 0x887   :  { %v2107_v15 = vmul.f32 %v2868_v51, %v2070_v12  ;;  %v2086_v3 = vrot.slane %v2040_v33, %v3279_v30  ;;  %v2056_v49 = vcombine.high %v2040_v33, %v2040_v33 }
 0x888   :  { %v2108_v18 = vmul.f32 %v2869_v22, %v2074_v8  ;;  %v2082_v58 = vrot.slane %v2057_v14, %v3279_v30  ;;  %v2090_v48 = vrot.slane %v2054_v21, %v3279_v30  ;;  %v2058_v13 = vcombine.high %v2054_v21, %v2054_v21 }
 0x889   :  { %v2115_v29 = vsel %vm212_vm2, %v2107_v15, 0.0  ;;  %v2109_v11 = vmul.f32 %v2872_v44, %v2078_v43  ;;  %v2111_v6 = vmul.f32 %v2876_v4, %v2086_v3  ;;  %v2094_v34 = vrot.slane %v2056_v49, %v3279_v30 }
 0x88a   :  { %2116 = vadd.xlane.f32.xlu1 %v2115_v29  ;;  %v2118_v25 = vsel %vm212_vm2, %v2108_v18, 0.0  ;;  %v2110_v23 = vmul.f32 %v2873_v24, %v2082_v58  ;;  %v2112_v9 = vmul.f32 %v2877_v57, %v2090_v48  ;;  %v2098_v37 = vrot.slane %v2058_v13, %v3279_v30  ;;  %v124_v58 = vld [vmem:[%s4638_s6] sm:$0xff]  ;;  %s3120_s6 = smov 96  }
 0x88b   :  { %2119 = vadd.xlane.f32.xlu0 %v2118_v25  ;;  %v2121_v5 = vsel %vm212_vm2, %v2109_v11, 0.0  ;;  %v2127_v36 = vsel %vm212_vm2, %v2111_v6, 0.0  ;;  %v2113_v56 = vmul.f32 %v2880_v47, %v2094_v34  ;;  %vm2139_vm3 = vcmp.gt.f32.partialorder %v124_v58, 0.5 }
 0x88c   :  { %v2124_v19 = vsel %vm212_vm2, %v2110_v23, 0.0  ;;  %v2130_v42 = vsel %vm212_vm2, %v2112_v9, 0.0  ;;  %v2114_v41 = vmul.f32 %v2881_v38, %v2098_v37 }
 0x88d   :  { %v2133_v60 = vsel %vm212_vm2, %v2113_v56, 0.0 }
 0x88e   :  { %2125 = vadd.xlane.f32.xlu1 %v2124_v19  ;;  %v2136_v39 = vsel %vm212_vm2, %v2114_v41, 0.0 }
 0x88f   :  { %2122 = vadd.xlane.f32.xlu0 %v2121_v5 }
 0x892   :  { %2131 = vadd.xlane.f32.xlu1 %v2130_v42 }
 0x893   :  { %2128 = vadd.xlane.f32.xlu0 %v2127_v36 }
 0x896   :  { %2137 = vadd.xlane.f32.xlu1 %v2136_v39 }
 0x897   :  { %2134 = vadd.xlane.f32.xlu0 %v2133_v60 }
 0x917   :  { %v2117_v27 = vpop.xlane.xlu1 %2116 }
 0x918   :  { %v2120_v63 = vpop.xlane.xlu0 %2119  ;;  %v2151_v50 = vrot.slane %v2117_v27, %v4847_v17 }
 0x919   :  { %v2155_v54 = vrot.slane %v2120_v63, %v4847_v17 }
 0x91b   :  { %v2126_v31 = vpop.xlane.xlu1 %2125  ;;  %v2180_v10 = vsel %vm758_vm8, %v2155_v54, %v2151_v50 }
 0x91c   :  { %v2123_v62 = vpop.xlane.xlu0 %2122  ;;  %v2163_v8 = vrot.slane %v2126_v31, %v4847_v17 }
 0x91d   :  { %v2159_v0 = vrot.slane %v2123_v62, %v4847_v17 }
 0x91f   :  { %v2181_v33 = vsel %vm760_vm9, %v2159_v0, %v2180_v10  ;;  %v2132_v12 = vpop.xlane.xlu1 %2131 }
 0x920   :  { %v2129_v14 = vpop.xlane.xlu0 %2128  ;;  %v2182_v21 = vsel %vm762_vm10, %v2163_v8, %v2181_v33  ;;  %v2171_v29 = vrot.slane %v2132_v12, %v4847_v17 }
 0x921   :  { %v2167_v43 = vrot.slane %v2129_v14, %v4847_v17 }
 0x923   :  { %v2183_v15 = vsel %vm764_vm11, %v2167_v43, %v2182_v21  ;;  %v2138_v18 = vpop.xlane.xlu1 %2137 }
 0x924   :  { %v2135_v48 = vpop.xlane.xlu0 %2134  ;;  %v2179_v13 = vrot.slane %v2138_v18, %v4847_v17  ;;  %v2184_v25 = vsel %vm766_vm12, %v2171_v29, %v2183_v15 }
 0x925   :  { %v2175_v3 = vrot.slane %v2135_v48, %v4847_v17 }
 0x927   :  { %v2185_v23 = vsel %vm768_vm13, %v2175_v3, %v2184_v25 }
 0x928   :  { %v2186_v11 = vsel %vm770_vm14, %v2179_v13, %v2185_v23 }
 0x929   :  { %v2188_v49 = vsel %vm2139_vm3, -1e+30, %v2186_v11 }
 0x92a   :  { %v2190_v19 = vsel %vm2189_vm5, %v2188_v49, -inf }
 0x92b   :  { %2191 = vmax.xlane.f32.xlu0 %v2190_v19 }
 0x9b8   :  { %v2192_v9 = vpop.xlane.xlu0 %2191 }
 0x9b9   :  { %v2193_v37 = vsub.f32 %v2188_v49, %v2192_v9 }
 0x9bb   :  { %v2194_v5 = vmul.f32 1.442695, %v2193_v37 }
 0x9bd   :  { %3108 = vpow2.f32 %v2194_v5 }
 0x9c7   :  { %v3109_v6 = vpop.eup %3108 }
 0x9c8   :  { %v2196_v34 = vsel %vm2189_vm5, %v3109_v6, 0.0 }
 0x9c9   :  { %2197 = vadd.xlane.f32.xlu1 %v2196_v34 }
 0xa56   :  { %v2198_v42 = vpop.xlane.xlu1 %2197 }
 0xa57   :  { %3110 = vrcp.f32 %v2198_v42 }
 0xa61   :  { %v3111_v41 = vpop.eup %3110 }
 0xa62   :  { %v2200_v36 = vmul.f32 %v3111_v41, %v3109_v6 }
 0xa64   :  { %v2211_v56 = vrot.slane %v2200_v36, %v3777_v53  ;;  %v2204_v39 = vrot.slane %v2200_v36, %v3279_v30  ;;  %v2218_v60 = vrot.slane %v2200_v36, %v3780_v2  ;;  %v2225_v27 = vrot.slane %v2200_v36, %v3783_v35  ;;  %v3012_v2 = vld [vmem:[%s4639_s14] sm:$0xff]   ;;  %v3013_v35 = vld [vmem:[%s4639_s14 + $0x8] sm:$0xff]  }
 0xa65   :  { %v2232_v63 = vrot.slane %v2200_v36, %v4857_v26  ;;  %v2239_v54 = vrot.slane %v2200_v36, %v3836_v20  ;;  %v2246_v31 = vrot.slane %v2200_v36, %v3873_v45  ;;  %v2253_v53 = vrot.slane %v2200_v36, %v4854_v7  ;;  %2969 = vmatpush3.bf16.msra.mxu0 %v3012_v2 }
 0xa66   :  { %2213 = vbcast.lane.b32.xlu1 %v2211_v56, 256  ;;  %2206 = vbcast.lane.b32.xlu0 %v2204_v39, 256 }
 0xa67   :  { %2970 = vmatprep.subr.bf16.mxu0 %v4880_v32 }
 0xa69   :  { %2971 = vmatpush3.bf16.msra.mxu0 %v3013_v35 }
 0xa6a   :  { %2220 = vbcast.lane.b32.xlu1 %v2218_v60, 256  ;;  %2227 = vbcast.lane.b32.xlu0 %v2225_v27, 256 }
 0xa6b   :  { %2976 = vmatprep.subr.bf16.mxu0 %v4880_v32 }
 0xa6e   :  { %2234 = vbcast.lane.b32.xlu1 %v2232_v63, 256  ;;  %2241 = vbcast.lane.b32.xlu0 %v2239_v54, 256 }
 0xa72   :  { %2248 = vbcast.lane.b32.xlu1 %v2246_v31, 256  ;;  %2255 = vbcast.lane.b32.xlu0 %v2253_v53, 256 }
 0xa76   :  { %2369 = vrot.lane.b32.xlu1 %v4384_v16, %s3120_s6 }
 0xad8   :  { %v2214_v20 = vpop.permute.xlu1 %2213  ;;  %v2207_v45 = vpop.permute.xlu0 %2206 }
 0xad9   :  { %v2258_v7 = vmul.f32 %v2869_v22, %v2214_v20  ;;  %v2257_v26 = vmul.f32 %v2868_v51, %v2207_v45 }
 0xadb   :  { %v2272_v16 = vsel %vm212_vm2, %v2258_v7, 0.0  ;;  %v2265_v50 = vsel %vm212_vm2, %v2257_v26, 0.0 }
 0xadc   :  { %v2273_v62 = vrot.slane %v2272_v16, 4  ;;  %v2266_v0 = vrot.slane %v2265_v50, 4  ;;  %v2221_v10 = vpop.permute.xlu1 %2220  ;;  %v2228_v33 = vpop.permute.xlu0 %2227 }
 0xadd   :  { %v2259_v12 = vmul.f32 %v2872_v44, %v2221_v10  ;;  %v2260_v8 = vmul.f32 %v2873_v24, %v2228_v33 }
 0xade   :  { %v2274_v14 = vadd.f32 %v2273_v62, %v2272_v16  ;;  %v2267_v43 = vadd.f32 %v2266_v0, %v2265_v50 }
 0xadf   :  { %v2279_v22 = vsel %vm212_vm2, %v2259_v12, 0.0  ;;  %v2286_v1 = vsel %vm212_vm2, %v2260_v8, 0.0 }
 0xae0   :  { %v2275_v51 = vrot.slane %v2274_v14, 2  ;;  %v2268_v21 = vrot.slane %v2267_v43, 2  ;;  %v2280_v15 = vrot.slane %v2279_v22, 4  ;;  %v2287_v18 = vrot.slane %v2286_v1, 4  ;;  %v2235_v58 = vpop.permute.xlu1 %2234  ;;  %v2242_v29 = vpop.permute.xlu0 %2241 }
 0xae1   :  { %v2261_v48 = vmul.f32 %v2876_v4, %v2235_v58  ;;  %v2262_v44 = vmul.f32 %v2877_v57, %v2242_v29 }
 0xae2   :  { %v2276_v28 = vadd.f32 %v2275_v51, %v2274_v14  ;;  %v2269_v24 = vadd.f32 %v2268_v21, %v2267_v43  ;;  %v2281_v3 = vadd.f32 %v2280_v15, %v2279_v22  ;;  %v2288_v13 = vadd.f32 %v2287_v18, %v2286_v1 }
 0xae3   :  { %v2293_v25 = vsel %vm212_vm2, %v2261_v48, 0.0  ;;  %v2300_v23 = vsel %vm212_vm2, %v2262_v44, 0.0 }
 0xae4   :  { %v2277_v11 = vrot.slane %v2276_v28, 1  ;;  %v2270_v49 = vrot.slane %v2269_v24, 1  ;;  %v2282_v19 = vrot.slane %v2281_v3, 2  ;;  %v2289_v9 = vrot.slane %v2288_v13, 2  ;;  %v2249_v37 = vpop.permute.xlu1 %2248  ;;  %v2256_v5 = vpop.permute.xlu0 %2255 }
 0xae5   :  { %v2294_v6 = vrot.slane %v2293_v25, 4  ;;  %v2301_v34 = vrot.slane %v2300_v23, 4  ;;  %v2263_v46 = vmul.f32 %v2880_v47, %v2249_v37  ;;  %v2264_v57 = vmul.f32 %v2881_v38, %v2256_v5 }
 0xae6   :  { %v2278_v4 = vadd.f32 %v2277_v11, %v2276_v28  ;;  %v2271_v42 = vadd.f32 %v2270_v49, %v2269_v24  ;;  %v2283_v41 = vadd.f32 %v2282_v19, %v2281_v3  ;;  %v2290_v36 = vadd.f32 %v2289_v9, %v2288_v13 }
 0xae7   :  { %v2295_v56 = vadd.f32 %v2294_v6, %v2293_v25  ;;  %v2302_v39 = vadd.f32 %v2301_v34, %v2300_v23  ;;  %v2307_v60 = vsel %vm212_vm2, %v2263_v46, 0.0  ;;  %v2314_v27 = vsel %vm212_vm2, %v2264_v57, 0.0  ;;  %v3014_v57 = vld [vmem:[%s4640_s15] sm:$0xff]  }
 0xae8   :  { %v2322_v63 = vpack.c.bf16 %v2278_v4, %v2278_v4  ;;  %v2321_v54 = vpack.c.bf16 %v2271_v42, %v2271_v42  ;;  %v2284_v31 = vrot.slane %v2283_v41, 1  ;;  %v2291_v53 = vrot.slane %v2290_v36, 1  ;;  %v3015_v4 = vld [vmem:[%s4640_s15 + $0x8] sm:$0xff]   ;;  %v2370_v42 = vpop.permute.xlu1 %2369 }
 0xae9   :  { %v2296_v2 = vrot.slane %v2295_v56, 2  ;;  %v2303_v35 = vrot.slane %v2302_v39, 2  ;;  %v2308_v47 = vrot.slane %v2307_v60, 4  ;;  %v2315_v20 = vrot.slane %v2314_v27, 4 }
 0xaea   :  { %v2285_v59 = vadd.f32 %v2284_v31, %v2283_v41  ;;  %v2292_v38 = vadd.f32 %v2291_v53, %v2290_v36  ;;  %v2342_v50 = vunpack.c.l.b16 %v2322_v63  ;;  %v2341_v62 = vunpack.c.l.b16 %v2321_v54 }
 0xaeb   :  { %v2297_v45 = vadd.f32 %v2296_v2, %v2295_v56  ;;  %v2304_v7 = vadd.f32 %v2303_v35, %v2302_v39  ;;  %v2309_v26 = vadd.f32 %v2308_v47, %v2307_v60  ;;  %v2316_v16 = vadd.f32 %v2315_v20, %v2314_v27  ;;  %v2835_v35 = vld [vmem:[%s4642_s2] sm:$0xff]  }
 0xaec   :  { %v2323_v0 = vpack.c.bf16 %v2285_v59, %v2285_v59  ;;  %v2324_v10 = vpack.c.bf16 %v2292_v38, %v2292_v38  ;;  %v2349_v15 = vsel %vm758_vm8, %v2342_v50, %v2341_v62  ;;  %v2893_v50 = vld [vmem:[%s4642_s2 + $0x8] sm:$0xff]  }
 0xaed   :  { %v2298_v33 = vrot.slane %v2297_v45, 1  ;;  %v2305_v12 = vrot.slane %v2304_v7, 1  ;;  %v2310_v8 = vrot.slane %v2309_v26, 2  ;;  %v2317_v14 = vrot.slane %v2316_v16, 2 }
 0xaee   :  { %v2343_v43 = vunpack.c.l.b16 %v2323_v0  ;;  %v2344_v18 = vunpack.c.l.b16 %v2324_v10 }
 0xaef   :  { %v2299_v22 = vadd.f32 %v2298_v33, %v2297_v45  ;;  %v2306_v1 = vadd.f32 %v2305_v12, %v2304_v7  ;;  %v2311_v51 = vadd.f32 %v2310_v8, %v2309_v26  ;;  %v2318_v21 = vadd.f32 %v2317_v14, %v2316_v16  ;;  %v2894_v16 = vld [vmem:[%s4642_s2 + $0x10] sm:$0xff]  }
 0xaf0   :  { %v2350_v58 = vsel %vm760_vm9, %v2343_v43, %v2349_v15  ;;  %v2837_v7 = vunpack.c.h.bf16 %v2835_v35  ;;  %v2836_v26 = vunpack.c.l.bf16 %v2835_v35  ;;  %v2844_v12 = vunpack.c.l.bf16 %v2894_v16 }
 0xaf1   :  { %v2325_v29 = vpack.c.bf16 %v2299_v22, %v2299_v22  ;;  %v2326_v48 = vpack.c.bf16 %v2306_v1, %v2306_v1  ;;  %v2312_v44 = vrot.slane %v2311_v51, 1  ;;  %v2319_v28 = vrot.slane %v2318_v21, 1 }
 0xaf2   :  { %v2351_v13 = vsel %vm762_vm10, %v2344_v18, %v2350_v58  ;;  %v2840_v8 = vunpack.c.l.bf16 %v2893_v50  ;;  %v2841_v15 = vunpack.c.h.bf16 %v2893_v50 }
 0xaf3   :  { %v2345_v24 = vunpack.c.l.b16 %v2325_v29  ;;  %v2313_v3 = vadd.f32 %v2312_v44, %v2311_v51  ;;  %v2346_v25 = vunpack.c.l.b16 %v2326_v48  ;;  %v2320_v23 = vadd.f32 %v2319_v28, %v2318_v21  ;;  %v2896_v51 = vld [vmem:[%s4642_s2 + $0x20] sm:$0xff]   ;;  %v2895_v28 = vld [vmem:[%s4642_s2 + $0x18] sm:$0xff]  }
 0xaf4   :  { %v2852_v18 = vunpack.c.l.bf16 %v2896_v51 }
 0xaf5   :  { %v2352_v11 = vsel %vm764_vm11, %v2345_v24, %v2351_v13  ;;  %v2327_v49 = vpack.c.bf16 %v2313_v3, %v2313_v3  ;;  %v2328_v19 = vpack.c.bf16 %v2320_v23, %v2320_v23  ;;  %v2845_v24 = vunpack.c.h.bf16 %v2894_v16 }
 0xaf6   :  { %v2353_v37 = vsel %vm766_vm12, %v2346_v25, %v2352_v11  ;;  %v2848_v3 = vunpack.c.l.bf16 %v2895_v28 }
 0xaf7   :  { %v2347_v9 = vunpack.c.l.b16 %v2327_v49  ;;  %v2348_v5 = vunpack.c.l.b16 %v2328_v19  ;;  %v2897_v49 = vld [vmem:[%s4642_s2 + $0x28] sm:$0xff]   ;;  %v2853_v19 = vunpack.c.h.bf16 %v2896_v51 }
 0xaf9   :  { %v2354_v6 = vsel %vm768_vm13, %v2347_v9, %v2353_v37  ;;  %v2856_v9 = vunpack.c.l.bf16 %v2897_v49 }
 0xafa   :  { %v2355_v34 = vsel %vm770_vm14, %v2348_v5, %v2354_v6 }
 0xafb   :  { %v2356_v46 = vpack.c.b16 %v2355_v34, %v2355_v34 }
 0xafd   :  { %2973 = vmatmul.mubr.msk.bf16.vlgmr.msra.gmra.mrb[12].mxu0 %vm212_vm2, %v2356_v46  ;;  %v2849_v46 = vunpack.c.h.bf16 %v2895_v28 }
 0xafe   :  { %2980 = vmatprep.mubr.msk.bf16.mxu0 %vm3115_vm0, %v4880_v32  ;;  %2977 = vmatpush3.bf16.msra.mxu0 %v3014_v57  ;;  %vm2738_vm0 = vcmask 1047680  }
 0xaff   :  { %2978 = vmatprep.subr.bf16.mxu0 %v4880_v32 }
 0xb02   :  { %2979 = vmatpush3.bf16.msra.mxu0 %v3015_v4 }
 0xbd0   :  { %v2409_v41 = vpop.f32.mrb[12].mxu0 }
 0xbd1   :  { %v2410_v36 = vadd.f32 %v2409_v41, %v2370_v42  ;;  %v2974_v56 = vpop.f32.mrb[13].mxu0 }
 0xbd2   :  { %v2412_v39 = vpop.f32.mrb[14].mxu0  ;;  %v2899_v56 = vld [vmem:[%s4642_s2 + $0x38] sm:$0xff]  }
 0xbd3   :  { %3112 = vtanh.f32 %v2410_v36  ;;  %v2975_v60 = vpop.f32.mrb[15].mxu0  ;;  %v2857_v39 = vunpack.c.h.bf16 %v2897_v49 }
 0xbdd   :  { %v3113_v27 = vpop.eup %3112 }
 0xbde   :  { %2640 = vst.msk [vmem:[%s4641_s19] sm:$0xff] %vm212_vm2, %v3113_v27  ;;  %v2416_v63 = vpack.c.bf16 %v3113_v27, %v3113_v27 }
 0xbe0   :  { %2981 = vmatmul.mubr.msk.bf16.vlgmr.msra.gmra.mrb[16].mxu0 %vm212_vm2, %v2416_v63  ;;  %v2864_v63 = vunpack.c.l.bf16 %v2899_v56 }
 0xcb3   :  { %v2470_v54 = vpop.f32.mrb[16].mxu0 }
 0xcb4   :  { %v2477_v31 = vcombine.high %v2470_v54, %v2470_v54  ;;  %v2484_v53 = vrot.slane %v2470_v54, %v4946_v52  ;;  %v2982_v2 = vpop.f32.mrb[17].mxu0 }
 0xcb5   :  { %v2473_v47 = vpop.f32.mrb[18].mxu0 }
 0xcb6   :  { %v2491_v20 = vrot.slane %v2477_v31, %v4946_v52  ;;  %v2492_v59 = vcombine.high %v2484_v53, %v2484_v53  ;;  %v2500_v38 = vrot.slane %v2484_v53, %v4946_v52  ;;  %v2983_v45 = vpop.f32.mrb[19].mxu0  ;;  %v2865_v47 = vunpack.c.h.bf16 %v2899_v56 }
 0xcb8   :  { %v2514_v62 = vrot.slane %v2492_v59, %v4946_v52  ;;  %v2522_v0 = vcombine.high %v2500_v38, %v2500_v38  ;;  %v2545_v10 = vrot.slane %v2500_v38, %v3279_v30  ;;  %v2507_v33 = vrot.slane %v2491_v20, %v4946_v52 }
 0xcb9   :  { %v2493_v21 = vcombine.high %v2491_v20, %v2491_v20 }
 0xcba   :  { %v2583_v14 = vmul.f32 %v2837_v7, %v2545_v10  ;;  %v2582_v43 = vmul.f32 %v2836_v26, %v2545_v10  ;;  %v2553_v22 = vrot.slane %v2522_v0, %v3279_v30  ;;  %v2549_v1 = vrot.slane %v2514_v62, %v3279_v30 }
 0xcbb   :  { %v2524_v58 = vcombine.high %v2514_v62, %v2514_v62  ;;  %v2561_v44 = vrot.slane %v2507_v33, %v3279_v30  ;;  %v2521_v13 = vrot.slane %v2493_v21, %v4946_v52  ;;  %v2523_v37 = vcombine.high %v2507_v33, %v2507_v33  ;;  %v2898_v52 = vld [vmem:[%s4642_s2 + $0x30] sm:$0xff]  }
 0xcbc   :  { %2600 = vadd.xlane.f32.xlu1 %v2583_v14  ;;  %2598 = vadd.xlane.f32.xlu0 %v2582_v43  ;;  %v2586_v29 = vmul.f32 %v2844_v12, %v2553_v22  ;;  %v2584_v48 = vmul.f32 %v2840_v8, %v2549_v1  ;;  %v2585_v25 = vmul.f32 %v2841_v15, %v2549_v1  ;;  %v2860_v57 = vunpack.c.l.bf16 %v2898_v52 }
 0xcbd   :  { %v2590_v23 = vmul.f32 %v2852_v18, %v2561_v44  ;;  %v2557_v11 = vrot.slane %v2524_v58, %v3279_v30  ;;  %v2587_v5 = vmul.f32 %v2845_v24, %v2553_v22  ;;  %v2565_v34 = vrot.slane %v2521_v13, %v3279_v30 }
 0xcbe   :  { %v2591_v4 = vmul.f32 %v2853_v19, %v2561_v44  ;;  %v2569_v41 = vrot.slane %v2523_v37, %v3279_v30  ;;  %v2525_v36 = vcombine.high %v2521_v13, %v2521_v13  ;;  %v2861_v2 = vunpack.c.h.bf16 %v2898_v52 }
 0xcbf   :  { %v2588_v6 = vmul.f32 %v2848_v3, %v2557_v11  ;;  %v2592_v42 = vmul.f32 %v2856_v9, %v2565_v34  ;;  %v2589_v60 = vmul.f32 %v2849_v46, %v2557_v11  ;;  %v2593_v31 = vmul.f32 %v2857_v39, %v2565_v34 }
 0xcc0   :  { %2606 = vadd.xlane.f32.xlu1 %v2586_v29  ;;  %2602 = vadd.xlane.f32.xlu0 %v2584_v48  ;;  %v2594_v27 = vmul.f32 %v2860_v57, %v2569_v41  ;;  %v2573_v54 = vrot.slane %v2525_v36, %v3279_v30  ;;  %v2595_v35 = vmul.f32 %v2861_v2, %v2569_v41 }
 0xcc2   :  { %v2596_v53 = vmul.f32 %v2864_v63, %v2573_v54  ;;  %v2597_v20 = vmul.f32 %v2865_v47, %v2573_v54 }
 0xcc4   :  { %2604 = vadd.xlane.f32.xlu0 %v2585_v25  ;;  %2614 = vadd.xlane.f32.xlu1 %v2590_v23 }
 0xcc8   :  { %2608 = vadd.xlane.f32.xlu0 %v2587_v5  ;;  %2610 = vadd.xlane.f32.xlu1 %v2588_v6 }
 0xccc   :  { %2616 = vadd.xlane.f32.xlu0 %v2591_v4  ;;  %2618 = vadd.xlane.f32.xlu1 %v2592_v42 }
 0xcd0   :  { %2612 = vadd.xlane.f32.xlu0 %v2589_v60  ;;  %2622 = vadd.xlane.f32.xlu1 %v2594_v27 }
 0xcd4   :  { %2620 = vadd.xlane.f32.xlu0 %v2593_v31  ;;  %2626 = vadd.xlane.f32.xlu1 %v2596_v53 }
 0xcd8   :  { %2624 = vadd.xlane.f32.xlu0 %v2595_v35 }
 0xcdc   :  { %2628 = vadd.xlane.f32.xlu0 %v2597_v20 }
 0xce5   :  { %2631 = vrot.lane.b32.xlu1 %v4376_v61, %s3118_s7 }
 0xcf2   :  { %2636 = vrot.lane.b32.xlu0 %v4365_v40, %s3120_s6 }
 0xd49   :  { %v2601_v59 = vpop.xlane.xlu1 %2600  ;;  %v2599_v30 = vpop.xlane.xlu0 %2598 }
 0xd4a   :  { %v2664_v61 = vrot.slane %v2601_v59, %v4846_v55  ;;  %v2660_v40 = vrot.slane %v2599_v30, %v4847_v17 }
 0xd4c   :  { %v2665_v58 = vsel %vm567_vm4, %v2664_v61, %v2660_v40 }
 0xd4d   :  { %v2607_v38 = vpop.xlane.xlu1 %2606  ;;  %v2603_v45 = vpop.xlane.xlu0 %2602 }
 0xd4e   :  { %v2669_v14 = vrot.slane %v2603_v45, %v4847_v17  ;;  %v2678_v22 = vrot.slane %v2607_v38, %v4847_v17 }
 0xd51   :  { %v2605_v7 = vpop.xlane.xlu0 %2604  ;;  %v2615_v26 = vpop.xlane.xlu1 %2614 }
 0xd52   :  { %v2673_v12 = vrot.slane %v2605_v7, %v4846_v55  ;;  %v2696_v11 = vrot.slane %v2615_v26, %v4847_v17 }
 0xd54   :  { %v2674_v21 = vsel %vm567_vm4, %v2673_v12, %v2669_v14 }
 0xd55   :  { %v2609_v16 = vpop.xlane.xlu0 %2608  ;;  %v2611_v50 = vpop.xlane.xlu1 %2610  ;;  %v2729_v44 = vsel %vm758_vm8, %v2674_v21, %v2665_v58 }
 0xd56   :  { %v2682_v8 = vrot.slane %v2609_v16, %v4846_v55  ;;  %v2687_v15 = vrot.slane %v2611_v50, %v4847_v17 }
 0xd58   :  { %v2683_v18 = vsel %vm567_vm4, %v2682_v8, %v2678_v22 }
 0xd59   :  { %v2617_v62 = vpop.xlane.xlu0 %2616  ;;  %v2619_v0 = vpop.xlane.xlu1 %2618  ;;  %v2730_v13 = vsel %vm760_vm9, %v2683_v18, %v2729_v44 }
 0xd5a   :  { %v2700_v28 = vrot.slane %v2617_v62, %v4846_v55  ;;  %v2705_v25 = vrot.slane %v2619_v0, %v4847_v17 }
 0xd5c   :  { %v2701_v37 = vsel %vm567_vm4, %v2700_v28, %v2696_v11 }
 0xd5d   :  { %v2613_v10 = vpop.xlane.xlu0 %2612  ;;  %v2623_v33 = vpop.xlane.xlu1 %2622 }
 0xd5e   :  { %v2691_v43 = vrot.slane %v2613_v10, %v4846_v55  ;;  %v2714_v19 = vrot.slane %v2623_v33, %v4847_v17 }
 0xd60   :  { %v2692_v29 = vsel %vm567_vm4, %v2691_v43, %v2687_v15 }
 0xd61   :  { %v2621_v1 = vpop.xlane.xlu0 %2620  ;;  %v2627_v51 = vpop.xlane.xlu1 %2626  ;;  %v2731_v49 = vsel %vm762_vm10, %v2692_v29, %v2730_v13 }
 0xd62   :  { %v2709_v48 = vrot.slane %v2621_v1, %v4846_v55  ;;  %v2732_v34 = vsel %vm764_vm11, %v2701_v37, %v2731_v49  ;;  %v2723_v52 = vrot.slane %v2627_v51, %v4847_v17 }
 0xd64   :  { %v2710_v9 = vsel %vm567_vm4, %v2709_v48, %v2705_v25 }
 0xd65   :  { %v2625_v24 = vpop.xlane.xlu0 %2624  ;;  %v2632_v3 = vpop.permute.xlu1 %2631  ;;  %v2733_v57 = vsel %vm766_vm12, %v2710_v9, %v2732_v34 }
 0xd66   :  { %v2718_v23 = vrot.slane %v2625_v24, %v4846_v55  ;;  %2634 = vst.msk [vmem:[%s4643_s16] sm:$0xff] %vm212_vm2, %v2632_v3 }
 0xd68   :  { %v2719_v5 = vsel %vm567_vm4, %v2718_v23, %v2714_v19 }
 0xd69   :  { %v2629_v6 = vpop.xlane.xlu0 %2628  ;;  %v2734_v4 = vsel %vm768_vm13, %v2719_v5, %v2733_v57 }
 0xd6a   :  { %v2727_v46 = vrot.slane %v2629_v6, %v4846_v55 }
 0xd6c   :  { %v2728_v42 = vsel %vm567_vm4, %v2727_v46, %v2723_v52 }
 0xd6d   :  { %v2735_v41 = vsel %vm770_vm14, %v2728_v42, %v2734_v4  ;;  %v2637_v36 = vpop.permute.xlu0 %2636 }
 0xd6e   :  { %2737 = vst.msk [vmem:[%s4644_s18] sm:$0xff] %vm142_vm1, %v2735_v41 }
 0xd6f   :  { %2639 = vst.msk [vmem:[%s4645_s17] sm:$0xff] %vm212_vm2, %v2637_v36 }
 0xd70   :  { %2739 = vst.msk [vmem:[%s4644_s18] sm:$0xff] %vm2738_vm0, %v4880_v32 }

</bundles_post_ra>
